<compile_context>
chip_gen: v5e
topology: v5e:2x2
jax: 0.10.0
libtpu: 0.0.40
codegen_flags: <defaults>
</compile_context>

<pallas_src>
import functools

import jax
import jax.numpy as jnp
import numpy as np
from jax.experimental import pallas as pl
from jax.experimental.pallas import tpu as pltpu

BN_EPS = 1e-5


# ---------------------------------------------------------------------------
# Fused kernel
# ---------------------------------------------------------------------------
def _fused_sep_head_kernel(*refs, H, W, layers):
    """One batch element: all conv layers of all heads, fully fused in VMEM.

    refs = (x_ref, [w_ref, scale_ref, shift_ref] * n_layers, o_ref, pad_ref)
      x_ref:     (1, H, W, C0)        input tile (NHWC)
      w_ref:     (9*cin_i, cout_i)    im2col weights (heads stacked along cout)
      scale_ref: (1, cout_i)          folded BN scale (1.0 for the final conv)
      shift_ref: (1, cout_i)          folded BN shift (or final conv bias)
      o_ref:     (1, cout_last, H*W)  lane-dense output (channels x pixels)
      pad_ref:   (H+2, W+2, Cmax)     zero-bordered VMEM halo scratch
    layers: static tuple of (cin, cout, relu) per layer.
    """
    n_layers = len(layers)
    x_ref = refs[0]
    o_ref = refs[1 + 3 * n_layers]
    pad_ref = refs[2 + 3 * n_layers]

    # Zero the halo scratch and place the input tile in its interior
    # (this replaces the wrapper-side jnp.pad of the old version).
    pad_ref[...] = jnp.zeros_like(pad_ref)
    cin0 = layers[0][0]
    pad_ref[1:H + 1, 1:W + 1, 0:cin0] = x_ref[0]

    y = None
    for li, (cin, cout, relu) in enumerate(layers):
        w_ref = refs[1 + 3 * li]
        scale_ref = refs[2 + 3 * li]
        shift_ref = refs[3 + 3 * li]

        # im2col: nine shifted windows concatenated along channels ->
        # a single (H*W, 9*cin) x (9*cin, cout) MXU matmul per layer.
        cols = jnp.concatenate(
            [pad_ref[dy:dy + H, dx:dx + W, 0:cin].reshape(H * W, cin)
             for dy in range(3) for dx in range(3)],
            axis=-1)
        y = jnp.dot(cols, w_ref[...], preferred_element_type=jnp.float32)
        y = y * scale_ref[0] + shift_ref[0]          # folded BN / final bias
        if relu:
            y = jnp.maximum(y, 0.0)

        if li + 1 < n_layers:
            # Intermediate stays in VMEM: write back into the halo scratch
            # (border remains zero == 'SAME' padding for the next layer).
            pad_ref[1:H + 1, 1:W + 1, 0:cout] = y.reshape(H, W, cout)

    # Lane-dense store: (cout, H*W) puts H*W (>=128) on the lane axis.
    o_ref[0] = y.T.astype(o_ref.dtype)


# ---------------------------------------------------------------------------
# Parameter stacking (heads fused along Cout)
# ---------------------------------------------------------------------------
def _build_fused_layers(params, head_order, input_channels):
    """Stack per-head layer params into fused (w, scale, shift, relu, cin, cout)."""
    n_heads = len(head_order)
    num_layers = len(params[head_order[0]])
    for name in head_order:
        assert len(params[name]) == num_layers, "all heads must share num_conv"

    cin = input_channels
    ctot = n_heads * cin
    out_ch = [params[n][-1]['w'].shape[-1] for n in head_order]
    total_out = sum(out_ch)
    cout_pad = max(8, ((total_out + 7) // 8) * 8)   # pad channels for clean store

    fused = []
    for li in range(num_layers):
        is_final = (li == num_layers - 1)
        if not is_final:
            if li == 0:
                # All heads consume the shared input x: dense stack along Cout.
                w = jnp.concatenate(
                    [params[n][0]['w'].reshape(9 * cin, cin) for n in head_order],
                    axis=-1)
                layer_cin = cin
            else:
                # Each head consumes its own intermediate: block-diagonal.
                w3 = jnp.zeros((9, ctot, ctot), jnp.float32)
                for k, n in enumerate(head_order):
                    wk = params[n][li]['w'].reshape(9, cin, cin)
                    w3 = w3.at[:, k * cin:(k + 1) * cin,
                               k * cin:(k + 1) * cin].set(wk)
                w = w3.reshape(9 * ctot, ctot)
                layer_cin = ctot
            scale = jnp.concatenate([params[n][li]['scale'] for n in head_order])
            shift = jnp.concatenate([params[n][li]['shift'] for n in head_order])
            fused.append((w, scale, shift, True, layer_cin, ctot))
        else:
            layer_cin = cin if num_layers == 1 else ctot
            w3 = jnp.zeros((9, layer_cin, cout_pad), jnp.float32)
            scale = jnp.zeros((cout_pad,), jnp.float32)
            shift = jnp.zeros((cout_pad,), jnp.float32)
            off = 0
            for k, n in enumerate(head_order):
                oc = out_ch[k]
                wk = params[n][-1]['w'].reshape(9, cin, oc)
                cstart = 0 if num_layers == 1 else k * cin
                w3 = w3.at[:, cstart:cstart + cin, off:off + oc].set(wk)
                scale = scale.at[off:off + oc].set(params[n][-1]['scale'])
                shift = shift.at[off:off + oc].set(params[n][-1]['shift'])
                off += oc
            w = w3.reshape(9 * layer_cin, cout_pad)
            fused.append((w, scale, shift, False, layer_cin, cout_pad))
    return fused, out_ch, cout_pad


# ---------------------------------------------------------------------------
# Forward wrapper (matches SeparateHead.forward semantics)
# ---------------------------------------------------------------------------
def separate_head_forward(params, x_nchw):
    """Matches SeparateHead.forward: dict of per-head NCHW outputs."""
    head_order = list(params.keys())
    N, C, H, W = x_nchw.shape
    x_nhwc = jnp.transpose(x_nchw, (0, 2, 3, 1))

    fused, out_ch, cout_pad = _build_fused_layers(params, head_order, C)
    layer_meta = tuple((cin, cout, relu) for (_, _, _, relu, cin, cout) in fused)
    # Widest activation kept in the halo scratch (input + all intermediates).
    cmax = max([C] + [cout for (_, cout, _) in layer_meta[:-1]])

    in_specs = [pl.BlockSpec((1, H, W, C), lambda n: (n, 0, 0, 0))]
    args = [x_nhwc]
    for (w, scale, shift, _relu, cin, cout) in fused:
        in_specs.append(pl.BlockSpec((9 * cin, cout), lambda n: (0, 0)))
        in_specs.append(pl.BlockSpec((1, cout), lambda n: (0, 0)))
        in_specs.append(pl.BlockSpec((1, cout), lambda n: (0, 0)))
        args += [w, scale.reshape(1, cout), shift.reshape(1, cout)]

    kern = functools.partial(_fused_sep_head_kernel, H=H, W=W, layers=layer_meta)
    out = pl.pallas_call(
        kern,
        out_shape=jax.ShapeDtypeStruct((N, cout_pad, H * W), x_nchw.dtype),
        grid=(N,),
        in_specs=in_specs,
        out_specs=pl.BlockSpec((1, cout_pad, H * W), lambda n: (n, 0, 0)),
        scratch_shapes=[pltpu.VMEM((H + 2, W + 2, cmax), jnp.float32)],
        compiler_params=pltpu.CompilerParams(
            dimension_semantics=("parallel",)),
    )(*args)

    out = out.reshape(N, cout_pad, H, W)   # already channel-major: no transpose
    ret = {}
    off = 0
    for name, oc in zip(head_order, out_ch):
        ret[name] = out[:, off:off + oc]
        off += oc
    return ret


# ---------------------------------------------------------------------------
# Synthetic parameters (shapes match SeparateHead.__init__)
# ---------------------------------------------------------------------------
def init_separate_head_params(key, input_channels, sep_head_dict,
                              init_bias=-2.19, use_bias=False):
    """Deterministic synthetic parameters matching SeparateHead.__init__ shapes."""
    del use_bias  # intermediate convs carry no bias; BN fold supplies shift=0
    params = {}
    for name, cfg in sep_head_dict.items():
        out_ch = cfg['out_channels']
        num_conv = cfg['num_conv']
        layers = []
        # (num_conv - 1) x [Conv3x3(no bias) -> BN -> ReLU]
        for _ in range(num_conv - 1):
            key, sub = jax.random.split(key)
            std = np.sqrt(2.0 / (9 * input_channels + 9 * input_channels))
            w = jax.random.normal(
                sub, (3, 3, input_channels, input_channels), jnp.float32) * std
            # eval-mode BN fold: gamma=1, beta=0, mean=0, var=1
            bn_scale = jnp.full((input_channels,),
                                1.0 / np.sqrt(1.0 + BN_EPS), jnp.float32)
            bn_shift = jnp.zeros((input_channels,), jnp.float32)
            layers.append(dict(w=w, scale=bn_scale, shift=bn_shift, relu=True))
        # final Conv3x3 with bias
        key, sub = jax.random.split(key)
        std = np.sqrt(2.0 / (9 * input_channels + 9 * out_ch))  # xavier-normal-ish
        w = jax.random.normal(sub, (3, 3, input_channels, out_ch), jnp.float32) * std
        bias_val = init_bias if 'hm' in name else 0.0
        layers.append(dict(w=w,
                           scale=jnp.ones((out_ch,), jnp.float32),
                           shift=jnp.full((out_ch,), bias_val, jnp.float32),
                           relu=False))
        params[name] = layers
    return params


# ---------------------------------------------------------------------------
# Pure-JAX reference (lax.conv) for correctness checking
# ---------------------------------------------------------------------------
def _ref_forward(params, x_nchw):
    x_nhwc = jnp.transpose(x_nchw, (0, 2, 3, 1))
    out = {}
    for name, layers in params.items():
        y = x_nhwc
        for layer in layers:
            y = jax.lax.conv_general_dilated(
                y, layer['w'], (1, 1), 'SAME',
                dimension_numbers=('NHWC', 'HWIO', 'NHWC'))
            y = y * layer['scale'] + layer['shift']
            if layer['relu']:
                y = jnp.maximum(y, 0.0)
        out[name] = jnp.transpose(y, (0, 3, 1, 2))
    return out


if __name__ == "__main__":
    sep_head_dict = {
        'hm':  {'out_channels': 2, 'num_conv': 2},
        'reg': {'out_channels': 2, 'num_conv': 2},
        'dim': {'out_channels': 3, 'num_conv': 2},
    }
    N, C, H, W = 2, 32, 16, 16

    key = jax.random.PRNGKey(0)
    kp, kx = jax.random.split(key)
    params = init_separate_head_params(kp, C, sep_head_dict)
    x = jax.random.normal(kx, (N, C, H, W), jnp.float32)   # NCHW like PyTorch

    out = separate_head_forward(params, x)
    jax.block_until_ready(out)

    ref = _ref_forward(params, x)
    # f32 matmuls on the MXU use multi-pass bf16 decomposition; tolerance
    # accounts for accumulation-order / decomposition differences vs lax.conv.
    for name in sep_head_dict:
        np.testing.assert_allclose(np.asarray(out[name]), np.asarray(ref[name]),
                                   rtol=1e-3, atol=1e-3)

    print("KERNEL_OK")
</pallas_src>

<mosaic_0001>
module attributes {stable_mosaic.version = 11 : i64} {
  func.func @_fused_sep_head_kernel(%arg0: i32, %arg1: memref<1x16x16x32xf32, #tpu.memory_space<vmem>>, %arg2: memref<288x96xf32, #tpu.memory_space<vmem>>, %arg3: memref<1x96xf32, #tpu.memory_space<vmem>>, %arg4: memref<1x96xf32, #tpu.memory_space<vmem>>, %arg5: memref<864x8xf32, #tpu.memory_space<vmem>>, %arg6: memref<1x8xf32, #tpu.memory_space<vmem>>, %arg7: memref<1x8xf32, #tpu.memory_space<vmem>>, %arg8: memref<1x8x256xf32, #tpu.memory_space<vmem>>, %arg9: memref<18x18x96xf32, #tpu.memory_space<vmem>>) attributes {dimension_semantics = [#tpu.dimension_semantics<parallel>], iteration_bounds = array<i64: 2>, scalar_prefetch = 0 : i64, scratch_operands = 1 : i64, tpu.core_type = #tpu.core_type<tc>, window_params = [{transform_indices = @transform_0, window_bounds = array<i64: 1, 16, 16, 32>}, {pipeline_mode = #tpu.pipeline_mode<synchronous>, transform_indices = @transform_1, window_bounds = array<i64: 288, 96>}, {pipeline_mode = #tpu.pipeline_mode<synchronous>, transform_indices = @transform_2, window_bounds = array<i64: 1, 96>}, {pipeline_mode = #tpu.pipeline_mode<synchronous>, transform_indices = @transform_3, window_bounds = array<i64: 1, 96>}, {pipeline_mode = #tpu.pipeline_mode<synchronous>, transform_indices = @transform_4, window_bounds = array<i64: 864, 8>}, {pipeline_mode = #tpu.pipeline_mode<synchronous>, transform_indices = @transform_5, window_bounds = array<i64: 1, 8>}, {pipeline_mode = #tpu.pipeline_mode<synchronous>, transform_indices = @transform_6, window_bounds = array<i64: 1, 8>}, {transform_indices = @transform_7, window_bounds = array<i64: 1, 8, 256>}]} {
    %cst = arith.constant 0.000000e+00 : f32
    %0 = vector.broadcast %cst : f32 to vector<18x18x96xf32>
    %c0 = arith.constant 0 : index
    %c0_0 = arith.constant 0 : index
    %c0_1 = arith.constant 0 : index
    %1 = vector.load %arg9[%c0, %c0_0, %c0_1] : memref<18x18x96xf32, #tpu.memory_space<vmem>>, vector<18x18x96xf32>
    tpu.vector_store %arg9[%c0, %c0_0, %c0_1], %0 {strides = array<i32>} : memref<18x18x96xf32, #tpu.memory_space<vmem>>, vector<18x18x96xf32>,
    %c0_2 = arith.constant 0 : index
    %c0_3 = arith.constant 0 : index
    %c0_4 = arith.constant 0 : index
    %c0_5 = arith.constant 0 : index
    %2 = vector.load %arg1[%c0_2, %c0_3, %c0_4, %c0_5] : memref<1x16x16x32xf32, #tpu.memory_space<vmem>>, vector<1x16x16x32xf32>
    %3 = vector.shape_cast %2 : vector<1x16x16x32xf32> to vector<16x16x32xf32>
    %c1 = arith.constant 1 : index
    %c1_6 = arith.constant 1 : index
    %c0_7 = arith.constant 0 : index
    %4 = vector.load %arg9[%c1, %c1_6, %c0_7] : memref<18x18x96xf32, #tpu.memory_space<vmem>>, vector<16x16x32xf32>
    tpu.vector_store %arg9[%c1, %c1_6, %c0_7], %3 {strides = array<i32>} : memref<18x18x96xf32, #tpu.memory_space<vmem>>, vector<16x16x32xf32>,
    %c0_8 = arith.constant 0 : index
    %c0_9 = arith.constant 0 : index
    %c0_10 = arith.constant 0 : index
    %5 = vector.load %arg9[%c0_8, %c0_9, %c0_10] : memref<18x18x96xf32, #tpu.memory_space<vmem>>, vector<16x16x32xf32>
    %6 = vector.shape_cast %5 : vector<16x16x32xf32> to vector<256x32xf32>
    %c0_11 = arith.constant 0 : index
    %c1_12 = arith.constant 1 : index
    %c0_13 = arith.constant 0 : index
    %7 = vector.load %arg9[%c0_11, %c1_12, %c0_13] : memref<18x18x96xf32, #tpu.memory_space<vmem>>, vector<16x16x32xf32>
    %8 = vector.shape_cast %7 : vector<16x16x32xf32> to vector<256x32xf32>
    %c0_14 = arith.constant 0 : index
    %c2 = arith.constant 2 : index
    %c0_15 = arith.constant 0 : index
    %9 = vector.load %arg9[%c0_14, %c2, %c0_15] : memref<18x18x96xf32, #tpu.memory_space<vmem>>, vector<16x16x32xf32>
    %10 = vector.shape_cast %9 : vector<16x16x32xf32> to vector<256x32xf32>
    %c1_16 = arith.constant 1 : index
    %c0_17 = arith.constant 0 : index
    %c0_18 = arith.constant 0 : index
    %11 = vector.load %arg9[%c1_16, %c0_17, %c0_18] : memref<18x18x96xf32, #tpu.memory_space<vmem>>, vector<16x16x32xf32>
    %12 = vector.shape_cast %11 : vector<16x16x32xf32> to vector<256x32xf32>
    %c1_19 = arith.constant 1 : index
    %c1_20 = arith.constant 1 : index
    %c0_21 = arith.constant 0 : index
    %13 = vector.load %arg9[%c1_19, %c1_20, %c0_21] : memref<18x18x96xf32, #tpu.memory_space<vmem>>, vector<16x16x32xf32>
    %14 = vector.shape_cast %13 : vector<16x16x32xf32> to vector<256x32xf32>
    %c1_22 = arith.constant 1 : index
    %c2_23 = arith.constant 2 : index
    %c0_24 = arith.constant 0 : index
    %15 = vector.load %arg9[%c1_22, %c2_23, %c0_24] : memref<18x18x96xf32, #tpu.memory_space<vmem>>, vector<16x16x32xf32>
    %16 = vector.shape_cast %15 : vector<16x16x32xf32> to vector<256x32xf32>
    %c2_25 = arith.constant 2 : index
    %c0_26 = arith.constant 0 : index
    %c0_27 = arith.constant 0 : index
    %17 = vector.load %arg9[%c2_25, %c0_26, %c0_27] : memref<18x18x96xf32, #tpu.memory_space<vmem>>, vector<16x16x32xf32>
    %18 = vector.shape_cast %17 : vector<16x16x32xf32> to vector<256x32xf32>
    %c2_28 = arith.constant 2 : index
    %c1_29 = arith.constant 1 : index
    %c0_30 = arith.constant 0 : index
    %19 = vector.load %arg9[%c2_28, %c1_29, %c0_30] : memref<18x18x96xf32, #tpu.memory_space<vmem>>, vector<16x16x32xf32>
    %20 = vector.shape_cast %19 : vector<16x16x32xf32> to vector<256x32xf32>
    %c2_31 = arith.constant 2 : index
    %c2_32 = arith.constant 2 : index
    %c0_33 = arith.constant 0 : index
    %21 = vector.load %arg9[%c2_31, %c2_32, %c0_33] : memref<18x18x96xf32, #tpu.memory_space<vmem>>, vector<16x16x32xf32>
    %22 = vector.shape_cast %21 : vector<16x16x32xf32> to vector<256x32xf32>
    %23 = tpu.concatenate %6, %8, %10, %12, %14, %16, %18, %20, %22 in 1 : vector<256x32xf32>, vector<256x32xf32>, vector<256x32xf32>, vector<256x32xf32>, vector<256x32xf32>, vector<256x32xf32>, vector<256x32xf32>, vector<256x32xf32>, vector<256x32xf32> -> vector<256x288xf32>
    %c0_34 = arith.constant 0 : index
    %c0_35 = arith.constant 0 : index
    %24 = vector.load %arg2[%c0_34, %c0_35] : memref<288x96xf32, #tpu.memory_space<vmem>>, vector<288x96xf32>
    %cst_36 = arith.constant dense<0.000000e+00> : vector<256x96xf32>
    %25 = tpu.matmul %23, %24, %cst_36 {dimension_numbers = #tpu.dot_dimension_numbers<[1], [0], [0], [1], [0, 0, 1, 1], [], []>} : vector<256x288xf32>, vector<288x96xf32>, vector<256x96xf32> -> vector<256x96xf32>
    %c0_37 = arith.constant 0 : index
    %c0_38 = arith.constant 0 : index
    %26 = vector.load %arg3[%c0_37, %c0_38] : memref<1x96xf32, #tpu.memory_space<vmem>>, vector<1x96xf32>
    %27 = vector.shape_cast %26 : vector<1x96xf32> to vector<96xf32>
    %28 = vector.shape_cast %27 : vector<96xf32> to vector<1x96xf32>
    %29 = vector.broadcast %28 : vector<1x96xf32> to vector<256x96xf32>
    %30 = arith.mulf %25, %29 : vector<256x96xf32>
    %c0_39 = arith.constant 0 : index
    %c0_40 = arith.constant 0 : index
    %31 = vector.load %arg4[%c0_39, %c0_40] : memref<1x96xf32, #tpu.memory_space<vmem>>, vector<1x96xf32>
    %32 = vector.shape_cast %31 : vector<1x96xf32> to vector<96xf32>
    %33 = vector.shape_cast %32 : vector<96xf32> to vector<1x96xf32>
    %34 = vector.broadcast %33 : vector<1x96xf32> to vector<256x96xf32>
    %35 = arith.addf %30, %34 : vector<256x96xf32>
    %cst_41 = arith.constant 0.000000e+00 : f32
    %36 = vector.broadcast %cst_41 : f32 to vector<256x96xf32>
    %37 = arith.maximumf %35, %36 : vector<256x96xf32>
    %38 = vector.shape_cast %37 : vector<256x96xf32> to vector<16x16x96xf32>
    %c1_42 = arith.constant 1 : index
    %c1_43 = arith.constant 1 : index
    %c0_44 = arith.constant 0 : index
    %39 = vector.load %arg9[%c1_42, %c1_43, %c0_44] : memref<18x18x96xf32, #tpu.memory_space<vmem>>, vector<16x16x96xf32>
    tpu.vector_store %arg9[%c1_42, %c1_43, %c0_44], %38 {strides = array<i32>} : memref<18x18x96xf32, #tpu.memory_space<vmem>>, vector<16x16x96xf32>,
    %c0_45 = arith.constant 0 : index
    %c0_46 = arith.constant 0 : index
    %c0_47 = arith.constant 0 : index
    %40 = vector.load %arg9[%c0_45, %c0_46, %c0_47] : memref<18x18x96xf32, #tpu.memory_space<vmem>>, vector<16x16x96xf32>
    %41 = vector.shape_cast %40 : vector<16x16x96xf32> to vector<256x96xf32>
    %c0_48 = arith.constant 0 : index
    %c1_49 = arith.constant 1 : index
    %c0_50 = arith.constant 0 : index
    %42 = vector.load %arg9[%c0_48, %c1_49, %c0_50] : memref<18x18x96xf32, #tpu.memory_space<vmem>>, vector<16x16x96xf32>
    %43 = vector.shape_cast %42 : vector<16x16x96xf32> to vector<256x96xf32>
    %c0_51 = arith.constant 0 : index
    %c2_52 = arith.constant 2 : index
    %c0_53 = arith.constant 0 : index
    %44 = vector.load %arg9[%c0_51, %c2_52, %c0_53] : memref<18x18x96xf32, #tpu.memory_space<vmem>>, vector<16x16x96xf32>
    %45 = vector.shape_cast %44 : vector<16x16x96xf32> to vector<256x96xf32>
    %c1_54 = arith.constant 1 : index
    %c0_55 = arith.constant 0 : index
    %c0_56 = arith.constant 0 : index
    %46 = vector.load %arg9[%c1_54, %c0_55, %c0_56] : memref<18x18x96xf32, #tpu.memory_space<vmem>>, vector<16x16x96xf32>
    %47 = vector.shape_cast %46 : vector<16x16x96xf32> to vector<256x96xf32>
    %c1_57 = arith.constant 1 : index
    %c1_58 = arith.constant 1 : index
    %c0_59 = arith.constant 0 : index
    %48 = vector.load %arg9[%c1_57, %c1_58, %c0_59] : memref<18x18x96xf32, #tpu.memory_space<vmem>>, vector<16x16x96xf32>
    %49 = vector.shape_cast %48 : vector<16x16x96xf32> to vector<256x96xf32>
    %c1_60 = arith.constant 1 : index
    %c2_61 = arith.constant 2 : index
    %c0_62 = arith.constant 0 : index
    %50 = vector.load %arg9[%c1_60, %c2_61, %c0_62] : memref<18x18x96xf32, #tpu.memory_space<vmem>>, vector<16x16x96xf32>
    %51 = vector.shape_cast %50 : vector<16x16x96xf32> to vector<256x96xf32>
    %c2_63 = arith.constant 2 : index
    %c0_64 = arith.constant 0 : index
    %c0_65 = arith.constant 0 : index
    %52 = vector.load %arg9[%c2_63, %c0_64, %c0_65] : memref<18x18x96xf32, #tpu.memory_space<vmem>>, vector<16x16x96xf32>
    %53 = vector.shape_cast %52 : vector<16x16x96xf32> to vector<256x96xf32>
    %c2_66 = arith.constant 2 : index
    %c1_67 = arith.constant 1 : index
    %c0_68 = arith.constant 0 : index
    %54 = vector.load %arg9[%c2_66, %c1_67, %c0_68] : memref<18x18x96xf32, #tpu.memory_space<vmem>>, vector<16x16x96xf32>
    %55 = vector.shape_cast %54 : vector<16x16x96xf32> to vector<256x96xf32>
    %c2_69 = arith.constant 2 : index
    %c2_70 = arith.constant 2 : index
    %c0_71 = arith.constant 0 : index
    %56 = vector.load %arg9[%c2_69, %c2_70, %c0_71] : memref<18x18x96xf32, #tpu.memory_space<vmem>>, vector<16x16x96xf32>
    %57 = vector.shape_cast %56 : vector<16x16x96xf32> to vector<256x96xf32>
    %58 = tpu.concatenate %41, %43, %45, %47, %49, %51, %53, %55, %57 in 1 : vector<256x96xf32>, vector<256x96xf32>, vector<256x96xf32>, vector<256x96xf32>, vector<256x96xf32>, vector<256x96xf32>, vector<256x96xf32>, vector<256x96xf32>, vector<256x96xf32> -> vector<256x864xf32>
    %c0_72 = arith.constant 0 : index
    %c0_73 = arith.constant 0 : index
    %59 = vector.load %arg5[%c0_72, %c0_73] : memref<864x8xf32, #tpu.memory_space<vmem>>, vector<864x8xf32>
    %cst_74 = arith.constant dense<0.000000e+00> : vector<256x8xf32>
    %60 = tpu.matmul %58, %59, %cst_74 {dimension_numbers = #tpu.dot_dimension_numbers<[1], [0], [0], [1], [0, 0, 1, 1], [], []>} : vector<256x864xf32>, vector<864x8xf32>, vector<256x8xf32> -> vector<256x8xf32>
    %c0_75 = arith.constant 0 : index
    %c0_76 = arith.constant 0 : index
    %61 = vector.load %arg6[%c0_75, %c0_76] : memref<1x8xf32, #tpu.memory_space<vmem>>, vector<1x8xf32>
    %62 = vector.shape_cast %61 : vector<1x8xf32> to vector<8xf32>
    %63 = vector.shape_cast %62 : vector<8xf32> to vector<1x8xf32>
    %64 = vector.broadcast %63 : vector<1x8xf32> to vector<256x8xf32>
    %65 = arith.mulf %60, %64 : vector<256x8xf32>
    %c0_77 = arith.constant 0 : index
    %c0_78 = arith.constant 0 : index
    %66 = vector.load %arg7[%c0_77, %c0_78] : memref<1x8xf32, #tpu.memory_space<vmem>>, vector<1x8xf32>
    %67 = vector.shape_cast %66 : vector<1x8xf32> to vector<8xf32>
    %68 = vector.shape_cast %67 : vector<8xf32> to vector<1x8xf32>
    %69 = vector.broadcast %68 : vector<1x8xf32> to vector<256x8xf32>
    %70 = arith.addf %65, %69 : vector<256x8xf32>
    %71 = tpu.transpose %70, [1, 0] : vector<256x8xf32> -> vector<8x256xf32>
    %c0_79 = arith.constant 0 : index
    %c0_80 = arith.constant 0 : index
    %c0_81 = arith.constant 0 : index
    %72 = vector.load %arg8[%c0_79, %c0_80, %c0_81] : memref<1x8x256xf32, #tpu.memory_space<vmem>>, vector<1x8x256xf32>
    %73 = vector.shape_cast %72 : vector<1x8x256xf32> to vector<8x256xf32>
    %74 = vector.shape_cast %71 : vector<8x256xf32> to vector<1x8x256xf32>
    tpu.vector_store %arg8[%c0_79, %c0_80, %c0_81], %74 {strides = array<i32>} : memref<1x8x256xf32, #tpu.memory_space<vmem>>, vector<1x8x256xf32>,
    return
  }
  func.func @transform_0(%arg0: i32) -> (i32, i32, i32, i32) {
    %c0_i32 = arith.constant 0 : i32
    %c0_i32_0 = arith.constant 0 : i32
    %c0_i32_1 = arith.constant 0 : i32
    %c0_i32_2 = arith.constant 0 : i32
    return %arg0, %c0_i32, %c0_i32_0, %c0_i32_1 : i32, i32, i32, i32
  }
  func.func @transform_1(%arg0: i32) -> (i32, i32) {
    %c0_i32 = arith.constant 0 : i32
    %c0_i32_0 = arith.constant 0 : i32
    %c0_i32_1 = arith.constant 0 : i32
    return %c0_i32, %c0_i32_0 : i32, i32
  }
  func.func @transform_2(%arg0: i32) -> (i32, i32) {
    %c0_i32 = arith.constant 0 : i32
    %c0_i32_0 = arith.constant 0 : i32
    %c0_i32_1 = arith.constant 0 : i32
    return %c0_i32, %c0_i32_0 : i32, i32
  }
  func.func @transform_3(%arg0: i32) -> (i32, i32) {
    %c0_i32 = arith.constant 0 : i32
    %c0_i32_0 = arith.constant 0 : i32
    %c0_i32_1 = arith.constant 0 : i32
    return %c0_i32, %c0_i32_0 : i32, i32
  }
  func.func @transform_4(%arg0: i32) -> (i32, i32) {
    %c0_i32 = arith.constant 0 : i32
    %c0_i32_0 = arith.constant 0 : i32
    %c0_i32_1 = arith.constant 0 : i32
    return %c0_i32, %c0_i32_0 : i32, i32
  }
  func.func @transform_5(%arg0: i32) -> (i32, i32) {
    %c0_i32 = arith.constant 0 : i32
    %c0_i32_0 = arith.constant 0 : i32
    %c0_i32_1 = arith.constant 0 : i32
    return %c0_i32, %c0_i32_0 : i32, i32
  }
  func.func @transform_6(%arg0: i32) -> (i32, i32) {
    %c0_i32 = arith.constant 0 : i32
    %c0_i32_0 = arith.constant 0 : i32
    %c0_i32_1 = arith.constant 0 : i32
    return %c0_i32, %c0_i32_0 : i32, i32
  }
  func.func @transform_7(%arg0: i32) -> (i32, i32, i32) {
    %c0_i32 = arith.constant 0 : i32
    %c0_i32_0 = arith.constant 0 : i32
    %c0_i32_1 = arith.constant 0 : i32
    return %arg0, %c0_i32, %c0_i32_0 : i32, i32, i32
  }
}

</mosaic_0001>

<bundles_post_ra>
// kernel: tpu_custom_call.1
= control target key start
LH: loop header
LB: loop body
LE: loop exit
PB: predicated region body
PF: predicated region fallthrough
CT: control target
= control target key end

     0   :  { %12 = vsyncpa [#allocation4], 0  ;;  %s9036_s0 = inlined_call_operand.vmem [shape: f32[2,16,16,32], index: 0, kind: input, shape index: {}]   ;;  %s9037_s1 = inlined_call_operand.vmem [shape: f32[288,96], index: 1, kind: input, shape index: {}]   ;;  %s9038_s2 = inlined_call_operand.vmem [shape: f32[1,96], index: 2, kind: input, shape index: {}]   ;;  %s9039_s3 = inlined_call_operand.vmem [shape: f32[1,96], index: 3, kind: input, shape index: {}]   ;;  %s9040_s4 = inlined_call_operand.vmem [shape: f32[864,8], index: 4, kind: input, shape index: {}]   ;;  %s9041_s5 = inlined_call_operand.vmem [shape: f32[1,8], index: 5, kind: input, shape index: {}]   ;;  %s9042_s6 = inlined_call_operand.vmem [shape: f32[1,8], index: 6, kind: input, shape index: {}]   ;;  %s9043_s7 = inlined_call_operand.hbm [shape: f32[2,8,256], index: 7, kind: output, shape index: {}]  }
   0x1   :  { %14 = vsyncpa [#allocation4 + $0x1], 0  ;;  %s5918_s24 = smov 0   ;;  %s5920_s25 = smov 0  }
   0x2   :  { %s5922_s26 = smov 0   ;;  %s5924_s27 = smov 0  }
   0x3 LB: > { %s5939_s28 = sadd.s32 4294967295, %s5872_s27   ;;  %s4713_s29 = sadd.s32 4294967294, %s5872_s27   ;;  %s5872_s27 = sphi %s5924_s27, %s9223_s27   ;;  %s5868_s26 = sphi %s5922_s26, %s9222_s26   ;;  %s5864_s25 = sphi %s5920_s25, %s9221_s25   ;;  %s5860_s24 = sphi %s5918_s24, %s9220_s24  }
   0x4   : > { %s5943_s30 = sadd.s32 1, %s5872_s27   ;;  %s179_s8 = sadd.s32 1, %s5868_s26 }
   0x5   : > { %s176_s9 = ssub.s32 %s5872_s27, %s5943_s30  ;;  %p189_p0 = scmp.ne.s32.totalorder %s5868_s26, %s5864_s25 }
   0x6   : > { %p177_p1 = scmp.eq.s32.totalorder %s176_s9, 0  ;;  %p190_p2 = scmp.eq.s32.totalorder %s5939_s28, 1 }
   0x7   : > { %p195_p3 = scmp.ne.s32.totalorder %s5864_s25, %s5860_s24  ;;  %p196_p4 = scmp.eq.s32.totalorder %s4713_s29, 1 }
   0x8   : > { %s5954_s10 = scalar_select %p177_p1, %s5868_s26, %s179_s8  }
   0x9   : > { %p5956_p5 = por %p190_p2, %p189_p0  ;;  %p5960_p6 = por %p196_p4, %p195_p3 }
   0xa   : > { %p4716_p7 = scmp.ge.s32.totalorder %s5872_s27, 1  ;;  %p240_p8 = scmp.lt.s32.totalorder %s5872_s27, 3 }
   0xc   : > { %p241_p9 = pnand %p4716_p7, %p240_p8 }
   0xe   : > { %244 = sbr.rel (%p241_p9) target bundleno = 1464 (0x5b8), region = 48 }
  0x13   : > { %vm277_vm0 = vcmask 785408   ;;  %vm280_vm1 = vcmask 779264   ;;  %v5874_v0 = vmov 0.0   ;;  %s5875_s13 = smov 32   ;;  %p272_p10 = scmp.lt.s32.totalorder %s5939_s28, 1  ;;  %vm366_vm2 = vcmask 261120  }
  0x14   : > { %278 = vst.msk [vmem:[#allocation2] sm:$0xff] %vm277_vm0, %v5874_v0  ;;  %s5876_s19 = smov 64   ;;  %s5877_s20 = smov 96   ;;  %vm1488_vm3 = vcmask 523264  }
  0x15   : > { %279 = vst.msk [vmem:[#allocation2 + $0x8] sm:$0xff] %vm277_vm0, %v5874_v0  ;;  %s273_s14 = scalar_select %p272_p10, %s5939_s28, 1 }
  0x16   : > { %281 = vst.msk [vmem:[#allocation2 + $0x10] sm:$0x3] %vm280_vm1, %v5874_v0  ;;  %s5830_s29 = scalar_lea.hbm %s9043_s7, 32 }
  0x17   : > { %282 = vst.msk [vmem:[#allocation2 + $0x18] sm:$0xff] %vm277_vm0, %v5874_v0  ;;  %s4789_s15 = sshll.u32 %s273_s14, 8  ;;  %s4790_s14 = sshll.u32 %s5939_s28, 4 }
  0x18   : > { %283 = vst.msk [vmem:[#allocation2 + $0x20] sm:$0xff] %vm277_vm0, %v5874_v0  ;;  %s6070_s18 = scalar_lea.vmem %s9036_s0, %s4789_s15 }
  0x19   : > { %284 = vst.msk [vmem:[#allocation2 + $0x28] sm:$0x3] %vm280_vm1, %v5874_v0  ;;  %v339_v4 = vld [vmem:[%s6070_s18 + $0x30] sm:$0xff]  ;;  %v340_v5 = vld [vmem:[%s6070_s18 + $0x38] sm:$0xff]  ;;  %v333_v8 = vld [vmem:[%s6070_s18] sm:$0xff] }
  0x1a   : > { %285 = vst.msk [vmem:[#allocation2 + $0x30] sm:$0xff] %vm277_vm0, %v5874_v0  ;;  %v335_v6 = vld [vmem:[%s6070_s18 + $0x10] sm:$0xff]  ;;  %v336_v7 = vld [vmem:[%s6070_s18 + $0x18] sm:$0xff]  ;;  %v334_v9 = vld [vmem:[%s6070_s18 + $0x8] sm:$0xff] }
  0x1b   : > { %286 = vst.msk [vmem:[#allocation2 + $0x38] sm:$0xff] %vm277_vm0, %v5874_v0  ;;  %v341_v10 = vld [vmem:[%s6070_s18 + $0x40] sm:$0xff]  ;;  %v342_v11 = vld [vmem:[%s6070_s18 + $0x48] sm:$0xff]  ;;  %v343_v15 = vld [vmem:[%s6070_s18 + $0x50] sm:$0xff] }
  0x1c   : > { %v431_v1 = vld [vmem:[#allocation2 + $0x1] sm:$0xff]  ;;  %287 = vst.msk [vmem:[#allocation2 + $0x40] sm:$0x3] %vm280_vm1, %v5874_v0  ;;  %v344_v17 = vld [vmem:[%s6070_s18 + $0x58] sm:$0xff]  ;;  %v347_v20 = vld [vmem:[%s6070_s18 + $0x70] sm:$0xff] }
  0x1d   : > { %v432_v2 = vld [vmem:[#allocation2 + $0x9] sm:$0xff]  ;;  %288 = vst.msk [vmem:[#allocation2 + $0x48] sm:$0xff] %vm277_vm0, %v5874_v0  ;;  %v337_v12 = vld [vmem:[%s6070_s18 + $0x20] sm:$0xff]  ;;  %v348_v22 = vld [vmem:[%s6070_s18 + $0x78] sm:$0xff] }
  0x1e   : > { %v4866_v3 = vpack.i.bf16 %v432_v2, %v431_v1  ;;  %289 = vst.msk [vmem:[#allocation2 + $0x50] sm:$0xff] %vm277_vm0, %v5874_v0  ;;  %v338_v13 = vld [vmem:[%s6070_s18 + $0x28] sm:$0xff]  ;;  %v345_v25 = vld [vmem:[%s6070_s18 + $0x60] sm:$0xff]  ;;  %v351_v40 = vld [vmem:[%s6070_s18 + $0x90] sm:$0xff] }
  0x1f   : > { %290 = vst.msk [vmem:[#allocation2 + $0x58] sm:$0x3] %vm280_vm1, %v5874_v0  ;;  %v346_v27 = vld [vmem:[%s6070_s18 + $0x68] sm:$0xff]  ;;  %v349_v30 = vld [vmem:[%s6070_s18 + $0x80] sm:$0xff]  ;;  %v352_v42 = vld [vmem:[%s6070_s18 + $0x98] sm:$0xff] }
  0x20   : > { %4867 = vrot.lane.b32.xlu0 %v4866_v3, %s5875_s13  ;;  %291 = vst.msk [vmem:[#allocation2 + $0x60] sm:$0xff] %vm277_vm0, %v5874_v0  ;;  %v350_v32 = vld [vmem:[%s6070_s18 + $0x88] sm:$0xff]  ;;  %v353_v35 = vld [vmem:[%s6070_s18 + $0xa0] sm:$0xff]  ;;  %v355_v44 = vld [vmem:[%s6070_s18 + $0xb0] sm:$0xff] }
  0x21   : > { %292 = vst.msk [vmem:[#allocation2 + $0x68] sm:$0xff] %vm277_vm0, %v5874_v0  ;;  %v354_v37 = vld [vmem:[%s6070_s18 + $0xa8] sm:$0xff]  ;;  %v356_v47 = vld [vmem:[%s6070_s18 + $0xb8] sm:$0xff]  ;;  %v359_v48 = vld [vmem:[%s6070_s18 + $0xd0] sm:$0xff] }
  0x22   : > { %293 = vst.msk [vmem:[#allocation2 + $0x70] sm:$0x3] %vm280_vm1, %v5874_v0  ;;  %v360_v51 = vld [vmem:[%s6070_s18 + $0xd8] sm:$0xff]  ;;  %v357_v53 = vld [vmem:[%s6070_s18 + $0xc0] sm:$0xff]  ;;  %v358_v56 = vld [vmem:[%s6070_s18 + $0xc8] sm:$0xff] }
  0x23   : > { %294 = vst.msk [vmem:[#allocation2 + $0x78] sm:$0xff] %vm277_vm0, %v5874_v0  ;;  %v361_v58 = vld [vmem:[%s6070_s18 + $0xe0] sm:$0xff]  ;;  %v362_v59 = vld [vmem:[%s6070_s18 + $0xe8] sm:$0xff] }
  0x24   : > { %295 = vst.msk [vmem:[#allocation2 + $0x80] sm:$0xff] %vm277_vm0, %v5874_v0 }
  0x25   : > { %296 = vst.msk [vmem:[#allocation2 + $0x88] sm:$0x3] %vm280_vm1, %v5874_v0 }
  0x26   : > { %297 = vst.msk [vmem:[#allocation2 + $0x90] sm:$0xff] %vm277_vm0, %v5874_v0 }
  0x27   : > { %298 = vst.msk [vmem:[#allocation2 + $0x98] sm:$0xff] %vm277_vm0, %v5874_v0 }
  0x28   : > { %299 = vst.msk [vmem:[#allocation2 + $0xa0] sm:$0x3] %vm280_vm1, %v5874_v0 }
  0x29   : > { %300 = vst.msk [vmem:[#allocation2 + $0xa8] sm:$0xff] %vm277_vm0, %v5874_v0 }
  0x2a   : > { %301 = vst.msk [vmem:[#allocation2 + $0xb0] sm:$0xff] %vm277_vm0, %v5874_v0 }
  0x2b   : > { %302 = vst.msk [vmem:[#allocation2 + $0xb8] sm:$0x3] %vm280_vm1, %v5874_v0 }
  0x2c   : > { %303 = vst.msk [vmem:[#allocation2 + $0xc0] sm:$0xff] %vm277_vm0, %v5874_v0 }
  0x2d   : > { %304 = vst.msk [vmem:[#allocation2 + $0xc8] sm:$0xff] %vm277_vm0, %v5874_v0 }
  0x2e   : > { %305 = vst.msk [vmem:[#allocation2 + $0xd0] sm:$0x3] %vm280_vm1, %v5874_v0 }
  0x2f   : > { %306 = vst.msk [vmem:[#allocation2 + $0xd8] sm:$0xff] %vm277_vm0, %v5874_v0 }
  0x30   : > { %307 = vst.msk [vmem:[#allocation2 + $0xe0] sm:$0xff] %vm277_vm0, %v5874_v0 }
  0x31   : > { %308 = vst.msk [vmem:[#allocation2 + $0xe8] sm:$0x3] %vm280_vm1, %v5874_v0 }
  0x32   : > { %309 = vst.msk [vmem:[#allocation2 + $0xf0] sm:$0xff] %vm277_vm0, %v5874_v0 }
  0x33   : > { %310 = vst.msk [vmem:[#allocation2 + $0xf8] sm:$0xff] %vm277_vm0, %v5874_v0 }
  0x34   : > { %311 = vst.msk [vmem:[#allocation2 + $0x100] sm:$0x3] %vm280_vm1, %v5874_v0 }
  0x35   : > { %312 = vst.msk [vmem:[#allocation2 + $0x108] sm:$0xff] %vm277_vm0, %v5874_v0 }
  0x36   : > { %313 = vst.msk [vmem:[#allocation2 + $0x110] sm:$0xff] %vm277_vm0, %v5874_v0 }
  0x37   : > { %314 = vst.msk [vmem:[#allocation2 + $0x118] sm:$0x3] %vm280_vm1, %v5874_v0 }
  0x38   : > { %315 = vst.msk [vmem:[#allocation2 + $0x120] sm:$0xff] %vm277_vm0, %v5874_v0 }
  0x39   : > { %316 = vst.msk [vmem:[#allocation2 + $0x128] sm:$0xff] %vm277_vm0, %v5874_v0 }
  0x3a   : > { %317 = vst.msk [vmem:[#allocation2 + $0x130] sm:$0x3] %vm280_vm1, %v5874_v0 }
  0x3b   : > { %318 = vst.msk [vmem:[#allocation2 + $0x138] sm:$0xff] %vm277_vm0, %v5874_v0 }
  0x3c   : > { %319 = vst.msk [vmem:[#allocation2 + $0x140] sm:$0xff] %vm277_vm0, %v5874_v0 }
  0x3d   : > { %320 = vst.msk [vmem:[#allocation2 + $0x148] sm:$0x3] %vm280_vm1, %v5874_v0 }
  0x3e   : > { %321 = vst.msk [vmem:[#allocation2 + $0x150] sm:$0xff] %vm277_vm0, %v5874_v0 }
  0x3f   : > { %322 = vst.msk [vmem:[#allocation2 + $0x158] sm:$0xff] %vm277_vm0, %v5874_v0 }
  0x40   : > { %323 = vst.msk [vmem:[#allocation2 + $0x160] sm:$0x3] %vm280_vm1, %v5874_v0 }
  0x41   : > { %324 = vst.msk [vmem:[#allocation2 + $0x168] sm:$0xff] %vm277_vm0, %v5874_v0 }
  0x42   : > { %325 = vst.msk [vmem:[#allocation2 + $0x170] sm:$0xff] %vm277_vm0, %v5874_v0 }
  0x43   : > { %326 = vst.msk [vmem:[#allocation2 + $0x178] sm:$0x3] %vm280_vm1, %v5874_v0 }
  0x44   : > { %327 = vst.msk [vmem:[#allocation2 + $0x180] sm:$0xff] %vm277_vm0, %v5874_v0 }
  0x45   : > { %328 = vst.msk [vmem:[#allocation2 + $0x188] sm:$0xff] %vm277_vm0, %v5874_v0 }
  0x46   : > { %329 = vst.msk [vmem:[#allocation2 + $0x190] sm:$0x3] %vm280_vm1, %v5874_v0 }
  0x47   : > { %330 = vst.msk [vmem:[#allocation2 + $0x198] sm:$0xff] %vm277_vm0, %v5874_v0 }
  0x48   : > { %331 = vst.msk [vmem:[#allocation2 + $0x1a0] sm:$0xff] %vm277_vm0, %v5874_v0 }
  0x49   : > { %332 = vst.msk [vmem:[#allocation2 + $0x1a8] sm:$0x3] %vm280_vm1, %v5874_v0 }
  0x4a   : > { %373 = vst.msk [vmem:[#allocation2 + $0x61] sm:$0xff] %vm366_vm2, %v339_v4 }
  0x4b   : > { %374 = vst.msk [vmem:[#allocation2 + $0x69] sm:$0xff] %vm366_vm2, %v340_v5 }
  0x4c   : > { %369 = vst.msk [vmem:[#allocation2 + $0x31] sm:$0xff] %vm366_vm2, %v335_v6 }
  0x4d   : > { %370 = vst.msk [vmem:[#allocation2 + $0x39] sm:$0xff] %vm366_vm2, %v336_v7 }
  0x4e   : > { %367 = vst.msk [vmem:[#allocation2 + $0x19] sm:$0xff] %vm366_vm2, %v333_v8 }
  0x4f   : > { %368 = vst.msk [vmem:[#allocation2 + $0x21] sm:$0xff] %vm366_vm2, %v334_v9 }
  0x50   : > { %375 = vst.msk [vmem:[#allocation2 + $0x79] sm:$0xff] %vm366_vm2, %v341_v10 }
  0x51   : > { %v439_v14 = vld [vmem:[#allocation2 + $0x61] sm:$0xff]  ;;  %376 = vst.msk [vmem:[#allocation2 + $0x81] sm:$0xff] %vm366_vm2, %v342_v11 }
  0x52   : > { %v440_v16 = vld [vmem:[#allocation2 + $0x69] sm:$0xff]  ;;  %371 = vst.msk [vmem:[#allocation2 + $0x49] sm:$0xff] %vm366_vm2, %v337_v12 }
  0x53   : > { %v6103_v18 = vpack.i.bf16 %v440_v16, %v439_v14  ;;  %v435_v19 = vld [vmem:[#allocation2 + $0x31] sm:$0xff]  ;;  %372 = vst.msk [vmem:[#allocation2 + $0x51] sm:$0xff] %vm366_vm2, %v338_v13 }
  0x54   : > { %v436_v21 = vld [vmem:[#allocation2 + $0x39] sm:$0xff]  ;;  %377 = vst.msk [vmem:[#allocation2 + $0x91] sm:$0xff] %vm366_vm2, %v343_v15 }
  0x55   : > { %4887 = vrot.lane.b32.xlu2 %v6103_v18, %s5875_s13  ;;  %v6111_v23 = vpack.i.bf16 %v436_v21, %v435_v19  ;;  %v433_v24 = vld [vmem:[#allocation2 + $0x19] sm:$0xff]  ;;  %378 = vst.msk [vmem:[#allocation2 + $0x99] sm:$0xff] %vm366_vm2, %v344_v17  ;;  %v463_v17 = vld [vmem:[#allocation2 + $0x2] sm:$0xff]  ;;  %v464_v19 = vld [vmem:[#allocation2 + $0xa] sm:$0xff] }
  0x56   : > { %v434_v26 = vld [vmem:[#allocation2 + $0x21] sm:$0xff]  ;;  %381 = vst.msk [vmem:[#allocation2 + $0xc1] sm:$0xff] %vm366_vm2, %v347_v20  ;;  %v467_v21 = vld [vmem:[#allocation2 + $0x32] sm:$0xff] }
  0x57   : > { %4877 = vrot.lane.b32.xlu1 %v6111_v23, %s5875_s13  ;;  %v4871_v28 = vpack.i.bf16 %v434_v26, %v433_v24  ;;  %v441_v29 = vld [vmem:[#allocation2 + $0x79] sm:$0xff]  ;;  %382 = vst.msk [vmem:[#allocation2 + $0xc9] sm:$0xff] %vm366_vm2, %v348_v22  ;;  %v466_v16 = vld [vmem:[#allocation2 + $0x22] sm:$0xff]  ;;  %v4946_v24 = vpack.i.bf16 %v464_v19, %v463_v17 }
  0x58   : > { %v442_v31 = vld [vmem:[#allocation2 + $0x81] sm:$0xff]  ;;  %379 = vst.msk [vmem:[#allocation2 + $0xa9] sm:$0xff] %vm366_vm2, %v345_v25  ;;  %v503_v17 = vld [vmem:[#allocation2 + $0x78] sm:$0xff] }
  0x59   : > { %4872 = vrot.lane.b32.xlu0 %v4871_v28, %s5875_s13  ;;  %v6124_v33 = vpack.i.bf16 %v442_v31, %v441_v29  ;;  %v437_v34 = vld [vmem:[#allocation2 + $0x49] sm:$0xff]  ;;  %380 = vst.msk [vmem:[#allocation2 + $0xb1] sm:$0xff] %vm366_vm2, %v346_v27  ;;  %v465_v15 = vld [vmem:[#allocation2 + $0x1a] sm:$0xff] }
  0x5a   : > { %v438_v36 = vld [vmem:[#allocation2 + $0x51] sm:$0xff]  ;;  %383 = vst.msk [vmem:[#allocation2 + $0xd9] sm:$0xff] %vm366_vm2, %v349_v30  ;;  %v6172_v20 = vpack.i.bf16 %v466_v16, %v465_v15  ;;  %v468_v22 = vld [vmem:[#allocation2 + $0x3a] sm:$0xff]  ;;  %v471_v26 = vld [vmem:[#allocation2 + $0x62] sm:$0xff] }
  0x5b   : > { %v6130_v38 = vpack.i.bf16 %v438_v36, %v437_v34  ;;  %v443_v39 = vld [vmem:[#allocation2 + $0x91] sm:$0xff]  ;;  %384 = vst.msk [vmem:[#allocation2 + $0xe1] sm:$0xff] %vm366_vm2, %v350_v32  ;;  %v6176_v25 = vpack.i.bf16 %v468_v22, %v467_v21  ;;  %v473_v31 = vld [vmem:[#allocation2 + $0x7a] sm:$0xff]  ;;  %v474_v32 = vld [vmem:[#allocation2 + $0x82] sm:$0xff] }
  0x5c   : > { %v444_v41 = vld [vmem:[#allocation2 + $0x99] sm:$0xff]  ;;  %387 = vst.msk [vmem:[#allocation2 + $0x109] sm:$0xff] %vm366_vm2, %v353_v35  ;;  %v472_v27 = vld [vmem:[#allocation2 + $0x6a] sm:$0xff]  ;;  %v6187_v35 = vpack.i.bf16 %v474_v32, %v473_v31 }
  0x5d   : > { %4892 = vrot.lane.b32.xlu2 %v6124_v33, %s5875_s13  ;;  %v4896_v43 = vpack.i.bf16 %v444_v41, %v443_v39  ;;  %388 = vst.msk [vmem:[#allocation2 + $0x111] sm:$0xff] %vm366_vm2, %v354_v37  ;;  %v447_v45 = vld [vmem:[#allocation2 + $0xc1] sm:$0xff]  ;;  %v469_v28 = vld [vmem:[#allocation2 + $0x4a] sm:$0xff]  ;;  %v470_v29 = vld [vmem:[#allocation2 + $0x52] sm:$0xff]  ;;  %v6181_v30 = vpack.i.bf16 %v472_v27, %v471_v26 }
  0x5e   : > { %v448_v46 = vld [vmem:[#allocation2 + $0xc9] sm:$0xff]  ;;  %385 = vst.msk [vmem:[#allocation2 + $0xf1] sm:$0xff] %vm366_vm2, %v351_v40  ;;  %v6183_v34 = vpack.i.bf16 %v470_v29, %v469_v28  ;;  %v475_v39 = vld [vmem:[#allocation2 + $0x92] sm:$0xff]  ;;  %v476_v40 = vld [vmem:[#allocation2 + $0x9a] sm:$0xff] }
  0x5f   : > { %4882 = vrot.lane.b32.xlu1 %v6130_v38, %s5875_s13  ;;  %386 = vst.msk [vmem:[#allocation2 + $0xf9] sm:$0xff] %vm366_vm2, %v352_v42  ;;  %v445_v49 = vld [vmem:[#allocation2 + $0xa9] sm:$0xff]  ;;  %v4906_v52 = vpack.i.bf16 %v448_v46, %v447_v45  ;;  %v504_v19 = vld [vmem:[#allocation2 + $0x80] sm:$0xff]  ;;  %v506_v29 = vld [vmem:[#allocation2 + $0x98] sm:$0xff] }
  0x60   : > { %v446_v50 = vld [vmem:[#allocation2 + $0xb1] sm:$0xff]  ;;  %389 = vst.msk [vmem:[#allocation2 + $0x121] sm:$0xff] %vm366_vm2, %v355_v44  ;;  %v479_v42 = vld [vmem:[#allocation2 + $0xc2] sm:$0xff]  ;;  %v6195_v44 = vpack.i.bf16 %v476_v40, %v475_v39  ;;  %v6269_v22 = vpack.i.bf16 %v504_v19, %v503_v17 }
  0x61   : > { %4897 = vrot.lane.b32.xlu0 %v4896_v43, %s5875_s13  ;;  %390 = vst.msk [vmem:[#allocation2 + $0x129] sm:$0xff] %vm366_vm2, %v356_v47  ;;  %v449_v54 = vld [vmem:[#allocation2 + $0xd9] sm:$0xff]  ;;  %v4901_v57 = vpack.i.bf16 %v446_v50, %v445_v49  ;;  %v477_v36 = vld [vmem:[#allocation2 + $0xaa] sm:$0xff] }
  0x62   : > { %v450_v55 = vld [vmem:[#allocation2 + $0xe1] sm:$0xff]  ;;  %393 = vst.msk [vmem:[#allocation2 + $0x151] sm:$0xff] %vm366_vm2, %v359_v48  ;;  %v478_v37 = vld [vmem:[#allocation2 + $0xb2] sm:$0xff]  ;;  %v480_v43 = vld [vmem:[#allocation2 + $0xca] sm:$0xff] }
  0x63   : > { %394 = vst.msk [vmem:[#allocation2 + $0x159] sm:$0xff] %vm366_vm2, %v360_v51  ;;  %v6158_v60 = vpack.i.bf16 %v450_v55, %v449_v54  ;;  %v453_v61 = vld [vmem:[#allocation2 + $0x109] sm:$0xff]  ;;  %v6193_v41 = vpack.i.bf16 %v478_v37, %v477_v36  ;;  %v6199_v45 = vpack.i.bf16 %v480_v43, %v479_v42  ;;  %v481_v48 = vld [vmem:[#allocation2 + $0xda] sm:$0xff] }
  0x64   : > { %391 = vst.msk [vmem:[#allocation2 + $0x139] sm:$0xff] %vm366_vm2, %v357_v53  ;;  %v454_v62 = vld [vmem:[#allocation2 + $0x111] sm:$0xff]  ;;  %v482_v49 = vld [vmem:[#allocation2 + $0xe2] sm:$0xff] }
  0x65   : > { %4907 = vrot.lane.b32.xlu2 %v4906_v52, %s5875_s13  ;;  %392 = vst.msk [vmem:[#allocation2 + $0x141] sm:$0xff] %vm366_vm2, %v358_v56  ;;  %v451_v63 = vld [vmem:[#allocation2 + $0xf1] sm:$0xff]  ;;  %v4921_v1 = vpack.i.bf16 %v454_v62, %v453_v61  ;;  %v6207_v53 = vpack.i.bf16 %v482_v49, %v481_v48  ;;  %v6279_v32 = vld [vmem:[#allocation2 + $0xc0] sm:$0xff]  ;;  %v6281_v36 = vld [vmem:[#allocation2 + $0xc8] sm:$0xff] }
  0x66   : > { %395 = vst.msk [vmem:[#allocation2 + $0x169] sm:$0xff] %vm366_vm2, %v361_v58  ;;  %v452_v0 = vld [vmem:[#allocation2 + $0xf9] sm:$0xff]  ;;  %v485_v51 = vld [vmem:[#allocation2 + $0x10a] sm:$0xff]  ;;  %v6289_v39 = vpack.i.bf16 %v6281_v36, %v6279_v32 }
  0x67   : > { %4902 = vrot.lane.b32.xlu1 %v4901_v57, %s5875_s13  ;;  %396 = vst.msk [vmem:[#allocation2 + $0x171] sm:$0xff] %vm366_vm2, %v362_v59  ;;  %v455_v2 = vld [vmem:[#allocation2 + $0x121] sm:$0xff]  ;;  %v4916_v4 = vpack.i.bf16 %v452_v0, %v451_v63  ;;  %v483_v46 = vld [vmem:[#allocation2 + $0xf2] sm:$0xff] }
  0x68   : > { %v456_v3 = vld [vmem:[#allocation2 + $0x129] sm:$0xff]  ;;  %v484_v47 = vld [vmem:[#allocation2 + $0xfa] sm:$0xff]  ;;  %v486_v52 = vld [vmem:[#allocation2 + $0x112] sm:$0xff] }
  0x69   : > { %4912 = vrot.lane.b32.xlu0 %v6158_v60, %s5875_s13  ;;  %v4926_v5 = vpack.i.bf16 %v456_v3, %v455_v2  ;;  %v459_v6 = vld [vmem:[#allocation2 + $0x151] sm:$0xff]  ;;  %v6205_v50 = vpack.i.bf16 %v484_v47, %v483_v46  ;;  %v6211_v54 = vpack.i.bf16 %v486_v52, %v485_v51  ;;  %v487_v57 = vld [vmem:[#allocation2 + $0x122] sm:$0xff] }
  0x6a   : > { %v460_v7 = vld [vmem:[#allocation2 + $0x159] sm:$0xff]  ;;  %v488_v58 = vld [vmem:[#allocation2 + $0x12a] sm:$0xff] }
  0x6b   : > { %v457_v8 = vld [vmem:[#allocation2 + $0x139] sm:$0xff]  ;;  %v4936_v10 = vpack.i.bf16 %v460_v7, %v459_v6  ;;  %v6219_v63 = vpack.i.bf16 %v488_v58, %v487_v57  ;;  %v6235_v6 = vld [vmem:[#allocation2 + $0x30] sm:$0xff]  ;;  %v515_v49 = vld [vmem:[#allocation2 + $0x108] sm:$0xff] }
  0x6c   : > { %v458_v9 = vld [vmem:[#allocation2 + $0x141] sm:$0xff]  ;;  %v491_v61 = vld [vmem:[#allocation2 + $0x152] sm:$0xff] }
  0x6d   : > { %4922 = vrot.lane.b32.xlu2 %v4921_v1, %s5875_s13  ;;  %v461_v11 = vld [vmem:[#allocation2 + $0x169] sm:$0xff]  ;;  %v4931_v13 = vpack.i.bf16 %v458_v9, %v457_v8  ;;  %v489_v55 = vld [vmem:[#allocation2 + $0x13a] sm:$0xff] }
  0x6e   : > { %v462_v12 = vld [vmem:[#allocation2 + $0x171] sm:$0xff]  ;;  %v490_v56 = vld [vmem:[#allocation2 + $0x142] sm:$0xff]  ;;  %v492_v62 = vld [vmem:[#allocation2 + $0x15a] sm:$0xff] }
  0x6f   : > { %4917 = vrot.lane.b32.xlu1 %v4916_v4, %s5875_s13  ;;  %v4941_v14 = vpack.i.bf16 %v462_v12, %v461_v11  ;;  %v6217_v59 = vpack.i.bf16 %v490_v56, %v489_v55  ;;  %v6223_v0 = vpack.i.bf16 %v492_v62, %v491_v61  ;;  %v6225_v1 = vld [vmem:[#allocation2 + $0x18] sm:$0xff]  ;;  %v6227_v2 = vld [vmem:[#allocation2 + $0x20] sm:$0xff]  ;;  %v493_v3 = vld [vmem:[#allocation2 + $0x16a] sm:$0xff] }
  0x70   : > { %v494_v4 = vld [vmem:[#allocation2 + $0x172] sm:$0xff]  ;;  %v6249_v12 = vld [vmem:[#allocation2 + $0x60] sm:$0xff]  ;;  %v518_v62 = vld [vmem:[#allocation2 + $0x128] sm:$0xff] }
  0x71   : > { %4927 = vrot.lane.b32.xlu0 %v4926_v5, %s5875_s13  ;;  %v5026_v5 = vpack.i.bf16 %v6227_v2, %v6225_v1  ;;  %v6237_v7 = vld [vmem:[#allocation2 + $0x38] sm:$0xff]  ;;  %v6239_v8 = vpack.i.bf16 %v494_v4, %v493_v3  ;;  %v363_v9 = vld [vmem:[%s6070_s18 + $0xf0] sm:$0xff]  ;;  %v6299_v47 = vld [vmem:[#allocation2 + $0xe0] sm:$0xff] }
  0x72   : > { %v364_v11 = vld [vmem:[%s6070_s18 + $0xf8] sm:$0xff]  ;;  %397 = vst.msk [vmem:[#allocation2 + $0x181] sm:$0xff] %vm366_vm2, %v363_v9  ;;  %v6256_v15 = vld [vmem:[#allocation2 + $0x50] sm:$0xff]  ;;  %v520_v57 = vld [vmem:[#allocation2 + $0x140] sm:$0xff]  ;;  %s269_s18 = sand.u32 1, %s5864_s25  }
  0x73   : > { %398 = vst.msk [vmem:[#allocation2 + $0x189] sm:$0xff] %vm366_vm2, %v364_v11  ;;  %v508_v26 = vld [vmem:[#allocation2 + $0xb0] sm:$0xff]  ;;  %v514_v42 = vld [vmem:[#allocation2 + $0xf8] sm:$0xff]  ;;  %v517_v61 = vld [vmem:[#allocation2 + $0x120] sm:$0xff]  ;;  %s4717_s21 = sshll.u32 %s269_s18, 4  ;;  %s4638_s17 = scalar_lea.sflag [#allocation4], %s269_s18 }
  0x74   : > { %v505_v28 = vld [vmem:[#allocation2 + $0x90] sm:$0xff]  ;;  %v6297_v46 = vld [vmem:[#allocation2 + $0xd8] sm:$0xff]  ;;  %v6324_v11 = vpack.i.bf16 %v518_v62, %v517_v61  ;;  %v1661_v62 = vld [vmem:[%s9037_s1 + $0x60] sm:$0xff]  ;;  %s8991_s9 = scalar_lea.vmem [#allocation3], %s4717_s21 }
  0x75   : > { %4937 = vrot.lane.b32.xlu2 %v4936_v10, %s5875_s13  ;;  %v6245_v10 = vpack.i.bf16 %v6237_v7, %v6235_v6  ;;  %v6283_v37 = vpack.i.bf16 %v506_v29, %v505_v28  ;;  %v6291_v40 = vld [vmem:[#allocation2 + $0xf0] sm:$0xff]  ;;  %v6308_v52 = vpack.i.bf16 %v6299_v47, %v6297_v46  ;;  %v519_v56 = vld [vmem:[#allocation2 + $0x138] sm:$0xff]  ;;  %v523_v29 = vld [vmem:[#allocation2 + $0x168] sm:$0xff] }
  0x76   : > { %v6304_v48 = vpack.i.bf16 %v514_v42, %v6291_v40  ;;  %v516_v51 = vld [vmem:[#allocation2 + $0x110] sm:$0xff]  ;;  %v6322_v4 = vpack.i.bf16 %v520_v57, %v519_v56  ;;  %v522_v9 = vld [vmem:[#allocation2 + $0x158] sm:$0xff]  ;;  %v1662_v56 = vld [vmem:[%s9037_s1 + $0x68] sm:$0xff] }
  0x77   : > { %4932 = vrot.lane.b32.xlu1 %v4931_v13, %s5875_s13  ;;  %v502_v13 = vld [vmem:[#allocation2 + $0x68] sm:$0xff]  ;;  %v6312_v55 = vpack.i.bf16 %v516_v51, %v515_v49  ;;  %v1663_v28 = vld [vmem:[%s9037_s1 + $0x70] sm:$0xff] }
  0x78   : > { %v6261_v16 = vpack.i.bf16 %v502_v13, %v6249_v12  ;;  %v1664_v13 = vld [vmem:[%s9037_s1 + $0x78] sm:$0xff]  ;;  %v524_v42 = vld [vmem:[#allocation2 + $0x170] sm:$0xff] }
  0x79   : > { %4942 = vrot.lane.b32.xlu0 %v4941_v14, %s5875_s13  ;;  %v6254_v14 = vld [vmem:[#allocation2 + $0x48] sm:$0xff]  ;;  %1781 = vmatpush.msra.mxu0 %v1664_v13  ;;  %v525_v19 = vld [vmem:[#allocation2 + $0x180] sm:$0xff]  ;;  %v6351_v61 = vpack.i.bf16 %v524_v42, %v523_v29  ;;  %v1656_v42 = vld [vmem:[%s9037_s1 + $0x38] sm:$0xff] }
  0x7a   : > { %v6265_v21 = vpack.i.bf16 %v6256_v15, %v6254_v14  ;;  %4791 = vmatpush.msra.mxu1 %v1664_v13  ;;  %v1659_v13 = vld [vmem:[%s9037_s1 + $0x50] sm:$0xff]  ;;  %v1657_v29 = vld [vmem:[%s9037_s1 + $0x40] sm:$0xff] }
  0x7b   : > { %1782 = vmatpush.msra.mxu0 %v1663_v28 }
  0x7c   : > { %4792 = vmatpush.msra.mxu1 %v1663_v28 }
  0x7d   : > { %4952 = vrot.lane.b32.xlu2 %v6172_v20, %s5876_s19  ;;  %1783 = vmatpush.msra.mxu0 %v1662_v56 }
  0x7e   : > { %4793 = vmatpush.msra.mxu1 %v1662_v56  ;;  %v1655_v56 = vld [vmem:[%s9037_s1 + $0x30] sm:$0xff] }
  0x7f   : > { %4947 = vrot.lane.b32.xlu1 %v4946_v24, %s5876_s19  ;;  %v507_v24 = vld [vmem:[#allocation2 + $0xa8] sm:$0xff]  ;;  %1784 = vmatpush.msra.mxu0 %v1661_v62 }
  0x80   : > { %v6277_v31 = vpack.i.bf16 %v508_v26, %v507_v24  ;;  %v526_v24 = vld [vmem:[#allocation2 + $0x188] sm:$0xff]  ;;  %4794 = vmatpush.msra.mxu1 %v1661_v62 }
  0x81   : > { %4957 = vrot.lane.b32.xlu0 %v6176_v25, %s5876_s19  ;;  %v6344_v51 = vpack.i.bf16 %v526_v24, %v525_v19  ;;  %v1658_v24 = vld [vmem:[%s9037_s1 + $0x48] sm:$0xff] }
  0x85   : > { %4967 = vrot.lane.b32.xlu2 %v6181_v30, %s5876_s19 }
  0x87   : > { %4962 = vrot.lane.b32.xlu1 %v6183_v34, %s5876_s19 }
  0x89   : > { %4972 = vrot.lane.b32.xlu0 %v6187_v35, %s5876_s19 }
  0x8d   : > { %4982 = vrot.lane.b32.xlu2 %v6193_v41, %s5876_s19 }
  0x8f   : > { %4977 = vrot.lane.b32.xlu1 %v6195_v44, %s5876_s19 }
  0x91   : > { %4987 = vrot.lane.b32.xlu0 %v6199_v45, %s5876_s19 }
  0x92   : > { %v6320_v3 = vpop.permute.xlu0 %4867 }
  0x95   : > { %4997 = vrot.lane.b32.xlu2 %v6205_v50, %s5876_s19 }
  0x97   : > { %4992 = vrot.lane.b32.xlu1 %v6207_v53, %s5876_s19 }
  0x99   : > { %5002 = vrot.lane.b32.xlu0 %v6211_v54, %s5876_s19 }
  0x9d   : > { %5012 = vrot.lane.b32.xlu2 %v6217_v59, %s5876_s19 }
  0x9f   : > { %5007 = vrot.lane.b32.xlu1 %v6219_v63, %s5876_s19 }
  0xa1   : > { %5017 = vrot.lane.b32.xlu0 %v6223_v0, %s5876_s19 }
  0xa5   : > { %5027 = vrot.lane.b32.xlu2 %v5026_v5, %s5877_s20  ;;  %v521_v5 = vld [vmem:[#allocation2 + $0x150] sm:$0xff] }
  0xa6   : > { %v6331_v17 = vpack.i.bf16 %v522_v9, %v521_v5  ;;  %v1660_v5 = vld [vmem:[%s9037_s1 + $0x58] sm:$0xff] }
  0xa7   : > { %5022 = vrot.lane.b32.xlu1 %v6239_v8, %s5876_s19  ;;  %1785 = vmatpush.msra.mxu0 %v1660_v5 }
  0xa8   : > { %4795 = vmatpush.msra.mxu1 %v1660_v5  ;;  %v1653_v5 = vld [vmem:[%s9037_s1 + $0x20] sm:$0xff] }
  0xa9   : > { %5032 = vrot.lane.b32.xlu0 %v6245_v10, %s5877_s20  ;;  %1786 = vmatpush.msra.mxu0 %v1659_v13 }
  0xaa   : > { %4796 = vmatpush.msra.mxu1 %v1659_v13  ;;  %v1652_v13 = vld [vmem:[%s9037_s1 + $0x18] sm:$0xff] }
  0xab   : > { %1787 = vmatpush.msra.mxu0 %v1658_v24 }
  0xac   : > { %4797 = vmatpush.msra.mxu1 %v1658_v24  ;;  %v1651_v24 = vld [vmem:[%s9037_s1 + $0x10] sm:$0xff] }
  0xad   : > { %5042 = vrot.lane.b32.xlu2 %v6261_v16, %s5877_s20  ;;  %1788 = vmatpush.msra.mxu0 %v1657_v29 }
  0xae   : > { %4798 = vmatpush.msra.mxu1 %v1657_v29 }
  0xaf   : > { %5037 = vrot.lane.b32.xlu1 %v6265_v21, %s5877_s20  ;;  %v6273_v27 = vpop.permute.xlu2 %4887  ;;  %1789 = vmatpush.msra.mxu0 %v1656_v42 }
  0xb0   : > { %4799 = vmatpush.msra.mxu1 %v1656_v42  ;;  %v1649_v42 = vld [vmem:[%s9037_s1] sm:$0xff] }
  0xb1   : > { %5047 = vrot.lane.b32.xlu0 %v6269_v22, %s5877_s20  ;;  %1790 = vmatpush.msra.mxu0 %v1655_v56 }
  0xb2   : > { %4800 = vmatpush.msra.mxu1 %v1655_v56 }
  0xb5   : > { %5057 = vrot.lane.b32.xlu2 %v6277_v31, %s5877_s20 }
  0xb7   : > { %5052 = vrot.lane.b32.xlu1 %v6283_v37, %s5877_s20  ;;  %v6295_v43 = vpop.permute.xlu2 %4892 }
  0xb9   : > { %5062 = vrot.lane.b32.xlu0 %v6289_v39, %s5877_s20 }
  0xbd   : > { %5072 = vrot.lane.b32.xlu2 %v6304_v48, %s5877_s20 }
  0xbf   : > { %5067 = vrot.lane.b32.xlu1 %v6308_v52, %s5877_s20  ;;  %v6316_v58 = vpop.permute.xlu2 %4907 }
  0xc1   : > { %5077 = vrot.lane.b32.xlu0 %v6312_v55, %s5877_s20 }
  0xc5   : > { %5087 = vrot.lane.b32.xlu2 %v6322_v4, %s5877_s20 }
  0xc7   : > { %5082 = vrot.lane.b32.xlu1 %v6324_v11, %s5877_s20  ;;  %v6335_v26 = vpop.permute.xlu2 %4922 }
  0xc9   : > { %v6340_v49 = vpop.permute.xlu1 %4877  ;;  %5092 = vrot.lane.b32.xlu0 %v6331_v17, %s5877_s20 }
  0xcb   : > { %v6349_v57 = vpop.permute.xlu0 %4872 }
  0xcd   : > { %5102 = vrot.lane.b32.xlu2 %v6344_v51, %s5877_s20 }
  0xcf   : > { %5097 = vrot.lane.b32.xlu1 %v6351_v61, %s5877_s20  ;;  %v6363_v9 = vpop.permute.xlu2 %4937 }
  0xd0   : > { %9061 = vst [vmem:[#allocation6_spill] sm:$0xff] %v6363_v9 }
  0xd1   : > { %v6368_v19 = vpop.permute.xlu1 %4882  ;;  %5107 = vrot.lane.b32.xlu0 %v6172_v20, %s5875_s13 }
  0xd3   : > { %v6375_v28 = vpop.permute.xlu0 %4897 }
  0xd5   : > { %5117 = vrot.lane.b32.xlu2 %v6183_v34, %s5875_s13  ;;  %v1654_v34 = vld [vmem:[%s9037_s1 + $0x28] sm:$0xff] }
  0xd6   : > { %1791 = vmatpush.msra.mxu0 %v1654_v34  ;;  %4801 = vmatpush.msra.mxu1 %v1654_v34 }
  0xd7   : > { %5112 = vrot.lane.b32.xlu1 %v6176_v25, %s5875_s13  ;;  %v6387_v20 = vpop.permute.xlu2 %4952 }
  0xd8   : > { %1792 = vmatpush.msra.mxu0 %v1653_v5  ;;  %4802 = vmatpush.msra.mxu1 %v1653_v5 }
  0xd9   : > { %v6392_v62 = vpop.permute.xlu1 %4902  ;;  %5122 = vrot.lane.b32.xlu0 %v6181_v30, %s5875_s13 }
  0xda   : > { %1793 = vmatpush.msra.mxu0 %v1652_v13  ;;  %4803 = vmatpush.msra.mxu1 %v1652_v13  ;;  %v590_v13 = vld [vmem:[#allocation2 + $0x18a] sm:$0xff] }
  0xdb   : > { %v6399_v25 = vpop.permute.xlu0 %4912 }
  0xdc   : > { %1794 = vmatpush.msra.mxu0 %v1651_v24  ;;  %4804 = vmatpush.msra.mxu1 %v1651_v24 }
  0xdd   : > { %5132 = vrot.lane.b32.xlu2 %v6195_v44, %s5875_s13  ;;  %v1650_v44 = vld [vmem:[%s9037_s1 + $0x8] sm:$0xff] }
  0xde   : > { %1795 = vmatpush.msra.mxu0 %v1650_v44  ;;  %4805 = vmatpush.msra.mxu1 %v1650_v44 }
  0xdf   : > { %5127 = vrot.lane.b32.xlu1 %v6187_v35, %s5875_s13  ;;  %v6411_v30 = vpop.permute.xlu2 %4967 }
  0xe0   : > { %1796 = vmatpush.msra.mxu0 %v1649_v42  ;;  %4806 = vmatpush.msra.mxu1 %v1649_v42 }
  0xe1   : > { %v6416_v29 = vpop.permute.xlu1 %4917  ;;  %5137 = vrot.lane.b32.xlu0 %v6193_v41, %s5875_s13 }
  0xe3   : > { %v6423_v35 = vpop.permute.xlu0 %4927 }
  0xe5   : > { %5147 = vrot.lane.b32.xlu2 %v6207_v53, %s5875_s13 }
  0xe7   : > { %5142 = vrot.lane.b32.xlu1 %v6199_v45, %s5875_s13  ;;  %v6432_v41 = vpop.permute.xlu2 %4982  ;;  %v589_v45 = vld [vmem:[#allocation2 + $0x182] sm:$0xff] }
  0xe8   : > { %v5181_v44 = vpack.i.bf16 %v590_v13, %v589_v45 }
  0xe9   : > { %v6434_v56 = vpop.permute.xlu1 %4932  ;;  %5152 = vrot.lane.b32.xlu0 %v6205_v50, %s5875_s13 }
  0xea   : > { %9062 = vst [vmem:[#allocation7_spill] sm:$0xff] %v6434_v56  ;;  %v400_v56 = vld [vmem:[#allocation2 + $0x8] sm:$0xff] }
  0xeb   : > { %v6438_v34 = vpop.permute.xlu0 %4942 }
  0xec   : > { %9063 = vst [vmem:[#allocation8_spill] sm:$0xff] %v6438_v34  ;;  %v399_v34 = vld [vmem:[#allocation2] sm:$0xff] }
  0xed   : > { %5162 = vrot.lane.b32.xlu2 %v6219_v63, %s5875_s13 }
  0xef   : > { %5157 = vrot.lane.b32.xlu1 %v6211_v54, %s5875_s13  ;;  %v6444_v5 = vpop.permute.xlu2 %4997 }
  0xf1   : > { %v4948_v53 = vpop.permute.xlu1 %4947  ;;  %5167 = vrot.lane.b32.xlu0 %v6217_v59, %s5875_s13  ;;  %v4869_v59 = vunpack.i.l.bf16 %v6320_v3 }
  0xf2   : > { %v4949_v42 = vunpack.i.l.bf16 %v4948_v53 }
  0xf3   : > { %v6448_v24 = vpop.permute.xlu0 %4957  ;;  %v1456_v45 = vsel %vm366_vm2, %v399_v34, %v4869_v59 }
  0xf5   : > { %5177 = vrot.lane.b32.xlu2 %v6239_v8, %s5875_s13 }
  0xf7   : > { %5172 = vrot.lane.b32.xlu1 %v6223_v0, %s5875_s13  ;;  %v6454_v50 = vpop.permute.xlu2 %5012 }
  0xf8   : > { %9064 = vst [vmem:[#allocation9_spill] sm:$0xff] %v6454_v50 }
  0xf9   : > { %v6456_v54 = vpop.permute.xlu1 %4962  ;;  %5182 = vrot.lane.b32.xlu0 %v5181_v44, %s5875_s13  ;;  %v1489_v44 = vsel %vm1488_vm3, %v1456_v45, %v4949_v42  ;;  %v4874_v45 = vunpack.i.l.bf16 %v6349_v57 }
  0xfb   : > { %v6459_v63 = vpop.permute.xlu0 %4972 }
  0xfd   : > { %5192 = vrot.lane.b32.xlu2 %v6111_v23, %s5877_s20  ;;  %v4870_v23 = vunpack.i.h.bf16 %v6320_v3 }
  0xff   : > { %5187 = vrot.lane.b32.xlu1 %v6245_v10, %s5876_s19  ;;  %v5028_v8 = vpop.permute.xlu2 %5027  ;;  %v4950_v10 = vunpack.i.h.bf16 %v4948_v53 }
 0x100   : > { %v5029_v0 = vunpack.i.l.bf16 %v5028_v8  ;;  %v5030_v34 = vunpack.i.h.bf16 %v5028_v8 }
 0x101   : > { %v6467_v13 = vpop.permute.xlu1 %4977  ;;  %5197 = vrot.lane.b32.xlu0 %v6265_v21, %s5876_s19  ;;  %v1457_v21 = vsel %vm366_vm2, %v400_v56, %v4870_v23 }
 0x102   : > { %v1521_v9 = vsel %vm277_vm0, %v1489_v44, %v5029_v0  ;;  %v1490_v3 = vsel %vm1488_vm3, %v1457_v21, %v4950_v10  ;;  %v634_v44 = vld [vmem:[#allocation2 + $0xa9] sm:$0xff]  ;;  %v1458_v21 = vsel %vm366_vm2, %v6225_v1, %v4874_v45  ;;  %v4955_v45 = vunpack.i.h.bf16 %v6387_v20 }
 0x103   : > { %v6473_v50 = vpop.permute.xlu0 %4987  ;;  %1797 = vmatmul.f32.vlgmr.msra.gmra.mxu0 %v1521_v9  ;;  %v1522_v9 = vsel %vm277_vm0, %v1490_v3, %v5030_v34 }
 0x105   : > { %5207 = vrot.lane.b32.xlu2 %v6261_v16, %s5876_s19  ;;  %v633_v16 = vld [vmem:[#allocation2 + $0x99] sm:$0xff] }
 0x107   : > { %5202 = vrot.lane.b32.xlu1 %v6130_v38, %s5877_s20  ;;  %v6480_v59 = vpop.permute.xlu2 %5042  ;;  %v632_v38 = vld [vmem:[#allocation2 + $0x91] sm:$0xff] }
 0x109   : > { %v6483_v42 = vpop.permute.xlu1 %4992  ;;  %5212 = vrot.lane.b32.xlu0 %v6103_v18, %s5877_s20  ;;  %v5236_v18 = vpack.i.bf16 %v633_v16, %v632_v38  ;;  %v4875_v16 = vunpack.i.h.bf16 %v6349_v57 }
 0x10b   : > { %v6489_v53 = vpop.permute.xlu0 %5002  ;;  %1800 = vmatmul.f32.gmra.mxu0 %v1522_v9  ;;  %v1459_v57 = vsel %vm366_vm2, %v6227_v2, %v4875_v16  ;;  %v4879_v2 = vunpack.i.l.bf16 %v6340_v49 }
 0x10d   : > { %5222 = vrot.lane.b32.xlu2 %v6283_v37, %s5876_s19  ;;  %v1680_v37 = vld [vmem:[%s9037_s1 + $0xf8] sm:$0xff]  ;;  %v1460_v16 = vsel %vm366_vm2, %v6235_v6, %v4879_v2 }
 0x10e   : > { %1894 = vmatpush.msrb.mxu1 %v1680_v37  ;;  %v636_v37 = vld [vmem:[#allocation2 + $0xc1] sm:$0xff] }
 0x10f   : > { %5217 = vrot.lane.b32.xlu1 %v6269_v22, %s5876_s19  ;;  %v6495_v56 = vpop.permute.xlu2 %5057  ;;  %v635_v22 = vld [vmem:[#allocation2 + $0xb1] sm:$0xff] }
 0x110   : > { %v5251_v34 = vpack.i.bf16 %v635_v22, %v634_v44 }
 0x111   : > { %v6497_v8 = vpop.permute.xlu1 %5007  ;;  %5227 = vrot.lane.b32.xlu0 %v6124_v33, %s5877_s20  ;;  %v4954_v33 = vunpack.i.l.bf16 %v6387_v20 }
 0x113   : > { %v6501_v0 = vpop.permute.xlu0 %5017  ;;  %v1491_v38 = vsel %vm1488_vm3, %v1458_v21, %v4954_v33  ;;  %v1492_v21 = vsel %vm1488_vm3, %v1459_v57, %v4955_v45  ;;  %v4880_v45 = vunpack.i.h.bf16 %v6340_v49 }
 0x115   : > { %5237 = vrot.lane.b32.xlu2 %v5236_v18, %s5877_s20 }
 0x117   : > { %5232 = vrot.lane.b32.xlu1 %v6277_v31, %s5876_s19  ;;  %v6510_v23 = vpop.permute.xlu2 %5072  ;;  %v1679_v31 = vld [vmem:[%s9037_s1 + $0xf0] sm:$0xff] }
 0x118   : > { %1895 = vmatpush.msrb.mxu1 %v1679_v31 }
 0x119   : > { %v6513_v10 = vpop.permute.xlu1 %5022  ;;  %5242 = vrot.lane.b32.xlu0 %v6289_v39, %s5876_s19  ;;  %v637_v39 = vld [vmem:[#allocation2 + $0xc9] sm:$0xff] }
 0x11a   : > { %v5266_v22 = vpack.i.bf16 %v637_v39, %v636_v37  ;;  %v4909_v37 = vunpack.i.l.bf16 %v6316_v58 }
 0x11b   : > { %v5033_v3 = vpop.permute.xlu0 %5032 }
 0x11c   : > { %v5034_v9 = vunpack.i.l.bf16 %v5033_v3  ;;  %v5035_v33 = vunpack.i.h.bf16 %v5033_v3  ;;  %v4959_v3 = vunpack.i.l.bf16 %v6448_v24 }
 0x11d   : > { %5252 = vrot.lane.b32.xlu2 %v5251_v34, %s5877_s20 }
 0x11e   : > { %v1523_v18 = vsel %vm277_vm0, %v1491_v38, %v5034_v9  ;;  %v1524_v20 = vsel %vm277_vm0, %v1492_v21, %v5035_v33  ;;  %v4960_v33 = vunpack.i.h.bf16 %v6448_v24 }
 0x11f   : > { %5247 = vrot.lane.b32.xlu1 %v6308_v52, %s5876_s19  ;;  %1803 = vmatmul.f32.gmra.mxu0 %v1523_v18  ;;  %v6528_v1 = vpop.permute.xlu2 %5087  ;;  %v1678_v52 = vld [vmem:[%s9037_s1 + $0xe8] sm:$0xff]  ;;  %v1677_v18 = vld [vmem:[%s9037_s1 + $0xe0] sm:$0xff] }
 0x120   : > { %1896 = vmatpush.msrb.mxu1 %v1678_v52 }
 0x121   : > { %v5038_v44 = vpop.permute.xlu1 %5037  ;;  %5257 = vrot.lane.b32.xlu0 %v6304_v48, %s5876_s19 }
 0x122   : > { %v5039_v38 = vunpack.i.l.bf16 %v5038_v44  ;;  %1897 = vmatpush.msrb.mxu1 %v1677_v18  ;;  %v5040_v21 = vunpack.i.h.bf16 %v5038_v44  ;;  %v4990_v18 = vunpack.i.h.bf16 %v6473_v50 }
 0x123   : > { %v6535_v34 = vpop.permute.xlu0 %5047 }
 0x125   : > { %5267 = vrot.lane.b32.xlu2 %v5266_v22, %s5877_s20  ;;  %v641_v22 = vld [vmem:[#allocation2 + $0xf9] sm:$0xff] }
 0x127   : > { %5262 = vrot.lane.b32.xlu1 %v6312_v55, %s5876_s19  ;;  %1806 = vmatmul.f32.gmra.mxu0 %v1524_v20  ;;  %v6545_v48 = vpop.permute.xlu2 %5102  ;;  %v1493_v55 = vsel %vm1488_vm3, %v1460_v16, %v4959_v3  ;;  %v1472_v20 = vsel %vm366_vm2, %v6279_v32, %v4909_v37  ;;  %v1676_v32 = vld [vmem:[%s9037_s1 + $0xd8] sm:$0xff] }
 0x128   : > { %v1525_v39 = vsel %vm277_vm0, %v1493_v55, %v5039_v38  ;;  %v1461_v38 = vsel %vm366_vm2, %v6237_v7, %v4880_v45  ;;  %v622_v16 = vld [vmem:[#allocation2 + $0x198] sm:$0xff]  ;;  %v623_v55 = vld [vmem:[#allocation2 + $0x1a0] sm:$0xff]  ;;  %1898 = vmatpush.msrb.mxu1 %v1676_v32  ;;  %v4964_v45 = vunpack.i.l.bf16 %v6456_v54 }
 0x129   : > { %v6549_v9 = vpop.permute.xlu1 %5052  ;;  %5272 = vrot.lane.b32.xlu0 %v6324_v11, %s5876_s19  ;;  %v4989_v11 = vunpack.i.l.bf16 %v6473_v50  ;;  %v1494_v24 = vsel %vm1488_vm3, %v1461_v38, %v4960_v33  ;;  %v645_v33 = vld [vmem:[#allocation2 + $0x129] sm:$0xff]  ;;  %v2288_v32 = vld [vmem:[#allocation2 + $0x1] sm:$0xff] }
 0x12a   : > { %v1526_v44 = vsel %vm277_vm0, %v1494_v24, %v5040_v21  ;;  %v648_v24 = vld [vmem:[#allocation2 + $0x151] sm:$0xff] }
 0x12b   : > { %v6553_v31 = vpop.permute.xlu0 %5062 }
 0x12d   : > { %5282 = vrot.lane.b32.xlu2 %v6322_v4, %s5876_s19  ;;  %v640_v4 = vld [vmem:[#allocation2 + $0xf1] sm:$0xff] }
 0x12e   : > { %v5291_v3 = vpack.i.bf16 %v641_v22, %v640_v4  ;;  %v5044_v4 = vunpack.i.l.bf16 %v6480_v59  ;;  %v644_v22 = vld [vmem:[#allocation2 + $0x121] sm:$0xff] }
 0x12f   : > { %5277 = vrot.lane.b32.xlu1 %v6158_v60, %s5877_s20  ;;  %1809 = vmatmul.f32.gmra.mxu0 %v1525_v39  ;;  %v6568_v6 = vpop.permute.xlu2 %5117  ;;  %v1505_v60 = vsel %vm1488_vm3, %v1472_v20, %v4989_v11  ;;  %v642_v39 = vld [vmem:[#allocation2 + $0x109] sm:$0xff]  ;;  %v643_v11 = vld [vmem:[#allocation2 + $0x111] sm:$0xff] }
 0x131   : > { %v5068_v57 = vpop.permute.xlu1 %5067  ;;  %5287 = vrot.lane.b32.xlu0 %v6331_v17, %s5876_s19  ;;  %v4910_v17 = vunpack.i.h.bf16 %v6316_v58  ;;  %v5311_v58 = vpack.i.bf16 %v623_v55, %v622_v16  ;;  %v5074_v16 = vunpack.i.l.bf16 %v6510_v23  ;;  %v646_v55 = vld [vmem:[#allocation2 + $0x139] sm:$0xff] }
 0x132   : > { %v5069_v52 = vunpack.i.l.bf16 %v5068_v57  ;;  %v5070_v37 = vunpack.i.h.bf16 %v5068_v57  ;;  %v5306_v57 = vpack.i.bf16 %v643_v11, %v642_v39  ;;  %v5045_v39 = vunpack.i.h.bf16 %v6480_v59  ;;  %v1674_v59 = vld [vmem:[%s9037_s1 + $0xc8] sm:$0xff] }
 0x133   : > { %v6576_v2 = vpop.permute.xlu0 %5077  ;;  %v1473_v50 = vsel %vm366_vm2, %v6281_v36, %v4910_v17  ;;  %v1675_v36 = vld [vmem:[%s9037_s1 + $0xd0] sm:$0xff]  ;;  %v4994_v17 = vunpack.i.l.bf16 %v6483_v42 }
 0x134   : > { %v1537_v49 = vsel %vm277_vm0, %v1505_v60, %v5069_v52  ;;  %v1506_v52 = vsel %vm1488_vm3, %v1473_v50, %v4990_v18  ;;  %1899 = vmatpush.msrb.mxu1 %v1675_v36  ;;  %v647_v18 = vld [vmem:[#allocation2 + $0x141] sm:$0xff] }
 0x135   : > { %1845 = vmatmul.f32.vlgmr.msra.gmra.mxu1 %v1537_v49  ;;  %5297 = vrot.lane.b32.xlu2 %v6351_v61, %s5876_s19  ;;  %v4884_v61 = vunpack.i.l.bf16 %v6368_v19  ;;  %v1538_v20 = vsel %vm277_vm0, %v1506_v52, %v5070_v37  ;;  %v4914_v49 = vunpack.i.l.bf16 %v6399_v25  ;;  %v5326_v37 = vpack.i.bf16 %v648_v24, %v2288_v32 }
 0x136   : > { %1900 = vmatpush.msrb.mxu1 %v1674_v59  ;;  %v4889_v52 = vunpack.i.l.bf16 %v6273_v27  ;;  %v4999_v32 = vunpack.i.l.bf16 %v6444_v5  ;;  %v5080_v59 = vunpack.i.h.bf16 %v6576_v2 }
 0x137   : > { %5292 = vrot.lane.b32.xlu1 %v5291_v3, %s5877_s20  ;;  %1812 = vmatmul.f32.gmra.mxu0 %v1526_v44  ;;  %v6592_v7 = vpop.permute.xlu2 %5132  ;;  %v1462_v60 = vsel %vm366_vm2, %v6254_v14, %v4884_v61  ;;  %v5316_v3 = vpack.i.bf16 %v645_v33, %v644_v22  ;;  %v4885_v44 = vunpack.i.h.bf16 %v6368_v19  ;;  %v4965_v61 = vunpack.i.h.bf16 %v6456_v54 }
 0x138   : > { %v1474_v11 = vsel %vm366_vm2, %v6297_v46, %v4914_v49  ;;  %v4915_v46 = vunpack.i.h.bf16 %v6399_v25  ;;  %v4995_v33 = vunpack.i.h.bf16 %v6483_v42  ;;  %v1464_v36 = vsel %vm366_vm2, %v6249_v12, %v4889_v52 }
 0x139   : > { %5302 = vrot.lane.b32.xlu0 %v6344_v51, %s5876_s19  ;;  %v1495_v51 = vsel %vm1488_vm3, %v1462_v60, %v4964_v45  ;;  %v1463_v50 = vsel %vm366_vm2, %v6256_v15, %v4885_v44  ;;  %v5049_v60 = vunpack.i.l.bf16 %v6535_v34  ;;  %v6659_v24 = vpop.permute.xlu1 %5082  ;;  %v4890_v12 = vunpack.i.h.bf16 %v6273_v27 }
 0x13a   : > { %v1527_v38 = vsel %vm277_vm0, %v1495_v51, %v5044_v4  ;;  %v5321_v4 = vpack.i.bf16 %v647_v18, %v646_v55  ;;  %v1496_v54 = vsel %vm1488_vm3, %v1463_v50, %v4965_v61  ;;  %v1475_v25 = vsel %vm366_vm2, %v6299_v47, %v4915_v46  ;;  %v408_v55 = vld [vmem:[#allocation2 + $0x68] sm:$0xff] }
 0x13b   : > { %v6601_v21 = vpop.permute.xlu0 %5092  ;;  %v1528_v22 = vsel %vm277_vm0, %v1496_v54, %v5045_v39  ;;  %v1508_v42 = vsel %vm1488_vm3, %v1475_v25, %v4995_v33  ;;  %v5079_v44 = vunpack.i.l.bf16 %v6576_v2  ;;  %v5050_v18 = vunpack.i.h.bf16 %v6535_v34  ;;  %v409_v33 = vld [vmem:[#allocation2 + $0x78] sm:$0xff]  ;;  %v1671_v25 = vld [vmem:[%s9037_s1 + $0xb0] sm:$0xff] }
 0x13c   : > { %v4920_v34 = vunpack.i.h.bf16 %v6416_v29  ;;  %v4894_v54 = vunpack.i.l.bf16 %v6295_v43 }
 0x13d   : > { %1848 = vmatmul.f32.gmra.mxu1 %v1538_v20  ;;  %5312 = vrot.lane.b32.xlu2 %v5311_v58, %s5876_s19  ;;  %v1507_v58 = vsel %vm1488_vm3, %v1474_v11, %v4994_v17  ;;  %v4969_v20 = vunpack.i.l.bf16 %v6411_v30 }
 0x13e   : > { %v1539_v19 = vsel %vm277_vm0, %v1507_v58, %v5074_v16  ;;  %v4970_v16 = vunpack.i.h.bf16 %v6411_v30  ;;  %v1465_v58 = vsel %vm366_vm2, %v408_v55, %v4890_v12  ;;  %v1672_v30 = vld [vmem:[%s9037_s1 + $0xb8] sm:$0xff]  ;;  %v410_v12 = vld [vmem:[#allocation2 + $0x80] sm:$0xff] }
 0x13f   : > { %5307 = vrot.lane.b32.xlu1 %v5306_v57, %s5877_s20  ;;  %1815 = vmatmul.f32.gmra.mxu0 %v1527_v38  ;;  %v6616_v14 = vpop.permute.xlu2 %5147  ;;  %v5075_v57 = vunpack.i.h.bf16 %v6510_v23  ;;  %v1497_v49 = vsel %vm1488_vm3, %v1464_v36, %v4969_v20  ;;  %v1673_v23 = vld [vmem:[%s9037_s1 + $0xc0] sm:$0xff]  ;;  %v4919_v38 = vunpack.i.l.bf16 %v6416_v29  ;;  %v5054_v29 = vunpack.i.l.bf16 %v6549_v9 }
 0x140   : > { %v1529_v47 = vsel %vm277_vm0, %v1497_v49, %v5049_v60  ;;  %1901 = vmatpush.msrb.mxu1 %v1673_v23  ;;  %v1498_v27 = vsel %vm1488_vm3, %v1465_v58, %v4970_v16  ;;  %v1466_v60 = vsel %vm366_vm2, %v409_v33, %v4894_v54  ;;  %v5004_v36 = vunpack.i.l.bf16 %v6489_v53  ;;  %v421_v49 = vld [vmem:[#allocation2 + $0x108] sm:$0xff]  ;;  %v411_v54 = vld [vmem:[#allocation2 + $0x90] sm:$0xff] }
 0x141   : > { %5317 = vrot.lane.b32.xlu0 %v5316_v3, %s5877_s20  ;;  %v1540_v3 = vsel %vm277_vm0, %v1508_v42, %v5075_v57  ;;  %v1476_v61 = vsel %vm366_vm2, %v6291_v40, %v4919_v38  ;;  %v5000_v40 = vunpack.i.h.bf16 %v6444_v5  ;;  %v6687_v46 = vpop.permute.xlu1 %5097  ;;  %v4924_v42 = vunpack.i.l.bf16 %v6335_v26 }
 0x142   : > { %v1509_v39 = vsel %vm1488_vm3, %v1476_v61, %v4999_v32  ;;  %1902 = vmatpush.msrb.mxu1 %v1672_v30  ;;  %v4895_v38 = vunpack.i.h.bf16 %v6295_v43  ;;  %v4975_v32 = vunpack.i.h.bf16 %v6459_v63  ;;  %v422_v30 = vld [vmem:[#allocation2 + $0x110] sm:$0xff] }
 0x143   : > { %v6625_v45 = vpop.permute.xlu0 %5107  ;;  %v1541_v11 = vsel %vm277_vm0, %v1509_v39, %v5079_v44  ;;  %v5055_v44 = vunpack.i.h.bf16 %v6549_v9  ;;  %v1478_v55 = vsel %vm366_vm2, %v421_v49, %v4924_v42  ;;  %v4925_v9 = vunpack.i.h.bf16 %v6335_v26 }
 0x144   : > { %1903 = vmatpush.msrb.mxu1 %v1671_v25  ;;  %v1511_v61 = vsel %vm1488_vm3, %v1478_v55, %v5004_v36  ;;  %v423_v25 = vld [vmem:[#allocation2 + $0x120] sm:$0xff]  ;;  %v5089_v36 = vunpack.i.l.bf16 %v6528_v1  ;;  %v4980_v49 = vunpack.i.h.bf16 %v6467_v13 }
 0x145   : > { %1851 = vmatmul.f32.gmra.mxu1 %v1539_v19  ;;  %5327 = vrot.lane.b32.xlu2 %v5326_v37, %s5877_s20  ;;  %v420_v19 = vld [vmem:[#allocation2 + $0xf8] sm:$0xff]  ;;  %v1479_v26 = vsel %vm366_vm2, %v422_v30, %v4925_v9  ;;  %v4984_v30 = vunpack.i.l.bf16 %v6432_v41 }
 0x146   : > { %v1477_v52 = vsel %vm366_vm2, %v420_v19, %v4920_v34  ;;  %v4979_v19 = vunpack.i.l.bf16 %v6467_v13  ;;  %v1668_v13 = vld [vmem:[%s9037_s1 + $0x98] sm:$0xff] }
 0x147   : > { %5322 = vrot.lane.b32.xlu1 %v5321_v4, %s5877_s20  ;;  %1818 = vmatmul.f32.gmra.mxu0 %v1528_v22  ;;  %v6640_v15 = vpop.permute.xlu2 %5162  ;;  %v1530_v4 = vsel %vm277_vm0, %v1498_v27, %v5050_v18  ;;  %v4974_v22 = vunpack.i.l.bf16 %v6459_v63  ;;  %v1510_v5 = vsel %vm1488_vm3, %v1477_v52, %v5000_v40  ;;  %v1670_v63 = vld [vmem:[%s9037_s1 + $0xa8] sm:$0xff]  ;;  %v5005_v27 = vunpack.i.h.bf16 %v6489_v53 }
 0x148   : > { %v1542_v20 = vsel %vm277_vm0, %v1510_v5, %v5080_v59  ;;  %1904 = vmatpush.msrb.mxu1 %v1670_v63  ;;  %v5085_v40 = vunpack.i.h.bf16 %v6659_v24  ;;  %v5059_v59 = vunpack.i.l.bf16 %v6495_v56  ;;  %v1669_v5 = vld [vmem:[%s9037_s1 + $0xa0] sm:$0xff]  ;;  %v424_v63 = vld [vmem:[#allocation2 + $0x128] sm:$0xff] }
 0x149   : > { %v1499_v2 = vsel %vm1488_vm3, %v1466_v60, %v4974_v22  ;;  %v6710_v16 = vpop.permute.xlu1 %5112  ;;  %v1512_v33 = vsel %vm1488_vm3, %v1479_v26, %v5005_v27  ;;  %v5090_v27 = vunpack.i.h.bf16 %v6528_v1  ;;  %v1667_v1 = vld [vmem:[%s9037_s1 + $0x90] sm:$0xff] }
 0x14a   : > { %1905 = vmatpush.msrb.mxu1 %v1669_v5 }
 0x14b   : > { %v6648_v51 = vpop.permute.xlu0 %5122 }
 0x14c   : > { %1906 = vmatpush.msrb.mxu1 %v1668_v13 }
 0x14d   : > { %1854 = vmatmul.f32.gmra.mxu1 %v1540_v3  ;;  %v1531_v3 = vsel %vm277_vm0, %v1499_v2, %v5054_v29  ;;  %v1544_v29 = vsel %vm277_vm0, %v1512_v33, %v5085_v40  ;;  %v5009_v2 = vunpack.i.l.bf16 %v6497_v8  ;;  %v9065_v33 = vld [vmem:[#allocation7_spill] sm:$0xff] }
 0x14e   : > { %1907 = vmatpush.msrb.mxu1 %v1667_v1  ;;  %v9067_v1 = vld [vmem:[#allocation6_spill] sm:$0xff] }
 0x14f   : > { %1821 = vmatmul.f32.gmra.mxu0 %v1529_v47  ;;  %v6663_v17 = vpop.permute.xlu2 %5177  ;;  %v5084_v47 = vunpack.i.l.bf16 %v6659_v24 }
 0x151   : > { %v1543_v39 = vsel %vm277_vm0, %v1511_v61, %v5084_v47  ;;  %v6735_v53 = vpop.permute.xlu1 %5127  ;;  %v5060_v47 = vunpack.i.h.bf16 %v6495_v56 }
 0x153   : > { %v6671_v37 = vpop.permute.xlu0 %5137 }
 0x155   : > { %1857 = vmatmul.f32.gmra.mxu1 %v1541_v11  ;;  %v1467_v11 = vsel %vm366_vm2, %v410_v12, %v4895_v38  ;;  %v412_v38 = vld [vmem:[#allocation2 + $0x98] sm:$0xff] }
 0x156   : > { %v1500_v43 = vsel %vm1488_vm3, %v1467_v11, %v4975_v32 }
 0x157   : > { %1824 = vmatmul.f32.gmra.mxu0 %v1530_v4  ;;  %v6683_v50 = vpop.permute.xlu2 %5192  ;;  %v1532_v58 = vsel %vm277_vm0, %v1500_v43, %v5055_v44  ;;  %v4899_v4 = vunpack.i.l.bf16 %v6375_v28  ;;  %v5010_v43 = vunpack.i.h.bf16 %v6497_v8 }
 0x159   : > { %v1468_v52 = vsel %vm366_vm2, %v411_v54, %v4899_v4  ;;  %v6763_v56 = vpop.permute.xlu1 %5142  ;;  %v413_v4 = vld [vmem:[#allocation2 + $0xa8] sm:$0xff] }
 0x15a   : > { %v1501_v24 = vsel %vm1488_vm3, %v1468_v52, %v4979_v19 }
 0x15b   : > { %v6692_v57 = vpop.permute.xlu0 %5152  ;;  %v1533_v60 = vsel %vm277_vm0, %v1501_v24, %v5059_v59  ;;  %v9066_v24 = vld [vmem:[#allocation9_spill] sm:$0xff] }
 0x15c   : > { %v5014_v5 = vunpack.i.l.bf16 %v9066_v24  ;;  %v5015_v13 = vunpack.i.h.bf16 %v9066_v24  ;;  %v5019_v24 = vunpack.i.l.bf16 %v6501_v0 }
 0x15d   : > { %1860 = vmatmul.f32.gmra.mxu1 %v1542_v20  ;;  %v4929_v20 = vunpack.i.l.bf16 %v6423_v35 }
 0x15f   : > { %1827 = vmatmul.f32.gmra.mxu0 %v1531_v3  ;;  %v6704_v23 = vpop.permute.xlu2 %5207  ;;  %v4900_v3 = vunpack.i.h.bf16 %v6375_v28  ;;  %v1480_v32 = vsel %vm366_vm2, %v423_v25, %v4929_v20  ;;  %v425_v20 = vld [vmem:[#allocation2 + $0x138] sm:$0xff]  ;;  %v5094_v25 = vunpack.i.l.bf16 %v6601_v21 }
 0x160   : > { %v1513_v44 = vsel %vm1488_vm3, %v1480_v32, %v5009_v2  ;;  %v4905_v2 = vunpack.i.h.bf16 %v6392_v62 }
 0x161   : > { %v1545_v55 = vsel %vm277_vm0, %v1513_v44, %v5089_v36  ;;  %v1469_v61 = vsel %vm366_vm2, %v412_v38, %v4900_v3  ;;  %v6790_v3 = vpop.permute.xlu1 %5157  ;;  %v4985_v36 = vunpack.i.h.bf16 %v6432_v41  ;;  %v5065_v38 = vunpack.i.h.bf16 %v6553_v31  ;;  %v1666_v41 = vld [vmem:[%s9037_s1 + $0x88] sm:$0xff] }
 0x162   : > { %v1502_v28 = vsel %vm1488_vm3, %v1469_v61, %v4980_v49  ;;  %v414_v49 = vld [vmem:[#allocation2 + $0xb0] sm:$0xff]  ;;  %1908 = vmatpush.msrb.mxu1 %v1666_v41 }
 0x163   : > { %v6713_v18 = vpop.permute.xlu0 %5167  ;;  %v1534_v11 = vsel %vm277_vm0, %v1502_v28, %v5060_v47  ;;  %v1471_v61 = vsel %vm366_vm2, %v414_v49, %v4905_v2  ;;  %v4935_v28 = vunpack.i.h.bf16 %v9065_v33  ;;  %v656_v2 = vld [vmem:[#allocation2 + $0x32] sm:$0xff]  ;;  %v5099_v49 = vunpack.i.l.bf16 %v6687_v46 }
 0x165   : > { %1863 = vmatmul.f32.gmra.mxu1 %v1543_v39  ;;  %v4930_v39 = vunpack.i.h.bf16 %v6423_v35  ;;  %v5064_v35 = vunpack.i.l.bf16 %v6553_v31 }
 0x167   : > { %1830 = vmatmul.f32.gmra.mxu0 %v1532_v58  ;;  %v6725_v34 = vpop.permute.xlu2 %5222  ;;  %v4904_v58 = vunpack.i.l.bf16 %v6392_v62  ;;  %v1481_v40 = vsel %vm366_vm2, %v424_v63, %v4930_v39  ;;  %v1504_v62 = vsel %vm1488_vm3, %v1471_v61, %v4985_v36  ;;  %v426_v39 = vld [vmem:[#allocation2 + $0x140] sm:$0xff] }
 0x168   : > { %v1514_v54 = vsel %vm1488_vm3, %v1481_v40, %v5010_v43  ;;  %v1536_v31 = vsel %vm277_vm0, %v1504_v62, %v5065_v38  ;;  %v5095_v43 = vunpack.i.h.bf16 %v6601_v21  ;;  %v1683_v21 = vld [vmem:[%s9037_s1 + $0x110] sm:$0xff] }
 0x169   : > { %v1546_v8 = vsel %vm277_vm0, %v1514_v54, %v5090_v27  ;;  %v1470_v59 = vsel %vm366_vm2, %v413_v4, %v4904_v58  ;;  %v5173_v63 = vpop.permute.xlu1 %5172  ;;  %v1483_v58 = vsel %vm366_vm2, %v426_v39, %v4935_v28  ;;  %v1684_v27 = vld [vmem:[%s9037_s1 + $0x118] sm:$0xff] }
 0x16a   : > { %v1503_v26 = vsel %vm1488_vm3, %v1470_v59, %v4984_v30  ;;  %v5175_v30 = vunpack.i.h.bf16 %v5173_v63  ;;  %v5174_v4 = vunpack.i.l.bf16 %v5173_v63  ;;  %v1516_v40 = vsel %vm1488_vm3, %v1483_v58, %v5015_v13  ;;  %2019 = vmatpush.msra.mxu2 %v1684_v27  ;;  %4807 = vmatpush.msra.mxu3 %v1684_v27  ;;  %v1665_v59 = vld [vmem:[%s9037_s1 + $0x80] sm:$0xff]  ;;  %v428_v39 = vld [vmem:[#allocation2 + $0x158] sm:$0xff] }
 0x16b   : > { %v6732_v22 = vpop.permute.xlu0 %5182  ;;  %v1535_v52 = vsel %vm277_vm0, %v1503_v26, %v5064_v35  ;;  %v1548_v54 = vsel %vm277_vm0, %v1516_v40, %v5095_v43  ;;  %v1682_v26 = vld [vmem:[%s9037_s1 + $0x108] sm:$0xff]  ;;  %1909 = vmatpush.msrb.mxu1 %v1665_v59  ;;  %v5020_v13 = vunpack.i.h.bf16 %v6501_v0  ;;  %v657_v43 = vld [vmem:[#allocation2 + $0x3a] sm:$0xff]  ;;  %v5100_v63 = vunpack.i.h.bf16 %v6687_v46 }
 0x16c   : > { %2020 = vmatpush.msra.mxu2 %v1683_v21  ;;  %4808 = vmatpush.msra.mxu3 %v1683_v21  ;;  %v5185_v58 = vunpack.i.h.bf16 %v6732_v22  ;;  %v5184_v27 = vunpack.i.l.bf16 %v6732_v22 }
 0x16d   : > { %1866 = vmatmul.f32.gmra.mxu1 %v1544_v29  ;;  %v4934_v29 = vunpack.i.l.bf16 %v9065_v33  ;;  %v4939_v33 = vunpack.i.l.bf16 %v9067_v1 }
 0x16e   : > { %2021 = vmatpush.msra.mxu2 %v1682_v26  ;;  %4809 = vmatpush.msra.mxu3 %v1682_v26  ;;  %v557_v26 = vld [vmem:[#allocation2 + $0x181] sm:$0xff] }
 0x16f   : > { %1833 = vmatmul.f32.gmra.mxu0 %v1533_v60  ;;  %v6746_v42 = vpop.permute.xlu2 %5237  ;;  %v1482_v47 = vsel %vm366_vm2, %v425_v20, %v4934_v29  ;;  %v1681_v29 = vld [vmem:[%s9037_s1 + $0x100] sm:$0xff]  ;;  %v1583_v46 = vsel %vm366_vm2, %v557_v26, %v5184_v27  ;;  %v430_v27 = vld [vmem:[#allocation2 + $0x170] sm:$0xff] }
 0x170   : > { %v1515_v44 = vsel %vm1488_vm3, %v1482_v47, %v5014_v5  ;;  %v427_v5 = vld [vmem:[#allocation2 + $0x150] sm:$0xff]  ;;  %2022 = vmatpush.msra.mxu2 %v1681_v29  ;;  %4810 = vmatpush.msra.mxu3 %v1681_v29 }
 0x171   : > { %4720 = vmatmul.msk.f32.vlgmr.msra.gmra.mxu2 %vm366_vm2, %v656_v2  ;;  %v429_v2 = vld [vmem:[#allocation2 + $0x168] sm:$0xff] }
 0x173   : > { %v6753_v12 = vpop.permute.xlu0 %5197 }
 0x175   : > { %1869 = vmatmul.f32.gmra.mxu1 %v1545_v55  ;;  %v1547_v55 = vsel %vm277_vm0, %v1515_v44, %v5094_v25  ;;  %v1484_v44 = vsel %vm366_vm2, %v427_v5, %v4939_v33  ;;  %v9068_v33 = vld [vmem:[#allocation8_spill] sm:$0xff]  ;;  %v5024_v5 = vunpack.i.l.bf16 %v6513_v10 }
 0x176   : > { %v1517_v41 = vsel %vm1488_vm3, %v1484_v44, %v5019_v24  ;;  %v4944_v29 = vunpack.i.l.bf16 %v9068_v33 }
 0x177   : > { %1836 = vmatmul.f32.gmra.mxu0 %v1534_v11  ;;  %v6767_v9 = vpop.permute.xlu2 %5252  ;;  %v1549_v28 = vsel %vm277_vm0, %v1517_v41, %v5099_v49  ;;  %v552_v49 = vld [vmem:[#allocation2 + $0x141] sm:$0xff] }
 0x179   : > { %4721 = vmatmul.msk.f32.gmra.mxu2 %vm366_vm2, %v657_v43  ;;  %v5025_v43 = vunpack.i.h.bf16 %v6513_v10 }
 0x17b   : > { %v6774_v19 = vpop.permute.xlu0 %5212 }
 0x17d   : > { %1872 = vmatmul.f32.gmra.mxu1 %v1546_v8  ;;  %v6821_v8 = vld [vmem:[#allocation2 + $0x159] sm:$0xff] }
 0x17e   : > { %v1580_v36 = vsel %vm366_vm2, %v6821_v8, %v5175_v30 }
 0x17f   : > { %1839 = vmatmul.f32.gmra.mxu0 %v1535_v52  ;;  %v6786_v60 = vpop.permute.xlu2 %5267  ;;  %v553_v52 = vld [vmem:[#allocation2 + $0x151] sm:$0xff] }
 0x180   : > { %v1579_v25 = vsel %vm366_vm2, %v553_v52, %v5174_v4 }
 0x183   : > { %v6795_v32 = vpop.permute.xlu0 %5227 }
 0x185   : > { %1875 = vmatmul.f32.gmra.mxu1 %v1547_v55 }
 0x187   : > { %1842 = vmatmul.f32.gmra.mxu0 %v1536_v31  ;;  %v6807_v11 = vpop.permute.xlu2 %5282  ;;  %v4940_v31 = vunpack.i.h.bf16 %v9067_v1  ;;  %v558_v1 = vld [vmem:[#allocation2 + $0x189] sm:$0xff] }
 0x188   : > { %v1584_v22 = vsel %vm366_vm2, %v558_v1, %v5185_v58  ;;  %v5179_v58 = vunpack.i.l.bf16 %v6663_v17  ;;  %v527_v1 = vld [vmem:[#allocation2 + $0x19] sm:$0xff] }
 0x189   : > { %v1485_v4 = vsel %vm366_vm2, %v428_v39, %v4940_v31 }
 0x18a   : > { %v1518_v59 = vsel %vm1488_vm3, %v1485_v4, %v5020_v13  ;;  %v4945_v13 = vunpack.i.h.bf16 %v9068_v33  ;;  %v5105_v4 = vunpack.i.h.bf16 %v6545_v48 }
 0x18b   : > { %v6814_v35 = vpop.permute.xlu0 %5242  ;;  %v1550_v0 = vsel %vm277_vm0, %v1518_v59, %v5100_v63  ;;  %v5180_v63 = vunpack.i.h.bf16 %v6663_v17  ;;  %v5109_v59 = vunpack.i.l.bf16 %v6625_v45 }
 0x18d   : > { %1878 = vmatmul.f32.gmra.mxu1 %v1548_v54 }
 0x18f   : > { %v5298_v20 = vpop.permute.xlu2 %5297 }
 0x190   : > { %v5300_v38 = vunpack.i.h.bf16 %v5298_v20  ;;  %v5299_v47 = vunpack.i.l.bf16 %v5298_v20  ;;  %v5170_v20 = vunpack.i.h.bf16 %v6713_v18 }
 0x192   : > { %v6841_v55 = vsel %vm1488_vm3, %v1579_v25, %v5299_v47  ;;  %v6844_v61 = vsel %vm1488_vm3, %v1580_v36, %v5300_v38  ;;  %v658_v25 = vld [vmem:[#allocation2 + $0x4a] sm:$0xff]  ;;  %v5104_v36 = vunpack.i.l.bf16 %v6545_v48  ;;  %v1486_v38 = vsel %vm366_vm2, %v429_v2, %v4944_v29 }
 0x193   : > { %v6846_v62 = vpop.permute.xlu0 %5257  ;;  %4722 = vmatmul.msk.f32.gmra.mxu2 %vm366_vm2, %v658_v25  ;;  %v1519_v44 = vsel %vm1488_vm3, %v1486_v38, %v5024_v5  ;;  %v1578_v41 = vsel %vm366_vm2, %v552_v49, %v5170_v20  ;;  %v1553_v20 = vsel %vm366_vm2, %v527_v1, %v5109_v59  ;;  %v5194_v49 = vunpack.i.l.bf16 %v6683_v50  ;;  %v662_v1 = vld [vmem:[#allocation2 + $0x7a] sm:$0xff] }
 0x194   : > { %v1551_v31 = vsel %vm277_vm0, %v1519_v44, %v5104_v36  ;;  %v660_v36 = vld [vmem:[#allocation2 + $0x62] sm:$0xff]  ;;  %v5110_v44 = vunpack.i.h.bf16 %v6625_v45  ;;  %v529_v45 = vld [vmem:[#allocation2 + $0x31] sm:$0xff] }
 0x195   : > { %1881 = vmatmul.f32.gmra.mxu1 %v1549_v28 }
 0x197   : > { %v5313_v30 = vpop.permute.xlu2 %5312 }
 0x198   : > { %v5315_v40 = vunpack.i.h.bf16 %v5313_v30  ;;  %v5314_v54 = vunpack.i.l.bf16 %v5313_v30  ;;  %v659_v30 = vld [vmem:[#allocation2 + $0x52] sm:$0xff] }
 0x19a   : > { %v6865_v52 = vsel %vm1488_vm3, %v1583_v46, %v5314_v54  ;;  %v6868_v24 = vsel %vm1488_vm3, %v1584_v22, %v5315_v40  ;;  %v6889_v40 = vld [vmem:[#allocation2 + $0x169] sm:$0xff]  ;;  %v6891_v54 = vld [vmem:[#allocation2 + $0x171] sm:$0xff]  ;;  %v5188_v46 = vpop.permute.xlu1 %5187 }
 0x19b   : > { %v6857_v21 = vpop.permute.xlu0 %5272  ;;  %4723 = vmatmul.msk.f32.gmra.mxu2 %vm366_vm2, %v659_v30  ;;  %v1581_v17 = vsel %vm366_vm2, %v6889_v40, %v5179_v58  ;;  %v1582_v48 = vsel %vm366_vm2, %v6891_v54, %v5180_v63  ;;  %v5189_v5 = vunpack.i.l.bf16 %v5188_v46  ;;  %v661_v63 = vld [vmem:[#allocation2 + $0x6a] sm:$0xff]  ;;  %v5195_v58 = vunpack.i.h.bf16 %v6683_v50 }
 0x19c   : > { %v5114_v30 = vunpack.i.l.bf16 %v6710_v16 }
 0x19d   : > { %1884 = vmatmul.f32.gmra.mxu1 %v1550_v0  ;;  %v1487_v0 = vsel %vm366_vm2, %v430_v27, %v4945_v13  ;;  %v1585_v38 = vsel %vm1488_vm3, %v1553_v20, %v5189_v5  ;;  %v5190_v13 = vunpack.i.h.bf16 %v5188_v46  ;;  %v663_v20 = vld [vmem:[#allocation2 + $0x82] sm:$0xff] }
 0x19e   : > { %v1520_v10 = vsel %vm1488_vm3, %v1487_v0, %v5025_v43  ;;  %v5199_v0 = vunpack.i.l.bf16 %v6753_v12 }
 0x19f   : > { %v1552_v29 = vsel %vm277_vm0, %v1520_v10, %v5105_v4 }
 0x1a2   : > { %v5203_v10 = vpop.permute.xlu1 %5202 }
 0x1a3   : > { %v6875_v47 = vpop.permute.xlu0 %5287  ;;  %4724 = vmatmul.msk.f32.gmra.mxu2 %vm366_vm2, %v660_v36  ;;  %v5205_v36 = vunpack.i.h.bf16 %v5203_v10 }
 0x1a4   : > { %v5290_v28 = vunpack.i.h.bf16 %v6875_v47 }
 0x1a5   : > { %1887 = vmatmul.f32.gmra.mxu1 %v1551_v31  ;;  %v1617_v31 = vsel %vm277_vm0, %v1585_v38, %v5194_v49  ;;  %v5119_v38 = vunpack.i.l.bf16 %v6568_v6 }
 0x1a6   : > { %v6883_v39 = vsel %vm1488_vm3, %v1578_v41, %v5290_v28  ;;  %v528_v28 = vld [vmem:[#allocation2 + $0x21] sm:$0xff] }
 0x1a7   : > { %v1554_v43 = vsel %vm366_vm2, %v528_v28, %v5110_v44 }
 0x1a8   : > { %v1586_v27 = vsel %vm1488_vm3, %v1554_v43, %v5190_v13  ;;  %v664_v13 = vld [vmem:[#allocation2 + $0x92] sm:$0xff]  ;;  %v5214_v43 = vunpack.i.l.bf16 %v6774_v19 }
 0x1a9   : > { %v1618_v59 = vsel %vm277_vm0, %v1586_v27, %v5195_v58  ;;  %v5120_v58 = vunpack.i.h.bf16 %v6568_v6 }
 0x1ab   : > { %v5303_v26 = vpop.permute.xlu0 %5302  ;;  %4725 = vmatmul.msk.f32.gmra.mxu2 %vm366_vm2, %v661_v63 }
 0x1ac   : > { %v5305_v22 = vunpack.i.h.bf16 %v5303_v26  ;;  %v5304_v33 = vunpack.i.l.bf16 %v5303_v26  ;;  %v1555_v26 = vsel %vm366_vm2, %v529_v45, %v5114_v30  ;;  %v532_v30 = vld [vmem:[#allocation2 + $0x51] sm:$0xff] }
 0x1ad   : > { %1890 = vmatmul.f32.gmra.mxu1 %v1552_v29  ;;  %v1587_v50 = vsel %vm1488_vm3, %v1555_v26, %v5199_v0  ;;  %v5200_v29 = vunpack.i.h.bf16 %v6753_v12  ;;  %v1558_v0 = vsel %vm366_vm2, %v532_v30, %v5120_v58  ;;  %v665_v26 = vld [vmem:[#allocation2 + $0x9a] sm:$0xff]  ;;  %v5224_v30 = vunpack.i.l.bf16 %v6725_v34 }
 0x1ae   : > { %v6904_v2 = vsel %vm1488_vm3, %v1581_v17, %v5304_v33  ;;  %v6907_v25 = vsel %vm1488_vm3, %v1582_v48, %v5305_v22  ;;  %v5204_v17 = vunpack.i.l.bf16 %v5203_v10  ;;  %v5115_v48 = vunpack.i.h.bf16 %v6710_v16  ;;  %v530_v22 = vld [vmem:[#allocation2 + $0x39] sm:$0xff]  ;;  %v531_v16 = vld [vmem:[#allocation2 + $0x49] sm:$0xff] }
 0x1af   : > { %v1557_v12 = vsel %vm366_vm2, %v531_v16, %v5119_v38  ;;  %v5215_v10 = vunpack.i.h.bf16 %v6774_v19 }
 0x1b0   : > { %v1619_v33 = vsel %vm277_vm0, %v1587_v50, %v5204_v17  ;;  %v1556_v5 = vsel %vm366_vm2, %v530_v22, %v5115_v48  ;;  %v5124_v17 = vunpack.i.l.bf16 %v6648_v51  ;;  %v533_v50 = vld [vmem:[#allocation2 + $0x61] sm:$0xff]  ;;  %v5218_v48 = vpop.permute.xlu1 %5217 }
 0x1b1   : > { %v1588_v49 = vsel %vm1488_vm3, %v1556_v5, %v5200_v29  ;;  %v666_v29 = vld [vmem:[#allocation2 + $0xaa] sm:$0xff]  ;;  %v5229_v5 = vunpack.i.l.bf16 %v6795_v32  ;;  %v5220_v16 = vunpack.i.h.bf16 %v5218_v48 }
 0x1b2   : > { %v6912_v41 = vpop.f32.mrf.mxu1  ;;  %v1620_v28 = vsel %vm277_vm0, %v1588_v49, %v5205_v36  ;;  %v534_v49 = vld [vmem:[#allocation2 + $0x69] sm:$0xff] }
 0x1b3   : > { %4726 = vmatmul.msk.f32.gmra.mxu2 %vm366_vm2, %v662_v1 }
 0x1b5   : > { %1910 = vmatmul.f32.vlgmr.msrb.gmra.mxu1 %v1617_v31  ;;  %v5209_v31 = vunpack.i.l.bf16 %v6704_v23 }
 0x1b7   : > { %v1589_v63 = vsel %vm1488_vm3, %v1557_v12, %v5209_v31  ;;  %v667_v31 = vld [vmem:[#allocation2 + $0xb2] sm:$0xff]  ;;  %v5230_v12 = vunpack.i.h.bf16 %v6795_v32 }
 0x1b8   : > { %v1621_v45 = vsel %vm277_vm0, %v1589_v63, %v5214_v43  ;;  %v5129_v43 = vunpack.i.l.bf16 %v6735_v53 }
 0x1ba   : > { %v6920_v4 = vpop.f32.mrf.mxu1 }
 0x1bb   : > { %4727 = vmatmul.msk.f32.gmra.mxu2 %vm366_vm2, %v663_v20  ;;  %v5125_v20 = vunpack.i.h.bf16 %v6648_v51  ;;  %v535_v51 = vld [vmem:[#allocation2 + $0x79] sm:$0xff] }
 0x1bd   : > { %1913 = vmatmul.f32.gmra.mxu1 %v1618_v59  ;;  %v5210_v59 = vunpack.i.h.bf16 %v6704_v23  ;;  %v1559_v23 = vsel %vm366_vm2, %v533_v50, %v5124_v17  ;;  %v5225_v50 = vunpack.i.h.bf16 %v6725_v34  ;;  %v5795_v34 = vld [vmem:[#allocation2 + $0x91] sm:$0xff] }
 0x1bf   : > { %v1590_v1 = vsel %vm1488_vm3, %v1558_v0, %v5210_v59  ;;  %v668_v59 = vld [vmem:[#allocation2 + $0xc2] sm:$0xff]  ;;  %v5239_v0 = vunpack.i.l.bf16 %v6746_v42 }
 0x1c0   : > { %v1622_v22 = vsel %vm277_vm0, %v1590_v1, %v5215_v10  ;;  %v536_v1 = vld [vmem:[#allocation2 + $0x81] sm:$0xff] }
 0x1c2   : > { %v6928_v46 = vpop.f32.mrf.mxu1 }
 0x1c3   : > { %4728 = vmatmul.msk.f32.gmra.mxu2 %vm366_vm2, %v664_v13 }
 0x1c5   : > { %1916 = vmatmul.f32.gmra.mxu1 %v1619_v33  ;;  %v5219_v33 = vunpack.i.l.bf16 %v5218_v48 }
 0x1c7   : > { %v1591_v19 = vsel %vm1488_vm3, %v1559_v23, %v5219_v33  ;;  %v5240_v33 = vunpack.i.h.bf16 %v6746_v42 }
 0x1c8   : > { %v1623_v38 = vsel %vm277_vm0, %v1591_v19, %v5229_v5  ;;  %v5233_v5 = vpop.permute.xlu1 %5232 }
 0x1ca   : > { %v6936_v44 = vpop.f32.mrf.mxu1 }
 0x1cb   : > { %4729 = vmatmul.msk.f32.gmra.mxu2 %vm366_vm2, %v665_v26  ;;  %v5130_v26 = vunpack.i.h.bf16 %v6735_v53 }
 0x1cd   : > { %1919 = vmatmul.f32.gmra.mxu1 %v1620_v28  ;;  %v1560_v28 = vsel %vm366_vm2, %v534_v49, %v5125_v20  ;;  %v1562_v48 = vsel %vm366_vm2, %v536_v1, %v5130_v26  ;;  %v5234_v20 = vunpack.i.l.bf16 %v5233_v5  ;;  %v5244_v26 = vunpack.i.l.bf16 %v6814_v35  ;;  %v2320_v1 = vld [vmem:[#allocation2 + $0x2] sm:$0xff] }
 0x1ce   : > { %v1592_v13 = vsel %vm1488_vm3, %v1560_v28, %v5220_v16  ;;  %v1594_v23 = vsel %vm1488_vm3, %v1562_v48, %v5225_v50  ;;  %v5254_v16 = vunpack.i.l.bf16 %v6767_v9  ;;  %v5135_v28 = vunpack.i.h.bf16 %v6592_v7  ;;  %v5797_v50 = vld [vmem:[#allocation2 + $0xa9] sm:$0xff] }
 0x1cf   : > { %v1624_v58 = vsel %vm277_vm0, %v1592_v13, %v5230_v12  ;;  %v1626_v19 = vsel %vm277_vm0, %v1594_v23, %v5240_v33  ;;  %v5235_v13 = vunpack.i.h.bf16 %v5233_v5  ;;  %v5269_v33 = vunpack.i.l.bf16 %v6786_v60 }
 0x1d2   : > { %v6945_v27 = vpop.f32.mrf.mxu1 }
 0x1d3   : > { %4730 = vmatmul.msk.f32.gmra.mxu2 %vm366_vm2, %v666_v29  ;;  %v5134_v29 = vunpack.i.l.bf16 %v6592_v7  ;;  %v5139_v7 = vunpack.i.l.bf16 %v6671_v37 }
 0x1d5   : > { %1922 = vmatmul.f32.gmra.mxu1 %v1621_v45  ;;  %v1561_v45 = vsel %vm366_vm2, %v535_v51, %v5129_v43  ;;  %v1563_v49 = vsel %vm366_vm2, %v5795_v34, %v5134_v29  ;;  %v5796_v43 = vld [vmem:[#allocation2 + $0x99] sm:$0xff]  ;;  %v5140_v29 = vunpack.i.h.bf16 %v6671_v37  ;;  %v1798_v34 = vpop.f32.mrf.mxu0  ;;  %v5270_v37 = vunpack.i.h.bf16 %v6786_v60 }
 0x1d6   : > { %v1593_v32 = vsel %vm1488_vm3, %v1561_v45, %v5224_v30  ;;  %v1595_v42 = vsel %vm1488_vm3, %v1563_v49, %v5234_v20  ;;  %v1564_v51 = vsel %vm366_vm2, %v5796_v43, %v5135_v28  ;;  %v5255_v30 = vunpack.i.h.bf16 %v6767_v9  ;;  %v7002_v45 = vpop.permute.xlu1 %5247 }
 0x1d7   : > { %v1625_v17 = vsel %vm277_vm0, %v1593_v32, %v5239_v0  ;;  %v1627_v12 = vsel %vm277_vm0, %v1595_v42, %v5254_v16  ;;  %v1565_v9 = vsel %vm366_vm2, %v5797_v50, %v5139_v7  ;;  %v5245_v49 = vunpack.i.h.bf16 %v6814_v35  ;;  %v674_v16 = vld [vmem:[#allocation2 + $0x10a] sm:$0xff] }
 0x1d8   : > { %v1597_v23 = vsel %vm1488_vm3, %v1565_v9, %v5244_v26  ;;  %v5798_v42 = vld [vmem:[#allocation2 + $0xb1] sm:$0xff]  ;;  %4738 = vmatmul.msk.f32.vlgmr.msra.gmra.mxu3 %vm366_vm2, %v674_v16  ;;  %v5249_v60 = vunpack.i.l.bf16 %v7002_v45  ;;  %v5799_v26 = vld [vmem:[#allocation2 + $0xc1] sm:$0xff]  ;;  %v5145_v9 = vunpack.i.h.bf16 %v6763_v56 }
 0x1d9   : > { %v1629_v20 = vsel %vm277_vm0, %v1597_v23, %v5269_v33  ;;  %v1566_v28 = vsel %vm366_vm2, %v5798_v42, %v5140_v29  ;;  %v676_v33 = vld [vmem:[#allocation2 + $0x122] sm:$0xff]  ;;  %v5250_v23 = vunpack.i.h.bf16 %v7002_v45  ;;  %v5259_v45 = vunpack.i.l.bf16 %v6846_v62 }
 0x1da   : > { %v6954_v6 = vpop.f32.mrf.mxu1 }
 0x1db   : > { %4731 = vmatmul.msk.f32.gmra.mxu2 %vm366_vm2, %v667_v31 }
 0x1dd   : > { %1925 = vmatmul.f32.gmra.mxu1 %v1622_v22  ;;  %v669_v22 = vld [vmem:[#allocation2 + $0xca] sm:$0xff]  ;;  %v1801_v7 = vpop.f32.mrf.mxu0 }
 0x1e2   : > { %v6962_v36 = vpop.f32.mrf.mxu1 }
 0x1e3   : > { %4732 = vmatmul.msk.f32.gmra.mxu2 %vm366_vm2, %v668_v59  ;;  %v1596_v59 = vsel %vm1488_vm3, %v1564_v51, %v5235_v13  ;;  %v673_v13 = vld [vmem:[#allocation2 + $0xfa] sm:$0xff]  ;;  %v5144_v51 = vunpack.i.l.bf16 %v6763_v56  ;;  %v5149_v56 = vunpack.i.l.bf16 %v6616_v14 }
 0x1e4   : > { %v1628_v32 = vsel %vm277_vm0, %v1596_v59, %v5255_v30  ;;  %v675_v59 = vld [vmem:[#allocation2 + $0x112] sm:$0xff] }
 0x1e5   : > { %1928 = vmatmul.f32.gmra.mxu1 %v1623_v38  ;;  %v670_v38 = vld [vmem:[#allocation2 + $0xda] sm:$0xff]  ;;  %4739 = vmatmul.msk.f32.gmra.mxu3 %vm366_vm2, %v675_v59  ;;  %v1804_v29 = vpop.f32.mrf.mxu0 }
 0x1ea   : > { %v6970_v63 = vpop.f32.mrf.mxu1 }
 0x1eb   : > { %4733 = vmatmul.msk.f32.gmra.mxu2 %vm366_vm2, %v669_v22  ;;  %v672_v22 = vld [vmem:[#allocation2 + $0xf2] sm:$0xff] }
 0x1ed   : > { %1931 = vmatmul.f32.gmra.mxu1 %v1624_v58  ;;  %v671_v58 = vld [vmem:[#allocation2 + $0xe2] sm:$0xff]  ;;  %4740 = vmatmul.msk.f32.gmra.mxu3 %vm366_vm2, %v676_v33 }
 0x1f2   : > { %v6979_v10 = vpop.f32.mrf.mxu1 }
 0x1f3   : > { %4734 = vmatmul.msk.f32.gmra.mxu2 %vm366_vm2, %v670_v38 }
 0x1f4   : > { %v2024_v38 = vpop.f32.mrf.mxu2 }
 0x1f5   : > { %1934 = vmatmul.f32.gmra.mxu1 %v1625_v17  ;;  %v2321_v17 = vld [vmem:[#allocation2 + $0xa] sm:$0xff] }
 0x1f6   : > { %v5331_v48 = vpack.i.bf16 %v2321_v17, %v2320_v1  ;;  %v1567_v1 = vsel %vm366_vm2, %v5799_v26, %v5144_v51  ;;  %v677_v51 = vld [vmem:[#allocation2 + $0x12a] sm:$0xff] }
 0x1f7   : > { %v1599_v50 = vsel %vm1488_vm3, %v1567_v1, %v5249_v60  ;;  %4741 = vmatmul.msk.f32.gmra.mxu3 %vm366_vm2, %v677_v51  ;;  %v7055_v60 = vpop.f32.mrf.mxu0  ;;  %v7060_v1 = vld [vmem:[%s9038_s2] ss:$0 sm:$0xff] }
 0x1f8   : > { %5332 = vrot.lane.b32.xlu0 %v5331_v48, %s5876_s19 }
 0x1fa   : > { %v6988_v53 = vpop.f32.mrf.mxu1 }
 0x1fb   : > { %4735 = vmatmul.msk.f32.gmra.mxu2 %vm366_vm2, %v671_v58 }
 0x1fc   : > { %v2027_v30 = vpop.f32.mrf.mxu2 }
 0x1fd   : > { %1937 = vmatmul.f32.gmra.mxu1 %v1626_v19  ;;  %v7019_v19 = vpop.permute.xlu1 %5262 }
 0x202   : > { %v6996_v31 = vpop.f32.mrf.mxu1 }
 0x203   : > { %4736 = vmatmul.msk.f32.gmra.mxu2 %vm366_vm2, %v672_v22 }
 0x205   : > { %1940 = vmatmul.f32.gmra.mxu1 %v1627_v12  ;;  %v1598_v12 = vsel %vm1488_vm3, %v1566_v28, %v5245_v49  ;;  %v5278_v58 = vpop.permute.xlu1 %5277  ;;  %v5800_v49 = vld [vmem:[#allocation2 + $0xc9] sm:$0xff] }
 0x206   : > { %v1630_v35 = vsel %vm277_vm0, %v1598_v12, %v5270_v37  ;;  %v1568_v16 = vsel %vm366_vm2, %v5800_v49, %v5145_v9  ;;  %v5150_v9 = vunpack.i.h.bf16 %v6616_v14  ;;  %v5260_v49 = vunpack.i.h.bf16 %v6846_v62 }
 0x207   : > { %v1600_v28 = vsel %vm1488_vm3, %v1568_v16, %v5250_v23  ;;  %v7068_v23 = vld [vmem:[%s9039_s3] ss:$0 sm:$0xff] }
 0x20a   : > { %v7006_v0 = vpop.f32.mrf.mxu1 }
 0x20b   : > { %4737 = vmatmul.msk.f32.gmra.mxu2 %vm366_vm2, %v673_v13  ;;  %v543_v13 = vld [vmem:[#allocation2 + $0xd9] sm:$0xff] }
 0x20c   : > { %v1569_v59 = vsel %vm366_vm2, %v543_v13, %v5149_v56  ;;  %v7077_v13 = vpop.f32.mrf.mxu0 }
 0x20d   : > { %1943 = vmatmul.f32.gmra.mxu1 %v1628_v32  ;;  %v5279_v32 = vunpack.i.l.bf16 %v5278_v58  ;;  %v5293_v12 = vpop.permute.xlu1 %5292 }
 0x20f   : > { %v1631_v48 = vsel %vm277_vm0, %v1599_v50, %v5279_v32  ;;  %v1601_v50 = vsel %vm1488_vm3, %v1569_v59, %v5259_v45  ;;  %v5154_v59 = vunpack.i.l.bf16 %v6692_v57 }
 0x212   : > { %v7016_v5 = vpop.f32.mrf.mxu1 }
 0x215   : > { %1946 = vmatmul.f32.gmra.mxu1 %v1629_v20  ;;  %v5280_v20 = vunpack.i.h.bf16 %v5278_v58  ;;  %v5294_v58 = vunpack.i.l.bf16 %v5293_v12 }
 0x216   : > { %v7040_v22 = vpop.f32.mrf.mxu2 }
 0x217   : > { %v1632_v37 = vsel %vm277_vm0, %v1600_v28, %v5280_v20  ;;  %v544_v20 = vld [vmem:[#allocation2 + $0xe1] sm:$0xff]  ;;  %v5295_v28 = vunpack.i.h.bf16 %v5293_v12 }
 0x218   : > { %v1570_v14 = vsel %vm366_vm2, %v544_v20, %v5150_v9  ;;  %v5264_v9 = vunpack.i.l.bf16 %v7019_v19 }
 0x21a   : > { %v7027_v43 = vpop.f32.mrf.mxu1 }
 0x21d   : > { %1949 = vmatmul.f32.gmra.mxu1 %v1630_v35 }
 0x21e   : > { %v7050_v35 = vpop.f32.mrf.mxu2 }
 0x222   : > { %v7035_v17 = vpop.f32.mrf.mxu1 }
 0x225   : > { %1952 = vmatmul.f32.gmra.mxu1 %v1631_v48  ;;  %v1633_v48 = vsel %vm277_vm0, %v1601_v50, %v5294_v58  ;;  %v1602_v58 = vsel %vm1488_vm3, %v1570_v14, %v5260_v49  ;;  %v679_v50 = vld [vmem:[#allocation2 + $0x142] sm:$0xff] }
 0x226   : > { %v7074_v56 = vpop.f32.mrf.mxu2  ;;  %v1634_v62 = vsel %vm277_vm0, %v1602_v58, %v5295_v28  ;;  %v2289_v49 = vld [vmem:[#allocation2 + $0x9] sm:$0xff] }
 0x22a   : > { %v7045_v42 = vpop.f32.mrf.mxu1 }
 0x22d   : > { %1955 = vmatmul.f32.gmra.mxu1 %v1632_v37 }
 0x232   : > { %v1911_v32 = vpop.f32.mrf.mxu1 }
 0x233   : > { %v1912_v26 = vadd.f32 %v1911_v32, %v1798_v34  ;;  %v678_v34 = vld [vmem:[#allocation2 + $0x13a] sm:$0xff]  ;;  %v5308_v32 = vpop.permute.xlu1 %5307 }
 0x234   : > { %4742 = vmatmul.msk.f32.gmra.mxu3 %vm366_vm2, %v678_v34 }
 0x235   : > { %v2025_v33 = vadd.f32 %v2024_v38, %v1912_v26  ;;  %1958 = vmatmul.f32.gmra.mxu1 %v1633_v48  ;;  %v545_v26 = vld [vmem:[#allocation2 + $0xf1] sm:$0xff] }
 0x237   : > { %v2124_v16 = vmul.f32 %v7060_v1, %v2025_v33  ;;  %v1571_v33 = vsel %vm366_vm2, %v545_v26, %v5154_v59 }
 0x238   : > { %v1603_v14 = vsel %vm1488_vm3, %v1571_v33, %v5264_v9 }
 0x239   : > { %v2160_v38 = vadd.f32 %v7068_v23, %v2124_v16  ;;  %v7088_v16 = vpop.f32.mrf.mxu2 }
 0x23a   : > { %v1914_v37 = vpop.f32.mrf.mxu1 }
 0x23b   : > { %v2192_v51 = vmax.f32 %v2160_v38, 0.0  ;;  %v1915_v45 = vadd.f32 %v1914_v37, %v1801_v7  ;;  %v5309_v7 = vunpack.i.l.bf16 %v5308_v32  ;;  %v5155_v38 = vunpack.i.h.bf16 %v6692_v57 }
 0x23c   : > { %4743 = vmatmul.msk.f32.gmra.mxu3 %vm366_vm2, %v679_v50  ;;  %v5310_v57 = vunpack.i.h.bf16 %v5308_v32 }
 0x23d   : > { %2224 = vst.msk [vmem:[#allocation2 + $0x19] sm:$0xff] %vm277_vm0, %v2192_v51  ;;  %v2028_v12 = vadd.f32 %v2027_v30, %v1915_v45  ;;  %1961 = vmatmul.f32.gmra.mxu1 %v1634_v62  ;;  %v1635_v37 = vsel %vm277_vm0, %v1603_v14, %v5309_v7  ;;  %v7093_v45 = vpop.f32.mrf.mxu0  ;;  %v546_v62 = vld [vmem:[#allocation2 + $0xf9] sm:$0xff]  ;;  %v5318_v14 = vpop.permute.xlu0 %5317 }
 0x23e   : > { %v1572_v50 = vsel %vm366_vm2, %v546_v62, %v5155_v38 }
 0x23f   : > { %v2125_v48 = vmul.f32 %v7060_v1, %v2028_v12  ;;  %v680_v12 = vld [vmem:[#allocation2 + $0x152] sm:$0xff] }
 0x241   : > { %v2161_v20 = vadd.f32 %v7068_v23, %v2125_v48 }
 0x242   : > { %v1917_v34 = vpop.f32.mrf.mxu1 }
 0x243   : > { %v2193_v28 = vmax.f32 %v2161_v20, 0.0  ;;  %v1918_v30 = vadd.f32 %v1917_v34, %v1804_v29  ;;  %v5265_v29 = vunpack.i.h.bf16 %v7019_v19  ;;  %v5159_v34 = vunpack.i.l.bf16 %v6790_v3 }
 0x244   : > { %v2290_v51 = vld [vmem:[#allocation2 + $0x19] sm:$0xff]  ;;  %4744 = vmatmul.msk.f32.gmra.mxu3 %vm366_vm2, %v680_v12  ;;  %v5274_v12 = vunpack.i.l.bf16 %v6857_v21 }
 0x245   : > { %2225 = vst.msk [vmem:[#allocation2 + $0x21] sm:$0xff] %vm277_vm0, %v2193_v28  ;;  %v2031_v58 = vadd.f32 %v7040_v22, %v1918_v30  ;;  %1964 = vmatmul.f32.gmra.mxu1 %v1635_v37  ;;  %v5336_v59 = vpack.i.bf16 %v2290_v51, %v2289_v49  ;;  %v1604_v33 = vsel %vm1488_vm3, %v1572_v50, %v5265_v29  ;;  %v7105_v20 = vld [vmem:[#allocation2 + $0x18] sm:$0xff]  ;;  %v7111_v30 = vpop.f32.mrf.mxu2  ;;  %v7120_v29 = vpop.f32.mrf.mxu0 }
 0x246   : > { %v1636_v19 = vsel %vm277_vm0, %v1604_v33, %v5310_v57 }
 0x247   : > { %v2126_v26 = vmul.f32 %v7060_v1, %v2031_v58  ;;  %5337 = vrot.lane.b32.xlu1 %v5336_v59, %s5877_s20  ;;  %v547_v58 = vld [vmem:[#allocation2 + $0x109] sm:$0xff]  ;;  %v681_v59 = vld [vmem:[#allocation2 + $0x15a] sm:$0xff] }
 0x248   : > { %v1573_v57 = vsel %vm366_vm2, %v547_v58, %v5159_v34 }
 0x249   : > { %v2162_v9 = vadd.f32 %v7068_v23, %v2126_v26 }
 0x24a   : > { %v1920_v48 = vpop.f32.mrf.mxu1 }
 0x24b   : > { %v2194_v7 = vmax.f32 %v2162_v9, 0.0  ;;  %v1921_v22 = vadd.f32 %v1920_v48, %v7055_v60 }
 0x24c   : > { %v7109_v49 = vld [vmem:[#allocation2 + $0x20] sm:$0xff]  ;;  %4745 = vmatmul.msk.f32.gmra.mxu3 %vm366_vm2, %v681_v59 }
 0x24d   : > { %v2322_v28 = vld [vmem:[#allocation2 + $0x1a] sm:$0xff]  ;;  %v2323_v32 = vld [vmem:[#allocation2 + $0x22] sm:$0xff]  ;;  %2226 = vst.msk [vmem:[#allocation2 + $0x31] sm:$0xff] %vm277_vm0, %v2194_v7  ;;  %v2034_v38 = vadd.f32 %v7050_v35, %v1921_v22  ;;  %1967 = vmatmul.f32.gmra.mxu1 %v1636_v19  ;;  %v5341_v60 = vpack.i.bf16 %v7109_v49, %v7105_v20  ;;  %v5319_v35 = vunpack.i.l.bf16 %v5318_v14  ;;  %v1605_v7 = vsel %vm1488_vm3, %v1573_v57, %v5274_v12  ;;  %v7142_v58 = vpop.f32.mrf.mxu0 }
 0x24e   : > { %v5346_v37 = vpack.i.bf16 %v2323_v32, %v2322_v28  ;;  %v2291_v51 = vld [vmem:[#allocation2 + $0x21] sm:$0xff]  ;;  %v5160_v22 = vunpack.i.h.bf16 %v6790_v3  ;;  %v548_v32 = vld [vmem:[#allocation2 + $0x111] sm:$0xff] }
 0x24f   : > { %v5351_v62 = vpack.i.bf16 %v6821_v8, %v2291_v51  ;;  %v2127_v26 = vmul.f32 %v7060_v1, %v2034_v38  ;;  %5342 = vrot.lane.b32.xlu2 %v5341_v60, %s5875_s13  ;;  %v1637_v33 = vsel %vm277_vm0, %v1605_v7, %v5319_v35  ;;  %v682_v38 = vld [vmem:[#allocation2 + $0x16a] sm:$0xff]  ;;  %v7135_v60 = vpop.f32.mrf.mxu2 }
 0x250   : > { %5347 = vrot.lane.b32.xlu0 %v5346_v37, %s5876_s19  ;;  %v5320_v37 = vunpack.i.h.bf16 %v5318_v14  ;;  %v1574_v51 = vsel %vm366_vm2, %v548_v32, %v5160_v22  ;;  %v549_v22 = vld [vmem:[#allocation2 + $0x121] sm:$0xff] }
 0x251   : > { %5352 = vrot.lane.b32.xlu1 %v5351_v62, %s5877_s20  ;;  %v2163_v50 = vadd.f32 %v7068_v23, %v2127_v26 }
 0x252   : > { %v1923_v8 = vpop.f32.mrf.mxu1 }
 0x253   : > { %v2195_v9 = vmax.f32 %v2163_v50, 0.0  ;;  %v1924_v48 = vadd.f32 %v1923_v8, %v7077_v13  ;;  %v5275_v13 = vunpack.i.h.bf16 %v6857_v21  ;;  %v5164_v21 = vunpack.i.l.bf16 %v6640_v15  ;;  %v7153_v8 = vpop.permute.xlu1 %5322 }
 0x254   : > { %v2292_v19 = vld [vmem:[#allocation2 + $0x31] sm:$0xff]  ;;  %4746 = vmatmul.msk.f32.gmra.mxu3 %vm366_vm2, %v682_v38 }
 0x255   : > { %2227 = vst.msk [vmem:[#allocation2 + $0x39] sm:$0xff] %vm277_vm0, %v2195_v9  ;;  %v2037_v28 = vadd.f32 %v7074_v56, %v1924_v48  ;;  %1970 = vmatmul.f32.gmra.mxu1 %v1637_v33  ;;  %v5356_v34 = vpack.i.bf16 %v6889_v40, %v2292_v19  ;;  %v1606_v12 = vsel %vm1488_vm3, %v1574_v51, %v5275_v13  ;;  %v7147_v26 = vld [vmem:[#allocation2 + $0x30] sm:$0xff] }
 0x256   : > { %v1638_v35 = vsel %vm277_vm0, %v1606_v12, %v5320_v37  ;;  %v683_v33 = vld [vmem:[#allocation2 + $0x172] sm:$0xff]  ;;  %v1575_v32 = vsel %vm366_vm2, %v549_v22, %v5164_v21  ;;  %v7171_v37 = vpop.f32.mrf.mxu0 }
 0x257   : > { %v2128_v3 = vmul.f32 %v7060_v1, %v2037_v28  ;;  %5357 = vrot.lane.b32.xlu2 %v5356_v34, %s5877_s20  ;;  %v5284_v28 = vunpack.i.l.bf16 %v6807_v11  ;;  %v7168_v38 = vpop.f32.mrf.mxu2  ;;  %v3518_v22 = vld [vmem:[%s9040_s4 + $0x70] sm:$0xff] }
 0x259   : > { %v2164_v56 = vadd.f32 %v7068_v23, %v2128_v3  ;;  %v652_v3 = vld [vmem:[#allocation2 + $0x181] sm:$0xff] }
 0x25a   : > { %v1926_v40 = vpop.f32.mrf.mxu1 }
 0x25b   : > { %v2196_v59 = vmax.f32 %v2164_v56, 0.0  ;;  %v1927_v62 = vadd.f32 %v1926_v40, %v7093_v45  ;;  %v1607_v40 = vsel %vm1488_vm3, %v1575_v32, %v5284_v28 }
 0x25c   : > { %v7151_v57 = vld [vmem:[#allocation2 + $0x38] sm:$0xff]  ;;  %4747 = vmatmul.msk.f32.gmra.mxu3 %vm366_vm2, %v683_v33 }
 0x25d   : > { %v2324_v14 = vld [vmem:[#allocation2 + $0x32] sm:$0xff]  ;;  %v2325_v50 = vld [vmem:[#allocation2 + $0x3a] sm:$0xff]  ;;  %2228 = vst.msk [vmem:[#allocation2 + $0x49] sm:$0xff] %vm277_vm0, %v2196_v59  ;;  %v2040_v9 = vadd.f32 %v7088_v16, %v1927_v62  ;;  %1973 = vmatmul.f32.gmra.mxu1 %v1638_v35  ;;  %v5361_v45 = vpack.i.bf16 %v7151_v57, %v7147_v26  ;;  %v5324_v16 = vunpack.i.l.bf16 %v7153_v8  ;;  %v5165_v59 = vunpack.i.h.bf16 %v6640_v15 }
 0x25e   : > { %v5366_v48 = vpack.i.bf16 %v2325_v50, %v2324_v14  ;;  %v2293_v7 = vld [vmem:[#allocation2 + $0x39] sm:$0xff]  ;;  %v550_v14 = vld [vmem:[#allocation2 + $0x129] sm:$0xff] }
 0x25f   : > { %v5371_v19 = vpack.i.bf16 %v6891_v54, %v2293_v7  ;;  %v2129_v34 = vmul.f32 %v7060_v1, %v2040_v9  ;;  %5362 = vrot.lane.b32.xlu0 %v5361_v45, %s5875_s13  ;;  %v1639_v62 = vsel %vm277_vm0, %v1607_v40, %v5324_v16  ;;  %v3535_v50 = vld [vmem:[%s9040_s4 + $0xf8] sm:$0xff]  ;;  %v684_v9 = vld [vmem:[#allocation2 + $0x182] sm:$0xff]  ;;  %v3534_v7 = vld [vmem:[%s9040_s4 + $0xf0] sm:$0xff]  ;;  %v7199_v28 = vpop.f32.mrf.mxu2 }
 0x260   : > { %5367 = vrot.lane.b32.xlu1 %v5366_v48, %s5876_s19  ;;  %3821 = vmatpush.msrb.mxu2 %v3535_v50  ;;  %v3519_v15 = vld [vmem:[%s9040_s4 + $0x78] sm:$0xff]  ;;  %v1576_v48 = vsel %vm366_vm2, %v550_v14, %v5165_v59 }
 0x261   : > { %5372 = vrot.lane.b32.xlu2 %v5371_v19, %s5877_s20  ;;  %v2165_v54 = vadd.f32 %v7068_v23, %v2129_v34  ;;  %3708 = vmatpush.msrb.mxu3 %v3519_v15  ;;  %v3533_v34 = vld [vmem:[%s9040_s4 + $0xe8] sm:$0xff] }
 0x262   : > { %v1929_v13 = vpop.f32.mrf.mxu1  ;;  %3822 = vmatpush.msrb.mxu2 %v3534_v7  ;;  %v3551_v7 = vld [vmem:[%s9040_s4 + $0x178] sm:$0xff] }
 0x263   : > { %v2197_v51 = vmax.f32 %v2165_v54, 0.0  ;;  %v1930_v56 = vadd.f32 %v1929_v13, %v7120_v29  ;;  %v5285_v29 = vunpack.i.h.bf16 %v6807_v11  ;;  %3709 = vmatpush.msrb.mxu3 %v3518_v22  ;;  %v5169_v11 = vunpack.i.l.bf16 %v6713_v18  ;;  %v551_v18 = vld [vmem:[#allocation2 + $0x139] sm:$0xff]  ;;  %3934 = vmatpush.msrb.mxu0 %v3551_v7 }
 0x264   : > { %v2294_v12 = vld [vmem:[#allocation2 + $0x49] sm:$0xff]  ;;  %4748 = vmatmul.msk.f32.gmra.mxu3 %vm366_vm2, %v684_v9  ;;  %3823 = vmatpush.msrb.mxu2 %v3533_v34  ;;  %v3516_v9 = vld [vmem:[%s9040_s4 + $0x60] sm:$0xff] }
 0x265   : > { %2229 = vst.msk [vmem:[#allocation2 + $0x51] sm:$0xff] %vm277_vm0, %v2197_v51  ;;  %v2043_v21 = vadd.f32 %v7111_v30, %v1930_v56  ;;  %1976 = vmatmul.f32.gmra.mxu1 %v1639_v62  ;;  %v5376_v35 = vpack.i.bf16 %v652_v3, %v2294_v12  ;;  %v5325_v30 = vunpack.i.h.bf16 %v7153_v8  ;;  %v3517_v8 = vld [vmem:[%s9040_s4 + $0x68] sm:$0xff]  ;;  %v1608_v54 = vsel %vm1488_vm3, %v1576_v48, %v5285_v29  ;;  %v7215_v12 = vpop.permute.xlu2 %5327  ;;  %v3550_v34 = vld [vmem:[%s9040_s4 + $0x170] sm:$0xff] }
 0x266   : > { %v7209_v13 = vld [vmem:[#allocation2 + $0x48] sm:$0xff]  ;;  %3710 = vmatpush.msrb.mxu3 %v3517_v8  ;;  %v5289_v62 = vunpack.i.l.bf16 %v6875_v47  ;;  %v3532_v47 = vld [vmem:[%s9040_s4 + $0xe0] sm:$0xff]  ;;  %v1577_v29 = vsel %vm366_vm2, %v551_v18, %v5169_v11  ;;  %v5330_v22 = vunpack.i.h.bf16 %v7215_v12  ;;  %v3530_v11 = vld [vmem:[%s9040_s4 + $0xd0] sm:$0xff]  ;;  %3935 = vmatpush.msrb.mxu0 %v3550_v34 }
 0x267   : > { %v2130_v45 = vmul.f32 %v7060_v1, %v2043_v21  ;;  %5377 = vrot.lane.b32.xlu0 %v5376_v35, %s5877_s20  ;;  %v653_v3 = vld [vmem:[#allocation2 + $0x189] sm:$0xff]  ;;  %v1640_v51 = vsel %vm277_vm0, %v1608_v54, %v5325_v30  ;;  %v7217_v21 = vpop.f32.mrf.mxu0  ;;  %3824 = vmatpush.msrb.mxu2 %v3532_v47  ;;  %v3531_v30 = vld [vmem:[%s9040_s4 + $0xd8] sm:$0xff] }
 0x268   : > { %3711 = vmatpush.msrb.mxu3 %v3516_v9  ;;  %v1609_v8 = vsel %vm1488_vm3, %v1577_v29, %v5289_v62  ;;  %v3529_v18 = vld [vmem:[%s9040_s4 + $0xc8] sm:$0xff]  ;;  %v3512_v62 = vld [vmem:[%s9040_s4 + $0x40] sm:$0xff]  ;;  %v3527_v47 = vld [vmem:[%s9040_s4 + $0xb8] sm:$0xff] }
 0x269   : > { %v2166_v33 = vadd.f32 %v7068_v23, %v2130_v45  ;;  %v3515_v45 = vld [vmem:[%s9040_s4 + $0x58] sm:$0xff]  ;;  %3825 = vmatpush.msrb.mxu2 %v3531_v30 }
 0x26a   : > { %v1932_v19 = vpop.f32.mrf.mxu1  ;;  %3712 = vmatpush.msrb.mxu3 %v3515_v45  ;;  %v3526_v45 = vld [vmem:[%s9040_s4 + $0xb0] sm:$0xff] }
 0x26b   : > { %v2198_v16 = vmax.f32 %v2166_v33, 0.0  ;;  %v1933_v32 = vadd.f32 %v1932_v19, %v7142_v58  ;;  %v3514_v33 = vld [vmem:[%s9040_s4 + $0x50] sm:$0xff]  ;;  %3826 = vmatpush.msrb.mxu2 %v3530_v11  ;;  %v3509_v11 = vld [vmem:[%s9040_s4 + $0x28] sm:$0xff] }
 0x26c   : > { %v7212_v56 = vld [vmem:[#allocation2 + $0x50] sm:$0xff]  ;;  %3713 = vmatpush.msrb.mxu3 %v3514_v33 }
 0x26d   : > { %v2326_v40 = vld [vmem:[#allocation2 + $0x4a] sm:$0xff]  ;;  %v2327_v59 = vld [vmem:[#allocation2 + $0x52] sm:$0xff]  ;;  %2230 = vst.msk [vmem:[#allocation2 + $0x61] sm:$0xff] %vm277_vm0, %v2198_v16  ;;  %v2046_v58 = vadd.f32 %v7135_v60, %v1933_v32  ;;  %1979 = vmatmul.f32.gmra.mxu1 %v1640_v51  ;;  %v5381_v35 = vpack.i.bf16 %v7212_v56, %v7209_v13  ;;  %3827 = vmatpush.msrb.mxu2 %v3529_v18 }
 0x26e   : > { %v5386_v14 = vpack.i.bf16 %v2327_v59, %v2326_v40  ;;  %v2295_v50 = vld [vmem:[#allocation2 + $0x51] sm:$0xff]  ;;  %v3513_v32 = vld [vmem:[%s9040_s4 + $0x48] sm:$0xff]  ;;  %v1641_v40 = vsel %vm277_vm0, %v1609_v8, %v5330_v22  ;;  %v7267_v59 = vpop.f32.mrf.mxu2 }
 0x26f   : > { %v5391_v15 = vpack.i.bf16 %v653_v3, %v2295_v50  ;;  %v685_v60 = vld [vmem:[#allocation2 + $0x18a] sm:$0xff]  ;;  %v2131_v48 = vmul.f32 %v7060_v1, %v2046_v58  ;;  %5382 = vrot.lane.b32.xlu1 %v5381_v35, %s5875_s13  ;;  %3714 = vmatpush.msrb.mxu3 %v3513_v32  ;;  %v3528_v58 = vld [vmem:[%s9040_s4 + $0xc0] sm:$0xff]  ;;  %v7280_v50 = vpop.f32.mrf.mxu0 }
 0x270   : > { %5387 = vrot.lane.b32.xlu2 %v5386_v14, %s5876_s19  ;;  %4749 = vmatmul.msk.f32.gmra.mxu3 %vm366_vm2, %v685_v60  ;;  %v3549_v51 = vld [vmem:[%s9040_s4 + $0x168] sm:$0xff]  ;;  %v3548_v35 = vld [vmem:[%s9040_s4 + $0x160] sm:$0xff]  ;;  %v3510_v60 = vld [vmem:[%s9040_s4 + $0x30] sm:$0xff] }
 0x271   : > { %5392 = vrot.lane.b32.xlu0 %v5391_v15, %s5877_s20  ;;  %v2167_v19 = vadd.f32 %v7068_v23, %v2131_v48  ;;  %3936 = vmatpush.msrb.mxu0 %v3549_v51  ;;  %v686_v14 = vld [vmem:[#allocation2 + $0x19a] sm:$0xff]  ;;  %v3546_v48 = vld [vmem:[%s9040_s4 + $0x150] sm:$0xff]  ;;  %v3545_v51 = vld [vmem:[%s9040_s4 + $0x148] sm:$0xff] }
 0x272   : > { %v1935_v16 = vpop.f32.mrf.mxu1  ;;  %3715 = vmatpush.msrb.mxu3 %v3512_v62  ;;  %3828 = vmatpush.msrb.mxu2 %v3528_v58  ;;  %v3547_v15 = vld [vmem:[%s9040_s4 + $0x158] sm:$0xff] }
 0x273   : > { %v2199_v54 = vmax.f32 %v2167_v19, 0.0  ;;  %v1936_v3 = vadd.f32 %v1935_v16, %v7171_v37  ;;  %3937 = vmatpush.msrb.mxu0 %v3548_v35  ;;  %v3525_v19 = vld [vmem:[%s9040_s4 + $0xa8] sm:$0xff]  ;;  %v3544_v35 = vld [vmem:[%s9040_s4 + $0x140] sm:$0xff] }
 0x274   : > { %3829 = vmatpush.msrb.mxu2 %v3527_v47  ;;  %v7304_v33 = vld [vmem:[#allocation2 + $0x60] sm:$0xff] }
 0x275   : > { %2231 = vst.msk [vmem:[#allocation2 + $0x69] sm:$0xff] %vm277_vm0, %v2199_v54  ;;  %v2049_v37 = vadd.f32 %v7168_v38, %v1936_v3  ;;  %1982 = vmatmul.f32.gmra.mxu1 %v1641_v40  ;;  %v3511_v38 = vld [vmem:[%s9040_s4 + $0x38] sm:$0xff]  ;;  %3938 = vmatpush.msrb.mxu0 %v3547_v15  ;;  %v2296_v3 = vld [vmem:[#allocation2 + $0x61] sm:$0xff] }
 0x276   : > { %3716 = vmatpush.msrb.mxu3 %v3511_v38  ;;  %3830 = vmatpush.msrb.mxu2 %v3526_v45  ;;  %v7321_v62 = vpop.f32.mrf.mxu2  ;;  %v3523_v38 = vld [vmem:[%s9040_s4 + $0x98] sm:$0xff] }
 0x277   : > { %v2132_v9 = vmul.f32 %v7060_v1, %v2049_v37  ;;  %3939 = vmatpush.msrb.mxu0 %v3546_v48  ;;  %v3524_v37 = vld [vmem:[%s9040_s4 + $0xa0] sm:$0xff]  ;;  %v1831_v47 = vpop.f32.mrf.mxu0  ;;  %v3522_v48 = vld [vmem:[%s9040_s4 + $0x90] sm:$0xff] }
 0x278   : > { %4750 = vmatmul.msk.f32.gmra.mxu3 %vm366_vm2, %v686_v14  ;;  %3831 = vmatpush.msrb.mxu2 %v3525_v19  ;;  %v687_v14 = vld [vmem:[#allocation2 + $0x1a2] sm:$0xff]  ;;  %v654_v45 = vld [vmem:[#allocation2 + $0x199] sm:$0xff] }
 0x279   : > { %v2168_v29 = vadd.f32 %v7068_v23, %v2132_v9  ;;  %3717 = vmatpush.msrb.mxu3 %v3510_v60  ;;  %3940 = vmatpush.msrb.mxu0 %v3545_v51  ;;  %v3507_v9 = vld [vmem:[%s9040_s4 + $0x18] sm:$0xff]  ;;  %v3504_v51 = vld [vmem:[%s9040_s4] sm:$0xff] }
 0x27a   : > { %v1938_v30 = vpop.f32.mrf.mxu1  ;;  %3832 = vmatpush.msrb.mxu2 %v3524_v37 }
 0x27b   : > { %v2200_v7 = vmax.f32 %v2168_v29, 0.0  ;;  %v1939_v22 = vadd.f32 %v1938_v30, %v7217_v21  ;;  %3718 = vmatpush.msrb.mxu3 %v3509_v11  ;;  %v3543_v29 = vld [vmem:[%s9040_s4 + $0x138] sm:$0xff]  ;;  %3941 = vmatpush.msrb.mxu0 %v3544_v35  ;;  %v3506_v30 = vld [vmem:[%s9040_s4 + $0x10] sm:$0xff] }
 0x27c   : > { %v7312_v8 = vld [vmem:[#allocation2 + $0x68] sm:$0xff]  ;;  %3833 = vmatpush.msrb.mxu2 %v3523_v38 }
 0x27d   : > { %v2328_v34 = vld [vmem:[#allocation2 + $0x62] sm:$0xff]  ;;  %v2329_v16 = vld [vmem:[#allocation2 + $0x6a] sm:$0xff]  ;;  %2232 = vst.msk [vmem:[#allocation2 + $0x79] sm:$0xff] %vm277_vm0, %v2200_v7  ;;  %v2052_v21 = vadd.f32 %v7199_v28, %v1939_v22  ;;  %v5401_v32 = vpack.i.bf16 %v7312_v8, %v7304_v33  ;;  %v7353_v7 = vpop.permute.xlu0 %5332  ;;  %v5329_v22 = vunpack.i.l.bf16 %v7215_v12  ;;  %3942 = vmatpush.msrb.mxu0 %v3543_v29 }
 0x27e   : > { %v5406_v54 = vpack.i.bf16 %v2329_v16, %v2328_v34  ;;  %v2297_v18 = vld [vmem:[#allocation2 + $0x69] sm:$0xff]  ;;  %v3508_v28 = vld [vmem:[%s9040_s4 + $0x20] sm:$0xff]  ;;  %3834 = vmatpush.msrb.mxu2 %v3522_v48 }
 0x27f   : > { %v5396_v40 = vpack.i.bf16 %v2297_v18, %v2296_v3  ;;  %v2133_v58 = vmul.f32 %v7060_v1, %v2052_v21  ;;  %5402 = vrot.lane.b32.xlu2 %v5401_v32, %s5875_s13  ;;  %3719 = vmatpush.msrb.mxu3 %v3508_v28  ;;  %v3542_v34 = vld [vmem:[%s9040_s4 + $0x130] sm:$0xff]  ;;  %v5334_v21 = vunpack.i.l.bf16 %v7353_v7  ;;  %v3505_v32 = vld [vmem:[%s9040_s4 + $0x8] sm:$0xff]  ;;  %v2256_v18 = vld [vmem:[#allocation2] sm:$0xff]  ;;  %v1834_v48 = vpop.f32.mrf.mxu0 }
 0x280   : > { %5407 = vrot.lane.b32.xlu0 %v5406_v54, %s5876_s19  ;;  %4751 = vmatmul.msk.f32.gmra.mxu3 %vm366_vm2, %v687_v14  ;;  %v3521_v12 = vld [vmem:[%s9040_s4 + $0x88] sm:$0xff]  ;;  %v3312_v37 = vsel %vm277_vm0, %v2256_v18, %v5329_v22 }
 0x281   : > { %5397 = vrot.lane.b32.xlu1 %v5396_v40, %s5877_s20  ;;  %v2169_v15 = vadd.f32 %v7068_v23, %v2133_v58  ;;  %3720 = vmatpush.msrb.mxu3 %v3507_v9  ;;  %v3541_v3 = vld [vmem:[%s9040_s4 + $0x128] sm:$0xff]  ;;  %v3520_v40 = vld [vmem:[%s9040_s4 + $0x80] sm:$0xff]  ;;  %v2060_v58 = vpop.f32.mrf.mxu2  ;;  %v3344_v35 = vsel %vm1488_vm3, %v5329_v22, %v5334_v21  ;;  %v3539_v9 = vld [vmem:[%s9040_s4 + $0x118] sm:$0xff] }
 0x282   : > { %v1941_v60 = vpop.f32.mrf.mxu1  ;;  %3943 = vmatpush.msrb.mxu0 %v3542_v34  ;;  %3835 = vmatpush.msrb.mxu2 %v3521_v12 }
 0x283   : > { %v2201_v11 = vmax.f32 %v2169_v15, 0.0  ;;  %v1942_v19 = vadd.f32 %v1941_v60, %v7280_v50  ;;  %3721 = vmatpush.msrb.mxu3 %v3506_v30  ;;  %v3538_v30 = vld [vmem:[%s9040_s4 + $0x110] sm:$0xff] }
 0x284   : > { %v2298_v16 = vld [vmem:[#allocation2 + $0x79] sm:$0xff]  ;;  %3944 = vmatpush.msrb.mxu0 %v3541_v3  ;;  %3836 = vmatpush.msrb.mxu2 %v3520_v40 }
 0x285   : > { %2233 = vst.msk [vmem:[#allocation2 + $0x81] sm:$0xff] %vm277_vm0, %v2201_v11  ;;  %v2055_v50 = vadd.f32 %v7267_v59, %v1942_v19  ;;  %v5411_v54 = vpack.i.bf16 %v2298_v16, %v654_v45  ;;  %3722 = vmatpush.msrb.mxu3 %v3505_v32  ;;  %v3540_v59 = vld [vmem:[%s9040_s4 + $0x120] sm:$0xff]  ;;  %v7391_v60 = vld [vmem:[#allocation2 + $0x78] sm:$0xff]  ;;  %3837 = vmatmul.f32.vlgmr.msrb.gmra.mxu2 %v3344_v35 }
 0x286   : > { %3945 = vmatpush.msrb.mxu0 %v3540_v59  ;;  %v655_v45 = vld [vmem:[#allocation2 + $0x1a1] sm:$0xff] }
 0x287   : > { %v2134_v28 = vmul.f32 %v7060_v1, %v2055_v50  ;;  %3723 = vmatpush.msrb.mxu3 %v3504_v51  ;;  %v3537_v50 = vld [vmem:[%s9040_s4 + $0x108] sm:$0xff] }
 0x288   : > { %3724 = vmatmul.f32.vlgmr.msrb.gmra.mxu3 %v3312_v37  ;;  %3946 = vmatpush.msrb.mxu0 %v3539_v9  ;;  %v1837_v37 = vpop.f32.mrf.mxu0 }
 0x289   : > { %5412 = vrot.lane.b32.xlu1 %v5411_v54, %s5877_s20  ;;  %v2170_v14 = vadd.f32 %v7068_v23, %v2134_v28  ;;  %v2063_v51 = vpop.f32.mrf.mxu2 }
 0x28a   : > { %v1944_v38 = vpop.f32.mrf.mxu1  ;;  %3947 = vmatpush.msrb.mxu0 %v3538_v30 }
 0x28b   : > { %v2202_v15 = vmax.f32 %v2170_v14, 0.0  ;;  %v1945_v29 = vadd.f32 %v1944_v38, %v1831_v47 }
 0x28c   : > { %v7396_v22 = vld [vmem:[#allocation2 + $0x80] sm:$0xff]  ;;  %3948 = vmatpush.msrb.mxu0 %v3537_v50 }
 0x28d   : > { %v2330_v11 = vld [vmem:[#allocation2 + $0x7a] sm:$0xff]  ;;  %v2331_v19 = vld [vmem:[#allocation2 + $0x82] sm:$0xff]  ;;  %2234 = vst.msk [vmem:[#allocation2 + $0x91] sm:$0xff] %vm277_vm0, %v2202_v15  ;;  %v2058_v34 = vadd.f32 %v7321_v62, %v1945_v29  ;;  %v5421_v47 = vpack.i.bf16 %v7396_v22, %v7391_v60 }
 0x28e   : > { %v5426_v16 = vpack.i.bf16 %v2331_v19, %v2330_v11  ;;  %v2299_v32 = vld [vmem:[#allocation2 + $0x81] sm:$0xff] }
 0x28f   : > { %v5416_v12 = vpack.i.bf16 %v2299_v32, %v655_v45  ;;  %v2135_v54 = vmul.f32 %v7060_v1, %v2058_v34  ;;  %5422 = vrot.lane.b32.xlu0 %v5421_v47, %s5875_s13  ;;  %v3536_v62 = vld [vmem:[%s9040_s4 + $0x100] sm:$0xff] }
 0x290   : > { %3949 = vmatpush.msrb.mxu0 %v3536_v62  ;;  %v1840_v50 = vpop.f32.mrf.mxu0 }
 0x291   : > { %5427 = vrot.lane.b32.xlu1 %v5426_v16, %s5876_s19  ;;  %5417 = vrot.lane.b32.xlu2 %v5416_v12, %s5877_s20  ;;  %v2171_v3 = vadd.f32 %v7068_v23, %v2135_v54  ;;  %v2066_v19 = vpop.f32.mrf.mxu2 }
 0x292   : > { %v1947_v18 = vpop.f32.mrf.mxu1 }
 0x293   : > { %v2203_v40 = vmax.f32 %v2171_v3, 0.0  ;;  %v1948_v28 = vadd.f32 %v1947_v18, %v1834_v48 }
 0x294   : > { %v7416_v29 = vld [vmem:[#allocation2 + $0x90] sm:$0xff] }
 0x295   : > { %2235 = vst.msk [vmem:[#allocation2 + $0x99] sm:$0xff] %vm277_vm0, %v2203_v40  ;;  %v2061_v59 = vadd.f32 %v2060_v58, %v1948_v28  ;;  %v2300_v47 = vld [vmem:[#allocation2 + $0x91] sm:$0xff] }
 0x297   : > { %v2136_v35 = vmul.f32 %v7060_v1, %v2061_v59 }
 0x299   : > { %v2172_v14 = vadd.f32 %v7068_v23, %v2136_v35  ;;  %v2069_v40 = vpop.f32.mrf.mxu2  ;;  %v1843_v35 = vpop.f32.mrf.mxu0 }
 0x29a   : > { %v1950_v9 = vpop.f32.mrf.mxu1 }
 0x29b   : > { %v2204_v38 = vmax.f32 %v2172_v14, 0.0  ;;  %v1951_v15 = vadd.f32 %v1950_v9, %v1837_v37 }
 0x29c   : > { %v7418_v45 = vld [vmem:[#allocation2 + $0x98] sm:$0xff] }
 0x29d   : > { %v2332_v30 = vld [vmem:[#allocation2 + $0x92] sm:$0xff]  ;;  %v2333_v11 = vld [vmem:[#allocation2 + $0x9a] sm:$0xff]  ;;  %2236 = vst.msk [vmem:[#allocation2 + $0xa9] sm:$0xff] %vm277_vm0, %v2204_v38  ;;  %v2064_v48 = vadd.f32 %v2063_v51, %v1951_v15  ;;  %v5436_v58 = vpack.i.bf16 %v7418_v45, %v7416_v29 }
 0x29e   : > { %v5441_v34 = vpack.i.bf16 %v2333_v11, %v2332_v30  ;;  %v2301_v16 = vld [vmem:[#allocation2 + $0x99] sm:$0xff]  ;;  %v7433_v11 = vpop.f32.mrf.mxu3 }
 0x29f   : > { %v5431_v32 = vpack.i.bf16 %v2301_v16, %v2300_v47  ;;  %v2137_v12 = vmul.f32 %v7060_v1, %v2064_v48  ;;  %5437 = vrot.lane.b32.xlu0 %v5436_v58, %s5875_s13 }
 0x2a0   : > { %5442 = vrot.lane.b32.xlu1 %v5441_v34, %s5876_s19 }
 0x2a1   : > { %5432 = vrot.lane.b32.xlu2 %v5431_v32, %s5877_s20  ;;  %v2173_v54 = vadd.f32 %v7068_v23, %v2137_v12 }
 0x2a2   : > { %v1953_v62 = vpop.f32.mrf.mxu1 }
 0x2a3   : > { %v2205_v3 = vmax.f32 %v2173_v54, 0.0  ;;  %v1954_v18 = vadd.f32 %v1953_v62, %v1840_v50 }
 0x2a4   : > { %v7431_v30 = vld [vmem:[#allocation2 + $0xa8] sm:$0xff] }
 0x2a5   : > { %2237 = vst.msk [vmem:[#allocation2 + $0xb1] sm:$0xff] %vm277_vm0, %v2205_v3  ;;  %v2067_v51 = vadd.f32 %v2066_v19, %v1954_v18  ;;  %v2302_v12 = vld [vmem:[#allocation2 + $0xa9] sm:$0xff]  ;;  %v2072_v18 = vpop.f32.mrf.mxu2 }
 0x2a7   : > { %v2138_v28 = vmul.f32 %v7060_v1, %v2067_v51 }
 0x2a9   : > { %v2174_v59 = vadd.f32 %v7068_v23, %v2138_v28  ;;  %v5343_v37 = vpop.permute.xlu2 %5342 }
 0x2aa   : > { %v5344_v14 = vunpack.i.l.bf16 %v5343_v37  ;;  %v1956_v9 = vpop.f32.mrf.mxu1  ;;  %v5345_v3 = vunpack.i.h.bf16 %v5343_v37 }
 0x2ab   : > { %v2206_v38 = vmax.f32 %v2174_v59, 0.0  ;;  %v1957_v15 = vadd.f32 %v1956_v9, %v1843_v35  ;;  %v7452_v9 = vpop.f32.mrf.mxu3 }
 0x2ac   : > { %v3376_v48 = vsel %vm366_vm2, %v5334_v21, %v5344_v14  ;;  %v7438_v19 = vld [vmem:[#allocation2 + $0xb0] sm:$0xff]  ;;  %v5335_v21 = vunpack.i.h.bf16 %v7353_v7 }
 0x2ad   : > { %v2334_v58 = vld [vmem:[#allocation2 + $0xaa] sm:$0xff]  ;;  %v2335_v34 = vld [vmem:[#allocation2 + $0xb2] sm:$0xff]  ;;  %2238 = vst.msk [vmem:[#allocation2 + $0xc1] sm:$0xff] %vm277_vm0, %v2206_v38  ;;  %v2070_v47 = vadd.f32 %v2069_v40, %v1957_v15  ;;  %3950 = vmatmul.f32.vlgmr.msrb.gmra.mxu0 %v3376_v48  ;;  %v5451_v16 = vpack.i.bf16 %v7438_v19, %v7431_v30 }
 0x2ae   : > { %v5456_v32 = vpack.i.bf16 %v2335_v34, %v2334_v58  ;;  %v2303_v50 = vld [vmem:[#allocation2 + $0xb1] sm:$0xff]  ;;  %v3377_v35 = vsel %vm366_vm2, %v5335_v21, %v5345_v3  ;;  %v2257_v15 = vld [vmem:[#allocation2 + $0x8] sm:$0xff]  ;;  %v2075_v34 = vpop.f32.mrf.mxu2 }
 0x2af   : > { %v5446_v54 = vpack.i.bf16 %v2303_v50, %v2302_v12  ;;  %v2139_v62 = vmul.f32 %v7060_v1, %v2070_v47  ;;  %5452 = vrot.lane.b32.xlu0 %v5451_v16, %s5875_s13 }
 0x2b0   : > { %5457 = vrot.lane.b32.xlu1 %v5456_v32, %s5876_s19 }
 0x2b1   : > { %5447 = vrot.lane.b32.xlu2 %v5446_v54, %s5877_s20  ;;  %v2175_v51 = vadd.f32 %v7068_v23, %v2139_v62 }
 0x2b2   : > { %v1959_v40 = vpop.f32.mrf.mxu1 }
 0x2b3   : > { %v2207_v28 = vmax.f32 %v2175_v51, 0.0  ;;  %v1960_v59 = vadd.f32 %v1959_v40, %v6912_v41 }
 0x2b4   : > { %v7457_v16 = vld [vmem:[#allocation2 + $0xc0] sm:$0xff] }
 0x2b5   : > { %2239 = vst.msk [vmem:[#allocation2 + $0xc9] sm:$0xff] %vm277_vm0, %v2207_v28  ;;  %v2073_v14 = vadd.f32 %v2072_v18, %v1960_v59  ;;  %3953 = vmatmul.f32.gmra.mxu0 %v3377_v35 }
 0x2b7   : > { %v2140_v7 = vmul.f32 %v7060_v1, %v2073_v14 }
 0x2b9   : > { %v2176_v37 = vadd.f32 %v7068_v23, %v2140_v7  ;;  %v5338_v38 = vpop.permute.xlu1 %5337 }
 0x2ba   : > { %v5339_v48 = vunpack.i.l.bf16 %v5338_v38  ;;  %v1962_v58 = vpop.f32.mrf.mxu1  ;;  %v5340_v35 = vunpack.i.h.bf16 %v5338_v38 }
 0x2bb   : > { %v2208_v47 = vmax.f32 %v2176_v37, 0.0  ;;  %v1963_v41 = vadd.f32 %v1962_v58, %v6920_v4  ;;  %v2304_v4 = vld [vmem:[#allocation2 + $0xc1] sm:$0xff] }
 0x2bc   : > { %v3313_v32 = vsel %vm277_vm0, %v2257_v15, %v5339_v48  ;;  %v3345_v12 = vsel %vm1488_vm3, %v5339_v48, %v5335_v21  ;;  %v7461_v50 = vld [vmem:[#allocation2 + $0xc8] sm:$0xff]  ;;  %v7469_v21 = vpop.f32.mrf.mxu3 }
 0x2bd   : > { %v2336_v54 = vld [vmem:[#allocation2 + $0xc2] sm:$0xff]  ;;  %v2337_v62 = vld [vmem:[#allocation2 + $0xca] sm:$0xff]  ;;  %2240 = vst.msk [vmem:[#allocation2 + $0xd9] sm:$0xff] %vm277_vm0, %v2208_v47  ;;  %v2076_v3 = vadd.f32 %v2075_v34, %v1963_v41  ;;  %3727 = vmatmul.f32.gmra.mxu3 %v3313_v32  ;;  %3840 = vmatmul.f32.gmra.mxu2 %v3345_v12  ;;  %v5466_v18 = vpack.i.bf16 %v7461_v50, %v7457_v16  ;;  %v5358_v41 = vpop.permute.xlu2 %5357 }
 0x2be   : > { %v5471_v51 = vpack.i.bf16 %v2337_v62, %v2336_v54  ;;  %v2305_v40 = vld [vmem:[#allocation2 + $0xc9] sm:$0xff]  ;;  %v3314_v32 = vsel %vm277_vm0, %v7105_v20, %v5340_v35 }
 0x2bf   : > { %v5461_v28 = vpack.i.bf16 %v2305_v40, %v2304_v4  ;;  %v2141_v59 = vmul.f32 %v7060_v1, %v2076_v3  ;;  %5467 = vrot.lane.b32.xlu0 %v5466_v18, %s5875_s13  ;;  %v5360_v3 = vunpack.i.h.bf16 %v5358_v41 }
 0x2c0   : > { %5472 = vrot.lane.b32.xlu1 %v5471_v51, %s5876_s19 }
 0x2c1   : > { %5462 = vrot.lane.b32.xlu2 %v5461_v28, %s5877_s20  ;;  %v2177_v14 = vadd.f32 %v7068_v23, %v2141_v59 }
 0x2c2   : > { %v7473_v7 = vpop.permute.xlu0 %5347  ;;  %v1965_v48 = vpop.f32.mrf.mxu1 }
 0x2c3   : > { %v5349_v37 = vunpack.i.l.bf16 %v7473_v7  ;;  %v5353_v15 = vpop.permute.xlu1 %5352  ;;  %v2209_v58 = vmax.f32 %v2177_v14, 0.0  ;;  %v1966_v47 = vadd.f32 %v1965_v48, %v6928_v46  ;;  %v5350_v46 = vunpack.i.h.bf16 %v7473_v7 }
 0x2c4   : > { %v5355_v34 = vunpack.i.h.bf16 %v5353_v15  ;;  %v5354_v18 = vunpack.i.l.bf16 %v5353_v15  ;;  %v7487_v51 = vpop.f32.mrf.mxu3  ;;  %v7490_v28 = vld [vmem:[#allocation2 + $0xd8] sm:$0xff] }
 0x2c5   : > { %v3346_v38 = vsel %vm1488_vm3, %v5340_v35, %v5349_v37  ;;  %2241 = vst.msk [vmem:[#allocation2 + $0xe1] sm:$0xff] %vm277_vm0, %v2209_v58  ;;  %v2079_v12 = vadd.f32 %v7433_v11, %v1966_v47  ;;  %3730 = vmatmul.f32.gmra.mxu3 %v3314_v32  ;;  %v2306_v48 = vld [vmem:[#allocation2 + $0xd9] sm:$0xff]  ;;  %v5373_v58 = vpop.permute.xlu2 %5372 }
 0x2c6   : > { %v1642_v54 = vsel %vm277_vm0, %v6883_v39, %v5355_v34  ;;  %3843 = vmatmul.f32.gmra.mxu2 %v3346_v38  ;;  %v1643_v39 = vsel %vm277_vm0, %v6841_v55, %v5360_v3  ;;  %v3347_v59 = vsel %vm1488_vm3, %v5354_v18, %v5350_v46  ;;  %v7508_v47 = vld [vmem:[%s9038_s2] ss:$0 sm:$0xff]  ;;  %v5375_v38 = vunpack.i.h.bf16 %v5373_v58 }
 0x2c7   : > { %1985 = vmatmul.f32.gmra.mxu1 %v1642_v54  ;;  %v2142_v62 = vmul.f32 %v7060_v1, %v2079_v12  ;;  %v3315_v1 = vsel %vm277_vm0, %v7109_v49, %v5354_v18  ;;  %v7517_v12 = vld [vmem:[%s9039_s3] ss:$0 sm:$0xff] }
 0x2c9   : > { %v2178_v20 = vadd.f32 %v7068_v23, %v2142_v62 }
 0x2ca   : > { %v1968_v4 = vpop.f32.mrf.mxu1 }
 0x2cb   : > { %v2210_v40 = vmax.f32 %v2178_v20, 0.0  ;;  %v1969_v11 = vadd.f32 %v1968_v4, %v6936_v44 }
 0x2cc   : > { %v7499_v35 = vld [vmem:[#allocation2 + $0xe0] sm:$0xff] }
 0x2cd   : > { %v2338_v23 = vld [vmem:[#allocation2 + $0xda] sm:$0xff]  ;;  %v2339_v14 = vld [vmem:[#allocation2 + $0xe2] sm:$0xff]  ;;  %2242 = vst.msk [vmem:[#allocation2 + $0xf1] sm:$0xff] %vm277_vm0, %v2210_v40  ;;  %v2082_v44 = vadd.f32 %v7452_v9, %v1969_v11  ;;  %3733 = vmatmul.f32.gmra.mxu3 %v3315_v1  ;;  %v5481_v55 = vpack.i.bf16 %v7499_v35, %v7490_v28  ;;  %v5359_v9 = vunpack.i.l.bf16 %v5358_v41  ;;  %v2090_v11 = vpop.f32.mrf.mxu3 }
 0x2ce   : > { %3846 = vmatmul.f32.gmra.mxu2 %v3347_v59  ;;  %v5486_v15 = vpack.i.bf16 %v2339_v14, %v2338_v23  ;;  %v2307_v49 = vld [vmem:[#allocation2 + $0xe1] sm:$0xff]  ;;  %v1644_v14 = vsel %vm277_vm0, %v6844_v61, %v5375_v38 }
 0x2cf   : > { %1988 = vmatmul.f32.gmra.mxu1 %v1643_v39  ;;  %v5476_v34 = vpack.i.bf16 %v2307_v49, %v2306_v48  ;;  %v2143_v32 = vmul.f32 %v7508_v47, %v2082_v44  ;;  %5482 = vrot.lane.b32.xlu0 %v5481_v55, %s5875_s13  ;;  %v3316_v39 = vsel %vm277_vm0, %v7147_v26, %v5359_v9  ;;  %v5374_v26 = vunpack.i.l.bf16 %v5373_v58 }
 0x2d0   : > { %5487 = vrot.lane.b32.xlu1 %v5486_v15, %s5876_s19 }
 0x2d1   : > { %5477 = vrot.lane.b32.xlu2 %v5476_v34, %s5877_s20  ;;  %v2179_v54 = vadd.f32 %v7517_v12, %v2143_v32  ;;  %v5363_v62 = vpop.permute.xlu0 %5362 }
 0x2d2   : > { %v7520_v3 = vpop.permute.xlu1 %5367  ;;  %v5364_v18 = vunpack.i.l.bf16 %v5363_v62  ;;  %v1971_v4 = vpop.f32.mrf.mxu1  ;;  %v5365_v44 = vunpack.i.h.bf16 %v5363_v62 }
 0x2d3   : > { %v5369_v20 = vunpack.i.l.bf16 %v7520_v3  ;;  %v2211_v40 = vmax.f32 %v2179_v54, 0.0  ;;  %v1972_v41 = vadd.f32 %v1971_v4, %v6945_v27  ;;  %v5370_v55 = vunpack.i.h.bf16 %v7520_v3 }
 0x2d4   : > { %v3378_v59 = vsel %vm366_vm2, %v5349_v37, %v5364_v18  ;;  %v7538_v32 = vld [vmem:[#allocation2 + $0xf0] sm:$0xff]  ;;  %v3379_v38 = vsel %vm366_vm2, %v5350_v46, %v5365_v44  ;;  %v7556_v46 = vpop.permute.xlu2 %5387 }
 0x2d5   : > { %v3348_v1 = vsel %vm1488_vm3, %v5359_v9, %v5369_v20  ;;  %2243 = vst.msk [vmem:[#allocation2 + $0xf9] sm:$0xff] %vm277_vm0, %v2211_v40  ;;  %v2085_v23 = vadd.f32 %v7469_v21, %v1972_v41  ;;  %3736 = vmatmul.f32.gmra.mxu3 %v3316_v39  ;;  %3956 = vmatmul.f32.gmra.mxu0 %v3378_v59  ;;  %v2308_v4 = vld [vmem:[#allocation2 + $0xf1] sm:$0xff]  ;;  %v2093_v41 = vpop.f32.mrf.mxu3 }
 0x2d6   : > { %3849 = vmatmul.f32.gmra.mxu2 %v3348_v1  ;;  %v3317_v9 = vsel %vm277_vm0, %v7151_v57, %v5374_v26  ;;  %v3349_v58 = vsel %vm1488_vm3, %v5374_v26, %v5370_v55 }
 0x2d7   : > { %1991 = vmatmul.f32.gmra.mxu1 %v1644_v14  ;;  %v2144_v27 = vmul.f32 %v7508_v47, %v2085_v23  ;;  %v5389_v23 = vunpack.i.l.bf16 %v7556_v46 }
 0x2d9   : > { %v2180_v15 = vadd.f32 %v7517_v12, %v2144_v27  ;;  %v5378_v37 = vpop.permute.xlu0 %5377 }
 0x2da   : > { %v5380_v48 = vunpack.i.h.bf16 %v5378_v37  ;;  %v1974_v49 = vpop.f32.mrf.mxu1 }
 0x2db   : > { %v2212_v34 = vmax.f32 %v2180_v15, 0.0  ;;  %v1975_v21 = vadd.f32 %v1974_v49, %v6954_v6 }
 0x2dc   : > { %v1645_v61 = vsel %vm277_vm0, %v6904_v2, %v5380_v48  ;;  %v7550_v54 = vld [vmem:[#allocation2 + $0xf8] sm:$0xff]  ;;  %v5403_v3 = vpop.permute.xlu2 %5402 }
 0x2dd   : > { %v2340_v62 = vld [vmem:[#allocation2 + $0xf2] sm:$0xff]  ;;  %v2341_v6 = vld [vmem:[#allocation2 + $0xfa] sm:$0xff]  ;;  %2244 = vst.msk [vmem:[#allocation2 + $0x109] sm:$0xff] %vm277_vm0, %v2212_v34  ;;  %v2088_v18 = vadd.f32 %v7487_v51, %v1975_v21  ;;  %3739 = vmatmul.f32.gmra.mxu3 %v3317_v9  ;;  %v5496_v2 = vpack.i.bf16 %v7550_v54, %v7538_v32  ;;  %3959 = vmatmul.f32.gmra.mxu0 %v3379_v38  ;;  %v5379_v51 = vunpack.i.l.bf16 %v5378_v37 }
 0x2de   : > { %3852 = vmatmul.f32.gmra.mxu2 %v3349_v58  ;;  %v5501_v57 = vpack.i.bf16 %v2341_v6, %v2340_v62  ;;  %v2309_v40 = vld [vmem:[#allocation2 + $0xf9] sm:$0xff] }
 0x2df   : > { %1994 = vmatmul.f32.gmra.mxu1 %v1645_v61  ;;  %v5491_v7 = vpack.i.bf16 %v2309_v40, %v2308_v4  ;;  %v2145_v39 = vmul.f32 %v7508_v47, %v2088_v18  ;;  %5497 = vrot.lane.b32.xlu0 %v5496_v2, %s5875_s13  ;;  %v3318_v49 = vsel %vm277_vm0, %v7209_v13, %v5379_v51  ;;  %v2096_v13 = vpop.f32.mrf.mxu3  ;;  %v3583_v9 = vld [vmem:[%s9040_s4 + $0x278] sm:$0xff] }
 0x2e0   : > { %5502 = vrot.lane.b32.xlu1 %v5501_v57, %s5876_s19  ;;  %v3350_v37 = vsel %vm1488_vm3, %v5379_v51, %v5389_v23  ;;  %4160 = vmatpush.msra.mxu3 %v3583_v9 }
 0x2e1   : > { %5492 = vrot.lane.b32.xlu2 %v5491_v7, %s5877_s20  ;;  %v2181_v1 = vadd.f32 %v7517_v12, %v2145_v39  ;;  %v5383_v59 = vpop.permute.xlu1 %5382 }
 0x2e2   : > { %v5384_v14 = vunpack.i.l.bf16 %v5383_v59  ;;  %v1977_v26 = vpop.f32.mrf.mxu1  ;;  %v5385_v58 = vunpack.i.h.bf16 %v5383_v59 }
 0x2e3   : > { %v5393_v27 = vpop.permute.xlu0 %5392  ;;  %v2213_v44 = vmax.f32 %v2181_v1, 0.0  ;;  %v1978_v48 = vadd.f32 %v1977_v26, %v6962_v36 }
 0x2e4   : > { %v5395_v15 = vunpack.i.h.bf16 %v5393_v27  ;;  %v3380_v34 = vsel %vm366_vm2, %v5369_v20, %v5384_v14  ;;  %v5394_v38 = vunpack.i.l.bf16 %v5393_v27  ;;  %v7583_v18 = vld [vmem:[#allocation2 + $0x108] sm:$0xff]  ;;  %v3381_v4 = vsel %vm366_vm2, %v5370_v55, %v5385_v58  ;;  %v3567_v27 = vld [vmem:[%s9040_s4 + $0x1f8] sm:$0xff] }
 0x2e5   : > { %2245 = vst.msk [vmem:[#allocation2 + $0x111] sm:$0xff] %vm277_vm0, %v2213_v44  ;;  %v2091_v21 = vadd.f32 %v2090_v11, %v1978_v48  ;;  %3742 = vmatmul.f32.gmra.mxu3 %v3318_v49  ;;  %3962 = vmatmul.f32.gmra.mxu0 %v3380_v34  ;;  %v5390_v11 = vunpack.i.h.bf16 %v7556_v46  ;;  %v2310_v1 = vld [vmem:[#allocation2 + $0x109] sm:$0xff]  ;;  %v5404_v48 = vunpack.i.l.bf16 %v5403_v3 }
 0x2e6   : > { %v1646_v61 = vsel %vm277_vm0, %v6907_v25, %v5395_v15  ;;  %3855 = vmatmul.f32.gmra.mxu2 %v3350_v37  ;;  %v3319_v2 = vsel %vm277_vm0, %v7212_v56, %v5394_v38  ;;  %4047 = vmatpush.msra.mxu1 %v3567_v27 }
 0x2e7   : > { %1997 = vmatmul.f32.gmra.mxu1 %v1646_v61  ;;  %v2146_v36 = vmul.f32 %v7508_v47, %v2091_v21  ;;  %v3351_v57 = vsel %vm1488_vm3, %v5394_v38, %v5390_v11  ;;  %v7609_v44 = vpop.f32.mrf.mxu3 }
 0x2e9   : > { %v2182_v20 = vadd.f32 %v7517_v12, %v2146_v36 }
 0x2ea   : > { %v1980_v62 = vpop.f32.mrf.mxu1 }
 0x2eb   : > { %v2214_v25 = vmax.f32 %v2182_v20, 0.0  ;;  %v1981_v6 = vadd.f32 %v1980_v62, %v6970_v63  ;;  %v3382_v20 = vsel %vm366_vm2, %v5389_v23, %v5404_v48  ;;  %v5418_v27 = vpop.permute.xlu2 %5417 }
 0x2ec   : > { %v7593_v40 = vld [vmem:[#allocation2 + $0x110] sm:$0xff] }
 0x2ed   : > { %v2342_v7 = vld [vmem:[#allocation2 + $0x10a] sm:$0xff]  ;;  %v2343_v39 = vld [vmem:[#allocation2 + $0x112] sm:$0xff]  ;;  %2246 = vst.msk [vmem:[#allocation2 + $0x121] sm:$0xff] %vm277_vm0, %v2214_v25  ;;  %v2094_v63 = vadd.f32 %v2093_v41, %v1981_v6  ;;  %3745 = vmatmul.f32.gmra.mxu3 %v3319_v2  ;;  %v5511_v56 = vpack.i.bf16 %v7593_v40, %v7583_v18  ;;  %3965 = vmatmul.f32.gmra.mxu0 %v3381_v4  ;;  %v5405_v6 = vunpack.i.h.bf16 %v5403_v3 }
 0x2ee   : > { %3858 = vmatmul.f32.gmra.mxu2 %v3351_v57  ;;  %v5516_v51 = vpack.i.bf16 %v2343_v39, %v2342_v7  ;;  %v2311_v59 = vld [vmem:[#allocation2 + $0x111] sm:$0xff] }
 0x2ef   : > { %v5506_v14 = vpack.i.bf16 %v2311_v59, %v2310_v1  ;;  %v2147_v55 = vmul.f32 %v7508_v47, %v2094_v63  ;;  %5512 = vrot.lane.b32.xlu0 %v5511_v56, %s5875_s13  ;;  %v3599_v41 = vld [vmem:[%s9040_s4 + $0x2f8] sm:$0xff]  ;;  %v7633_v39 = vpop.f32.mrf.mxu3 }
 0x2f0   : > { %5517 = vrot.lane.b32.xlu1 %v5516_v51, %s5876_s19  ;;  %4273 = vmatpush.msra.mxu2 %v3599_v41 }
 0x2f1   : > { %5507 = vrot.lane.b32.xlu2 %v5506_v14, %s5877_s20  ;;  %v2183_v26 = vadd.f32 %v7517_v12, %v2147_v55 }
 0x2f2   : > { %v7611_v15 = vpop.permute.xlu0 %5407  ;;  %v1983_v34 = vpop.f32.mrf.mxu1 }
 0x2f3   : > { %v5409_v49 = vunpack.i.l.bf16 %v7611_v15  ;;  %v5398_v37 = vpop.permute.xlu1 %5397  ;;  %v2215_v21 = vmax.f32 %v2183_v26, 0.0  ;;  %v1984_v36 = vadd.f32 %v1983_v34, %v6979_v10  ;;  %v3611_v10 = vld [vmem:[%s9040_s4 + $0x358] sm:$0xff]  ;;  %v5410_v2 = vunpack.i.h.bf16 %v7611_v15 }
 0x2f4   : > { %v5399_v61 = vunpack.i.l.bf16 %v5398_v37  ;;  %4390 = vmatpush.msra.mxu0 %v3611_v10  ;;  %v7631_v7 = vld [vmem:[#allocation2 + $0x120] sm:$0xff]  ;;  %v3383_v15 = vsel %vm366_vm2, %v5390_v11, %v5405_v6 }
 0x2f5   : > { %2247 = vst.msk [vmem:[#allocation2 + $0x129] sm:$0xff] %vm277_vm0, %v2215_v21  ;;  %v2097_v9 = vadd.f32 %v2096_v13, %v1984_v36  ;;  %3968 = vmatmul.f32.gmra.mxu0 %v3382_v20  ;;  %v3582_v13 = vld [vmem:[%s9040_s4 + $0x270] sm:$0xff]  ;;  %v2312_v55 = vld [vmem:[#allocation2 + $0x121] sm:$0xff] }
 0x2f6   : > { %v3320_v58 = vsel %vm277_vm0, %v7304_v33, %v5399_v61  ;;  %v3352_v38 = vsel %vm1488_vm3, %v5399_v61, %v5409_v49  ;;  %4161 = vmatpush.msra.mxu3 %v3582_v13  ;;  %v5400_v33 = vunpack.i.h.bf16 %v5398_v37  ;;  %v5419_v37 = vunpack.i.l.bf16 %v5418_v27 }
 0x2f7   : > { %3748 = vmatmul.f32.gmra.mxu3 %v3320_v58  ;;  %3861 = vmatmul.f32.gmra.mxu2 %v3352_v38  ;;  %v2148_v62 = vmul.f32 %v7508_v47, %v2097_v9  ;;  %v7663_v20 = vpop.f32.mrf.mxu3 }
 0x2f8   : > { %v3321_v59 = vsel %vm277_vm0, %v7312_v8, %v5400_v33  ;;  %v3353_v26 = vsel %vm1488_vm3, %v5400_v33, %v5410_v2  ;;  %v3566_v8 = vld [vmem:[%s9040_s4 + $0x1f0] sm:$0xff]  ;;  %v1648_v9 = vsel %vm277_vm0, %v6868_v24, %v5419_v37  ;;  %v3596_v37 = vld [vmem:[%s9040_s4 + $0x2e0] sm:$0xff] }
 0x2f9   : > { %v2184_v25 = vadd.f32 %v7517_v12, %v2148_v62  ;;  %4048 = vmatpush.msra.mxu1 %v3566_v8  ;;  %v3581_v62 = vld [vmem:[%s9040_s4 + $0x268] sm:$0xff]  ;;  %v3610_v24 = vld [vmem:[%s9040_s4 + $0x350] sm:$0xff] }
 0x2fa   : > { %4162 = vmatpush.msra.mxu3 %v3581_v62  ;;  %4391 = vmatpush.msra.mxu0 %v3610_v24 }
 0x2fb   : > { %v5413_v23 = vpop.permute.xlu1 %5412  ;;  %v2216_v57 = vmax.f32 %v2184_v25, 0.0  ;;  %v5433_v33 = vpop.permute.xlu2 %5432 }
 0x2fc   : > { %v5414_v4 = vunpack.i.l.bf16 %v5413_v23  ;;  %v7635_v63 = vld [vmem:[#allocation2 + $0x128] sm:$0xff]  ;;  %v5415_v34 = vunpack.i.h.bf16 %v5413_v23 }
 0x2fd   : > { %v2344_v56 = vld [vmem:[#allocation2 + $0x122] sm:$0xff]  ;;  %v2345_v51 = vld [vmem:[#allocation2 + $0x12a] sm:$0xff]  ;;  %2248 = vst.msk [vmem:[#allocation2 + $0x139] sm:$0xff] %vm277_vm0, %v2216_v57  ;;  %v5526_v14 = vpack.i.bf16 %v7635_v63, %v7631_v7  ;;  %3971 = vmatmul.f32.gmra.mxu0 %v3383_v15 }
 0x2fe   : > { %v1647_v1 = vsel %vm277_vm0, %v6865_v52, %v5414_v4  ;;  %v5531_v3 = vpack.i.bf16 %v2345_v51, %v2344_v56  ;;  %v2313_v41 = vld [vmem:[#allocation2 + $0x129] sm:$0xff]  ;;  %v3322_v58 = vsel %vm277_vm0, %v7391_v60, %v5415_v34 }
 0x2ff   : > { %2000 = vmatmul.f32.gmra.mxu1 %v1647_v1  ;;  %3751 = vmatmul.f32.gmra.mxu3 %v3321_v59  ;;  %v5521_v48 = vpack.i.bf16 %v2313_v41, %v2312_v55  ;;  %v3598_v52 = vld [vmem:[%s9040_s4 + $0x2f0] sm:$0xff]  ;;  %v3597_v23 = vld [vmem:[%s9040_s4 + $0x2e8] sm:$0xff]  ;;  %v7681_v4 = vpop.f32.mrf.mxu3  ;;  %v3580_v55 = vld [vmem:[%s9040_s4 + $0x260] sm:$0xff]  ;;  %v5435_v41 = vunpack.i.h.bf16 %v5433_v33 }
 0x300   : > { %3864 = vmatmul.f32.gmra.mxu2 %v3353_v26  ;;  %5527 = vrot.lane.b32.xlu0 %v5526_v14, %s5875_s13  ;;  %v3565_v57 = vld [vmem:[%s9040_s4 + $0x1e8] sm:$0xff] }
 0x301   : > { %5532 = vrot.lane.b32.xlu1 %v5531_v3, %s5876_s19  ;;  %5522 = vrot.lane.b32.xlu2 %v5521_v48, %s5877_s20  ;;  %v5423_v46 = vpop.permute.xlu0 %5422  ;;  %v3325_v48 = vsel %vm277_vm0, %v7418_v45, %v5435_v41 }
 0x302   : > { %4274 = vmatpush.msra.mxu2 %v3598_v52  ;;  %v5424_v11 = vunpack.i.l.bf16 %v5423_v46  ;;  %v5425_v10 = vunpack.i.h.bf16 %v5423_v46  ;;  %4049 = vmatpush.msra.mxu1 %v3565_v57 }
 0x303   : > { %v5428_v21 = vpop.permute.xlu1 %5427  ;;  %4163 = vmatpush.msra.mxu3 %v3580_v55 }
 0x304   : > { %v5429_v61 = vunpack.i.l.bf16 %v5428_v21  ;;  %v3384_v36 = vsel %vm366_vm2, %v5409_v49, %v5424_v11  ;;  %v5420_v49 = vunpack.i.h.bf16 %v5418_v27  ;;  %v5430_v13 = vunpack.i.h.bf16 %v5428_v21  ;;  %4275 = vmatpush.msra.mxu2 %v3597_v23  ;;  %v3609_v21 = vld [vmem:[%s9040_s4 + $0x348] sm:$0xff] }
 0x305   : > { %3974 = vmatmul.f32.gmra.mxu0 %v3384_v36  ;;  %v3385_v6 = vsel %vm366_vm2, %v5410_v2, %v5425_v10 }
 0x306   : > { %v3354_v38 = vsel %vm1488_vm3, %v5415_v34, %v5429_v61  ;;  %v3323_v60 = vsel %vm277_vm0, %v7396_v22, %v5420_v49  ;;  %v3355_v25 = vsel %vm1488_vm3, %v5420_v49, %v5430_v13  ;;  %v5434_v22 = vunpack.i.l.bf16 %v5433_v33  ;;  %v3564_v34 = vld [vmem:[%s9040_s4 + $0x1e0] sm:$0xff]  ;;  %4276 = vmatpush.msra.mxu2 %v3596_v37  ;;  %4392 = vmatpush.msra.mxu0 %v3609_v21  ;;  %v3578_v37 = vld [vmem:[%s9040_s4 + $0x250] sm:$0xff] }
 0x307   : > { %2003 = vmatmul.f32.gmra.mxu1 %v1648_v9  ;;  %3754 = vmatmul.f32.gmra.mxu3 %v3322_v58  ;;  %v7690_v27 = vpop.f32.mrf.mxu3 }
 0x308   : > { %3867 = vmatmul.f32.gmra.mxu2 %v3354_v38  ;;  %v3324_v3 = vsel %vm277_vm0, %v7416_v29, %v5434_v22  ;;  %4050 = vmatpush.msra.mxu1 %v3564_v34  ;;  %v7735_v55 = vpop.f32.mrf.mxu2 }
 0x309   : > { %9070 = vst [vmem:[#allocation9_spill] sm:$0xff] %v7735_v55 }
 0x30b   : > { %v5448_v52 = vpop.permute.xlu2 %5447 }
 0x30c   : > { %v5449_v46 = vunpack.i.l.bf16 %v5448_v52  ;;  %v5450_v49 = vunpack.i.h.bf16 %v5448_v52 }
 0x30d   : > { %3977 = vmatmul.f32.gmra.mxu0 %v3385_v6 }
 0x30e   : > { %v3326_v62 = vsel %vm277_vm0, %v7431_v30, %v5449_v46  ;;  %v3327_v24 = vsel %vm277_vm0, %v7438_v19, %v5450_v49  ;;  %v3579_v30 = vld [vmem:[%s9040_s4 + $0x258] sm:$0xff] }
 0x30f   : > { %3757 = vmatmul.f32.gmra.mxu3 %v3323_v60  ;;  %v7705_v9 = vpop.f32.mrf.mxu3 }
 0x310   : > { %3870 = vmatmul.f32.gmra.mxu2 %v3355_v25  ;;  %4164 = vmatpush.msra.mxu3 %v3579_v30 }
 0x311   : > { %v5438_v56 = vpop.permute.xlu0 %5437 }
 0x312   : > { %v5443_v51 = vpop.permute.xlu1 %5442  ;;  %v5439_v1 = vunpack.i.l.bf16 %v5438_v56  ;;  %v5440_v26 = vunpack.i.h.bf16 %v5438_v56  ;;  %4165 = vmatpush.msra.mxu3 %v3578_v37 }
 0x313   : > { %v5444_v59 = vunpack.i.l.bf16 %v5443_v51  ;;  %v5445_v15 = vunpack.i.h.bf16 %v5443_v51 }
 0x314   : > { %v3386_v14 = vsel %vm366_vm2, %v5429_v61, %v5439_v1  ;;  %v3387_v8 = vsel %vm366_vm2, %v5430_v13, %v5440_v26 }
 0x315   : > { %v3356_v2 = vsel %vm1488_vm3, %v5434_v22, %v5444_v59  ;;  %3980 = vmatmul.f32.gmra.mxu0 %v3386_v14  ;;  %v3357_v29 = vsel %vm1488_vm3, %v5435_v41, %v5445_v15  ;;  %v3563_v14 = vld [vmem:[%s9040_s4 + $0x1d8] sm:$0xff] }
 0x316   : > { %4051 = vmatpush.msra.mxu1 %v3563_v14 }
 0x317   : > { %3760 = vmatmul.f32.gmra.mxu3 %v3324_v3  ;;  %v7713_v33 = vpop.f32.mrf.mxu3 }
 0x318   : > { %3873 = vmatmul.f32.gmra.mxu2 %v3356_v2  ;;  %v3595_v2 = vld [vmem:[%s9040_s4 + $0x2d8] sm:$0xff] }
 0x319   : > { %4277 = vmatpush.msra.mxu2 %v3595_v2 }
 0x31b   : > { %v5463_v60 = vpop.permute.xlu2 %5462 }
 0x31c   : > { %v5464_v23 = vunpack.i.l.bf16 %v5463_v60  ;;  %v5465_v41 = vunpack.i.h.bf16 %v5463_v60  ;;  %v3562_v60 = vld [vmem:[%s9040_s4 + $0x1d0] sm:$0xff] }
 0x31d   : > { %3983 = vmatmul.f32.gmra.mxu0 %v3387_v8  ;;  %v7745_v8 = vld [vmem:[%s9040_s4 + $0x340] sm:$0xff]  ;;  %4052 = vmatpush.msra.mxu1 %v3562_v60 }
 0x31e   : > { %4393 = vmatpush.msra.mxu0 %v7745_v8 }
 0x31f   : > { %3763 = vmatmul.f32.gmra.mxu3 %v3325_v48  ;;  %v7733_v3 = vpop.f32.mrf.mxu3 }
 0x320   : > { %3876 = vmatmul.f32.gmra.mxu2 %v3357_v29  ;;  %9069 = vst [vmem:[#allocation7_spill] sm:$0xff] %v7733_v3  ;;  %v8322_v3 = vld [vmem:[#allocation2 + $0x109] sm:$0xff] }
 0x321   : > { %v5453_v45 = vpop.permute.xlu0 %5452 }
 0x322   : > { %v5458_v11 = vpop.permute.xlu1 %5457  ;;  %v5454_v61 = vunpack.i.l.bf16 %v5453_v45  ;;  %v5455_v10 = vunpack.i.h.bf16 %v5453_v45 }
 0x323   : > { %v5459_v36 = vunpack.i.l.bf16 %v5458_v11  ;;  %v5460_v13 = vunpack.i.h.bf16 %v5458_v11 }
 0x324   : > { %v3388_v38 = vsel %vm366_vm2, %v5444_v59, %v5454_v61  ;;  %v3389_v6 = vsel %vm366_vm2, %v5445_v15, %v5455_v10  ;;  %v3328_v59 = vsel %vm277_vm0, %v7457_v16, %v5464_v23  ;;  %v3329_v15 = vsel %vm277_vm0, %v7461_v50, %v5465_v41 }
 0x325   : > { %v3358_v58 = vsel %vm1488_vm3, %v5449_v46, %v5459_v36  ;;  %3986 = vmatmul.f32.gmra.mxu0 %v3388_v38  ;;  %v3359_v25 = vsel %vm1488_vm3, %v5450_v49, %v5460_v13 }
 0x327   : > { %3766 = vmatmul.f32.gmra.mxu3 %v3326_v62 }
 0x328   : > { %3879 = vmatmul.f32.gmra.mxu2 %v3358_v58 }
 0x32b   : > { %v5478_v48 = vpop.permute.xlu2 %5477 }
 0x32c   : > { %v5479_v50 = vunpack.i.l.bf16 %v5478_v48 }
 0x32d   : > { %3989 = vmatmul.f32.gmra.mxu0 %v3389_v6 }
 0x32e   : > { %v3330_v10 = vsel %vm277_vm0, %v7490_v28, %v5479_v50 }
 0x32f   : > { %3769 = vmatmul.f32.gmra.mxu3 %v3327_v24  ;;  %v3594_v24 = vld [vmem:[%s9040_s4 + $0x2d0] sm:$0xff] }
 0x330   : > { %3882 = vmatmul.f32.gmra.mxu2 %v3359_v25  ;;  %v5480_v25 = vunpack.i.h.bf16 %v5478_v48 }
 0x331   : > { %v5468_v57 = vpop.permute.xlu0 %5467  ;;  %4278 = vmatpush.msra.mxu2 %v3594_v24 }
 0x332   : > { %v7720_v22 = vpop.permute.xlu1 %5472  ;;  %v5469_v19 = vunpack.i.l.bf16 %v5468_v57  ;;  %v5470_v26 = vunpack.i.h.bf16 %v5468_v57 }
 0x333   : > { %v5474_v56 = vunpack.i.l.bf16 %v7720_v22  ;;  %v5475_v16 = vunpack.i.h.bf16 %v7720_v22  ;;  %v3331_v22 = vsel %vm277_vm0, %v7499_v35, %v5480_v25  ;;  %v7788_v35 = vld [vmem:[%s9040_s4 + $0x338] sm:$0xff] }
 0x334   : > { %v3390_v1 = vsel %vm366_vm2, %v5459_v36, %v5469_v19  ;;  %v3391_v29 = vsel %vm366_vm2, %v5460_v13, %v5470_v26  ;;  %4394 = vmatpush.msra.mxu0 %v7788_v35 }
 0x335   : > { %v3360_v51 = vsel %vm1488_vm3, %v5464_v23, %v5474_v56  ;;  %3992 = vmatmul.f32.gmra.mxu0 %v3390_v1  ;;  %v3361_v52 = vsel %vm1488_vm3, %v5465_v41, %v5475_v16 }
 0x337   : > { %3772 = vmatmul.f32.gmra.mxu3 %v3328_v59  ;;  %v3561_v59 = vld [vmem:[%s9040_s4 + $0x1c8] sm:$0xff] }
 0x338   : > { %3885 = vmatmul.f32.gmra.mxu2 %v3360_v51  ;;  %4053 = vmatpush.msra.mxu1 %v3561_v59 }
 0x33b   : > { %v7774_v19 = vpop.permute.xlu2 %5492 }
 0x33c   : > { %v5494_v14 = vunpack.i.l.bf16 %v7774_v19  ;;  %v5495_v60 = vunpack.i.h.bf16 %v7774_v19 }
 0x33d   : > { %3995 = vmatmul.f32.gmra.mxu0 %v3391_v29 }
 0x33f   : > { %3775 = vmatmul.f32.gmra.mxu3 %v3329_v15 }
 0x340   : > { %3888 = vmatmul.f32.gmra.mxu2 %v3361_v52  ;;  %v3728_v34 = vpop.f32.mrf.mxu3  ;;  %v3841_v46 = vpop.f32.mrf.mxu2 }
 0x341   : > { %v7751_v45 = vadd.f32 %v3841_v46, %v3728_v34  ;;  %v5483_v11 = vpop.permute.xlu0 %5482  ;;  %v7805_v46 = vld [vmem:[#allocation2 + $0x138] sm:$0xff] }
 0x342   : > { %v7753_v21 = vpop.permute.xlu1 %5487  ;;  %v5484_v61 = vunpack.i.l.bf16 %v5483_v11  ;;  %v5485_v6 = vunpack.i.h.bf16 %v5483_v11 }
 0x343   : > { %9071 = vst [vmem:[#allocation6_spill] sm:$0xff] %v7751_v45  ;;  %v5489_v36 = vunpack.i.l.bf16 %v7753_v21  ;;  %v5490_v28 = vunpack.i.h.bf16 %v7753_v21  ;;  %v8237_v45 = vld [vmem:[#allocation2 + $0xd9] sm:$0xff] }
 0x344   : > { %v1986_v58 = vpop.f32.mrf.mxu1  ;;  %v3392_v49 = vsel %vm366_vm2, %v5474_v56, %v5484_v61  ;;  %v3393_v1 = vsel %vm366_vm2, %v5475_v16, %v5485_v6 }
 0x345   : > { %v1987_v38 = vadd.f32 %v1986_v58, %v6988_v53  ;;  %v3362_v62 = vsel %vm1488_vm3, %v5479_v50, %v5489_v36  ;;  %3998 = vmatmul.f32.gmra.mxu0 %v3392_v49  ;;  %v3363_v51 = vsel %vm1488_vm3, %v5480_v25, %v5490_v28  ;;  %v3332_v50 = vsel %vm277_vm0, %v7538_v32, %v5494_v14  ;;  %v2314_v49 = vld [vmem:[#allocation2 + $0x139] sm:$0xff] }
 0x347   : > { %v2100_v13 = vadd.f32 %v7609_v44, %v1987_v38  ;;  %3778 = vmatmul.f32.gmra.mxu3 %v3330_v10 }
 0x348   : > { %3891 = vmatmul.f32.gmra.mxu2 %v3362_v62  ;;  %v7825_v24 = vpop.f32.mrf.mxu3 }
 0x349   : > { %v2149_v53 = vmul.f32 %v7508_v47, %v2100_v13  ;;  %v3576_v13 = vld [vmem:[%s9040_s4 + $0x240] sm:$0xff]  ;;  %9072 = vst [vmem:[#allocation8_spill] sm:$0xff] %v7825_v24 }
 0x34b   : > { %v2185_v44 = vadd.f32 %v7517_v12, %v2149_v53 }
 0x34c   : > { %v1989_v30 = vpop.f32.mrf.mxu1 }
 0x34d   : > { %v2217_v23 = vmax.f32 %v2185_v44, 0.0  ;;  %v1990_v57 = vadd.f32 %v1989_v30, %v6996_v31  ;;  %v3577_v31 = vld [vmem:[%s9040_s4 + $0x248] sm:$0xff]  ;;  %4001 = vmatmul.f32.gmra.mxu0 %v3393_v1  ;;  %v7848_v1 = vpop.f32.mrf.mxu0 }
 0x34e   : > { %4166 = vmatpush.msra.mxu3 %v3577_v31  ;;  %9073 = vst [vmem:[#allocation10_spill] sm:$0xff] %v7848_v1 }
 0x34f   : > { %2249 = vst.msk [vmem:[#allocation2 + $0x141] sm:$0xff] %vm277_vm0, %v2217_v23  ;;  %v2103_v56 = vadd.f32 %v7633_v39, %v1990_v57  ;;  %3781 = vmatmul.f32.gmra.mxu3 %v3331_v22  ;;  %v3593_v39 = vld [vmem:[%s9040_s4 + $0x2c8] sm:$0xff]  ;;  %v3333_v57 = vsel %vm277_vm0, %v7550_v54, %v5495_v60  ;;  %v5508_v22 = vpop.permute.xlu2 %5507 }
 0x350   : > { %3894 = vmatmul.f32.gmra.mxu2 %v3363_v51  ;;  %4167 = vmatpush.msra.mxu3 %v3576_v13  ;;  %v5509_v54 = vunpack.i.l.bf16 %v5508_v22 }
 0x351   : > { %v2150_v2 = vmul.f32 %v7508_v47, %v2103_v56  ;;  %v5498_v41 = vpop.permute.xlu0 %5497  ;;  %4279 = vmatpush.msra.mxu2 %v3593_v39 }
 0x352   : > { %v7799_v26 = vpop.permute.xlu1 %5502  ;;  %v5499_v15 = vunpack.i.l.bf16 %v5498_v41  ;;  %v5500_v53 = vunpack.i.h.bf16 %v5498_v41  ;;  %v7857_v41 = vpop.f32.mrf.mxu2 }
 0x353   : > { %v2186_v16 = vadd.f32 %v7517_v12, %v2150_v2  ;;  %v5504_v48 = vunpack.i.l.bf16 %v7799_v26  ;;  %v5505_v25 = vunpack.i.h.bf16 %v7799_v26  ;;  %9075 = vst [vmem:[#allocation12_spill] sm:$0xff] %v7857_v41 }
 0x354   : > { %v1992_v52 = vpop.f32.mrf.mxu1  ;;  %v3394_v34 = vsel %vm366_vm2, %v5489_v36, %v5499_v15  ;;  %v3395_v51 = vsel %vm366_vm2, %v5490_v28, %v5500_v53 }
 0x355   : > { %v2218_v29 = vmax.f32 %v2186_v16, 0.0  ;;  %v1993_v37 = vadd.f32 %v1992_v52, %v7006_v0  ;;  %v3364_v11 = vsel %vm1488_vm3, %v5494_v14, %v5504_v48  ;;  %4004 = vmatmul.f32.gmra.mxu0 %v3394_v34  ;;  %v3365_v56 = vsel %vm1488_vm3, %v5495_v60, %v5505_v25 }
 0x356   : > { %v7810_v61 = vld [vmem:[#allocation2 + $0x140] sm:$0xff]  ;;  %v5510_v60 = vunpack.i.h.bf16 %v5508_v22 }
 0x357   : > { %v2346_v58 = vld [vmem:[#allocation2 + $0x13a] sm:$0xff]  ;;  %v2347_v38 = vld [vmem:[#allocation2 + $0x142] sm:$0xff]  ;;  %2250 = vst.msk [vmem:[#allocation2 + $0x151] sm:$0xff] %vm277_vm0, %v2218_v29  ;;  %v2106_v62 = vadd.f32 %v7663_v20, %v1993_v37  ;;  %3784 = vmatmul.f32.gmra.mxu3 %v3332_v50  ;;  %v7816_v0 = vpack.i.bf16 %v7810_v61, %v7805_v46  ;;  %v3334_v29 = vsel %vm277_vm0, %v7583_v18, %v5509_v54 }
 0x358   : > { %v7818_v36 = vpack.i.bf16 %v2347_v38, %v2346_v58  ;;  %v2315_v10 = vld [vmem:[#allocation2 + $0x141] sm:$0xff]  ;;  %3897 = vmatmul.f32.gmra.mxu2 %v3364_v11 }
 0x359   : > { %v7820_v32 = vpack.i.bf16 %v2315_v10, %v2314_v49  ;;  %v2151_v20 = vmul.f32 %v7508_v47, %v2106_v62  ;;  %5542 = vrot.lane.b32.xlu0 %v7816_v0, %s5875_s13  ;;  %v3592_v62 = vld [vmem:[%s9040_s4 + $0x2c0] sm:$0xff]  ;;  %v7889_v10 = vld [vmem:[%s9040_s4 + $0x330] sm:$0xff] }
 0x35a   : > { %5547 = vrot.lane.b32.xlu1 %v7818_v36, %s5876_s19  ;;  %4280 = vmatpush.msra.mxu2 %v3592_v62 }
 0x35b   : > { %5537 = vrot.lane.b32.xlu2 %v7820_v32, %s5877_s20  ;;  %v2187_v6 = vadd.f32 %v7517_v12, %v2151_v20  ;;  %v7896_v20 = vpop.f32.mrf.mxu0  ;;  %4395 = vmatpush.msra.mxu0 %v7889_v10  ;;  %v5523_v22 = vpop.permute.xlu2 %5522 }
 0x35c   : > { %v1995_v44 = vpop.f32.mrf.mxu1  ;;  %9076 = vst [vmem:[#allocation13_spill] sm:$0xff] %v7896_v20  ;;  %v5524_v26 = vunpack.i.l.bf16 %v5523_v22 }
 0x35d   : > { %v2219_v30 = vmax.f32 %v2187_v6, 0.0  ;;  %v1996_v23 = vadd.f32 %v1995_v44, %v7016_v5  ;;  %4007 = vmatmul.f32.gmra.mxu0 %v3395_v51 }
 0x35e   : > { %v7861_v52 = vld [vmem:[#allocation2 + $0x150] sm:$0xff] }
 0x35f   : > { %2251 = vst.msk [vmem:[#allocation2 + $0x159] sm:$0xff] %vm277_vm0, %v2219_v30  ;;  %v2109_v19 = vadd.f32 %v7681_v4, %v1996_v23  ;;  %3787 = vmatmul.f32.gmra.mxu3 %v3333_v57  ;;  %v7853_v4 = vpop.f32.mrf.mxu3  ;;  %v2316_v18 = vld [vmem:[#allocation2 + $0x151] sm:$0xff]  ;;  %v3335_v57 = vsel %vm277_vm0, %v7593_v40, %v5510_v60 }
 0x360   : > { %3900 = vmatmul.f32.gmra.mxu2 %v3365_v56  ;;  %9074 = vst [vmem:[#allocation11_spill] sm:$0xff] %v7853_v4  ;;  %v3591_v40 = vld [vmem:[%s9040_s4 + $0x2b8] sm:$0xff] }
 0x361   : > { %v2152_v5 = vmul.f32 %v7508_v47, %v2109_v19  ;;  %v5513_v31 = vpop.permute.xlu0 %5512  ;;  %v7907_v19 = vpop.f32.mrf.mxu2  ;;  %4281 = vmatpush.msra.mxu2 %v3591_v40  ;;  %v2448_v40 = vld [vmem:[#allocation2 + $0x30] sm:$0xff] }
 0x362   : > { %v7851_v39 = vpop.permute.xlu1 %5517  ;;  %v5514_v2 = vunpack.i.l.bf16 %v5513_v31  ;;  %v5515_v53 = vunpack.i.h.bf16 %v5513_v31  ;;  %9078 = vst [vmem:[#allocation15_spill] sm:$0xff] %v7907_v19 }
 0x363   : > { %v2188_v59 = vadd.f32 %v7517_v12, %v2152_v5  ;;  %v5519_v14 = vunpack.i.l.bf16 %v7851_v39  ;;  %v5520_v6 = vunpack.i.h.bf16 %v7851_v39  ;;  %v3575_v5 = vld [vmem:[%s9040_s4 + $0x238] sm:$0xff]  ;;  %v7925_v31 = vpop.f32.mrf.mxu0 }
 0x364   : > { %v1998_v21 = vpop.f32.mrf.mxu1  ;;  %v3396_v15 = vsel %vm366_vm2, %v5504_v48, %v5514_v2  ;;  %v3397_v51 = vsel %vm366_vm2, %v5505_v25, %v5515_v53  ;;  %4168 = vmatpush.msra.mxu3 %v3575_v5  ;;  %9079 = vst [vmem:[#allocation16_spill] sm:$0xff] %v7925_v31  ;;  %v5525_v53 = vunpack.i.h.bf16 %v5523_v22 }
 0x365   : > { %v2220_v28 = vmax.f32 %v2188_v59, 0.0  ;;  %v1999_v16 = vadd.f32 %v1998_v21, %v7027_v43  ;;  %v3366_v37 = vsel %vm1488_vm3, %v5509_v54, %v5519_v14  ;;  %4010 = vmatmul.f32.gmra.mxu0 %v3396_v15  ;;  %v3367_v56 = vsel %vm1488_vm3, %v5510_v60, %v5520_v6  ;;  %v3559_v54 = vld [vmem:[%s9040_s4 + $0x1b8] sm:$0xff] }
 0x366   : > { %v7868_v34 = vld [vmem:[#allocation2 + $0x158] sm:$0xff]  ;;  %v3337_v22 = vsel %vm277_vm0, %v7635_v63, %v5525_v53 }
 0x367   : > { %v2348_v50 = vld [vmem:[#allocation2 + $0x152] sm:$0xff]  ;;  %v2349_v11 = vld [vmem:[#allocation2 + $0x15a] sm:$0xff]  ;;  %2252 = vst.msk [vmem:[#allocation2 + $0x169] sm:$0xff] %vm277_vm0, %v2220_v28  ;;  %v2112_v58 = vadd.f32 %v7690_v27, %v1999_v16  ;;  %3790 = vmatmul.f32.gmra.mxu3 %v3334_v29  ;;  %v7874_v43 = vpack.i.bf16 %v7868_v34, %v7861_v52  ;;  %v7903_v30 = vpop.f32.mrf.mxu3  ;;  %v3336_v16 = vsel %vm277_vm0, %v7631_v7, %v5524_v26 }
 0x368   : > { %v7876_v48 = vpack.i.bf16 %v2349_v11, %v2348_v50  ;;  %v2317_v38 = vld [vmem:[#allocation2 + $0x159] sm:$0xff]  ;;  %3903 = vmatmul.f32.gmra.mxu2 %v3366_v37  ;;  %9077 = vst [vmem:[#allocation14_spill] sm:$0xff] %v7903_v30 }
 0x369   : > { %v7881_v49 = vpack.i.bf16 %v2317_v38, %v2316_v18  ;;  %v3560_v27 = vld [vmem:[%s9040_s4 + $0x1c0] sm:$0xff]  ;;  %v2153_v13 = vmul.f32 %v7508_v47, %v2112_v58  ;;  %5557 = vrot.lane.b32.xlu0 %v7874_v43, %s5875_s13  ;;  %v7962_v60 = vpop.f32.mrf.mxu2 }
 0x36a   : > { %5562 = vrot.lane.b32.xlu1 %v7876_v48, %s5876_s19  ;;  %4054 = vmatpush.msra.mxu1 %v3560_v27  ;;  %9081 = vst [vmem:[#allocation18_spill] sm:$0xff] %v7962_v60 }
 0x36b   : > { %5552 = vrot.lane.b32.xlu2 %v7881_v49, %s5877_s20  ;;  %v2189_v44 = vadd.f32 %v7517_v12, %v2153_v13  ;;  %v3574_v13 = vld [vmem:[%s9040_s4 + $0x230] sm:$0xff] }
 0x36c   : > { %4055 = vmatpush.msra.mxu1 %v3559_v54  ;;  %4169 = vmatpush.msra.mxu3 %v3574_v13  ;;  %v2416_v54 = vld [vmem:[#allocation2 + $0x1a] sm:$0xff] }
 0x36d   : > { %v2221_v23 = vmax.f32 %v2189_v44, 0.0  ;;  %4013 = vmatmul.f32.gmra.mxu0 %v3397_v51  ;;  %v7970_v51 = vpop.f32.mrf.mxu0 }
 0x36e   : > { %v7930_v28 = vld [vmem:[#allocation2 + $0x168] sm:$0xff]  ;;  %9082 = vst [vmem:[#allocation19_spill] sm:$0xff] %v7970_v51 }
 0x36f   : > { %2253 = vst.msk [vmem:[#allocation2 + $0x171] sm:$0xff] %vm277_vm0, %v2221_v23  ;;  %3793 = vmatmul.f32.gmra.mxu3 %v3335_v57  ;;  %v7946_v58 = vpop.f32.mrf.mxu3  ;;  %v2318_v38 = vld [vmem:[#allocation2 + $0x169] sm:$0xff]  ;;  %v2449_v57 = vld [vmem:[#allocation2 + $0x38] sm:$0xff] }
 0x370   : > { %3906 = vmatmul.f32.gmra.mxu2 %v3367_v56  ;;  %9080 = vst [vmem:[#allocation17_spill] sm:$0xff] %v7946_v58  ;;  %v8138_v58 = vld [vmem:[#allocation2 + $0x99] sm:$0xff]  ;;  %v8179_v51 = vld [vmem:[#allocation2 + $0xa9] sm:$0xff] }
 0x372   : > { %v5528_v25 = vpop.permute.xlu0 %5527 }
 0x373   : > { %v7927_v59 = vpop.permute.xlu1 %5532  ;;  %v5529_v2 = vunpack.i.l.bf16 %v5528_v25  ;;  %v5530_v44 = vunpack.i.h.bf16 %v5528_v25  ;;  %v3590_v25 = vld [vmem:[%s9040_s4 + $0x2b0] sm:$0xff] }
 0x374   : > { %v9049_v21 = vunpack.i.l.bf16 %v7927_v59  ;;  %v9048_v23 = vunpack.i.h.bf16 %v7927_v59  ;;  %4282 = vmatpush.msra.mxu2 %v3590_v25  ;;  %v8025_v25 = vld [vmem:[#allocation2 + $0x31] sm:$0xff]  ;;  %v9107_v4 = vunpack.i.l.bf16 %v7927_v59 }
 0x375   : > { %v3398_v29 = vsel %vm366_vm2, %v5519_v14, %v5529_v2  ;;  %v7955_v14 = vld [vmem:[%s9040_s4 + $0x328] sm:$0xff]  ;;  %v5586_v2 = vpack.i.bf16 %v2449_v57, %v2448_v40  ;;  %v3399_v63 = vsel %vm366_vm2, %v5520_v6, %v5530_v44  ;;  %v7998_v6 = vld [vmem:[#allocation2 + $0x3a] sm:$0xff]  ;;  %v8004_v44 = vpop.f32.mrf.mxu0 }
 0x376   : > { %v3368_v15 = vsel %vm1488_vm3, %v5524_v26, %v9049_v21  ;;  %v7940_v37 = vld [vmem:[#allocation2 + $0x170] sm:$0xff]  ;;  %4016 = vmatmul.f32.gmra.mxu0 %v3398_v29  ;;  %v2417_v26 = vld [vmem:[#allocation2 + $0x22] sm:$0xff]  ;;  %9085 = vst [vmem:[#allocation22_spill] sm:$0xff] %v8004_v44  ;;  %v5804_v40 = vld [vmem:[%s9039_s3] ss:$0 sm:$0xff] }
 0x377   : > { %v7942_v50 = vld [vmem:[#allocation2 + $0x16a] sm:$0xff]  ;;  %v7944_v11 = vld [vmem:[#allocation2 + $0x172] sm:$0xff]  ;;  %3796 = vmatmul.f32.gmra.mxu3 %v3336_v16  ;;  %v5571_v7 = vpack.i.bf16 %v7940_v37, %v7930_v28  ;;  %4396 = vmatpush.msra.mxu0 %v7955_v14  ;;  %v5581_v29 = vpack.i.bf16 %v2417_v26, %v2416_v54 }
 0x378   : > { %v5576_v18 = vpack.i.bf16 %v7944_v11, %v7942_v50  ;;  %v2319_v62 = vld [vmem:[#allocation2 + $0x171] sm:$0xff]  ;;  %3909 = vmatmul.f32.gmra.mxu2 %v3368_v15 }
 0x379   : > { %v7957_v27 = vpack.i.bf16 %v2319_v62, %v2318_v38  ;;  %5572 = vrot.lane.b32.xlu0 %v5571_v7, %s5875_s13  ;;  %v3558_v16 = vld [vmem:[%s9040_s4 + $0x1b0] sm:$0xff]  ;;  %v7988_v7 = vpop.f32.mrf.mxu3 }
 0x37a   : > { %5577 = vrot.lane.b32.xlu1 %v5576_v18, %s5876_s19  ;;  %9083 = vst [vmem:[#allocation20_spill] sm:$0xff] %v7988_v7  ;;  %4056 = vmatpush.msra.mxu1 %v3558_v16  ;;  %v7996_v62 = vld [vmem:[#allocation2 + $0x32] sm:$0xff]  ;;  %v8019_v26 = vld [vmem:[#allocation2 + $0x4a] sm:$0xff] }
 0x37b   : > { %5567 = vrot.lane.b32.xlu2 %v7957_v27, %s5877_s20  ;;  %v3570_v44 = vld [vmem:[%s9040_s4 + $0x210] sm:$0xff] }
 0x37c   : > { %v2001_v56 = vpop.f32.mrf.mxu1 }
 0x37d   : > { %v2002_v5 = vadd.f32 %v2001_v56, %v7035_v17  ;;  %v3369_v17 = vsel %vm1488_vm3, %v5525_v53, %v9048_v23  ;;  %v5803_v56 = vld [vmem:[%s9038_s2] ss:$0 sm:$0xff] }
 0x37e   : > { %4019 = vmatmul.f32.gmra.mxu0 %v3399_v63 }
 0x37f   : > { %v2115_v15 = vadd.f32 %v7705_v9, %v2002_v5  ;;  %3799 = vmatmul.f32.gmra.mxu3 %v3337_v22  ;;  %v7993_v9 = vpop.f32.mrf.mxu2 }
 0x380   : > { %3912 = vmatmul.f32.gmra.mxu2 %v3369_v17  ;;  %9084 = vst [vmem:[#allocation21_spill] sm:$0xff] %v7993_v9  ;;  %v3589_v17 = vld [vmem:[%s9040_s4 + $0x2a8] sm:$0xff] }
 0x381   : > { %v2154_v18 = vmul.f32 %v7508_v47, %v2115_v15  ;;  %5587 = vrot.lane.b32.xlu0 %v5586_v2, %s5876_s19  ;;  %v3573_v47 = vld [vmem:[%s9040_s4 + $0x228] sm:$0xff]  ;;  %v8032_v15 = vld [vmem:[%s9040_s4 + $0x320] sm:$0xff]  ;;  %4283 = vmatpush.msra.mxu2 %v3589_v17 }
 0x382   : > { %4170 = vmatpush.msra.mxu3 %v3573_v47  ;;  %4397 = vmatpush.msra.mxu0 %v8032_v15  ;;  %v3572_v17 = vld [vmem:[%s9040_s4 + $0x220] sm:$0xff] }
 0x383   : > { %5582 = vrot.lane.b32.xlu2 %v5581_v29, %s5877_s20  ;;  %v2190_v38 = vadd.f32 %v7517_v12, %v2154_v18  ;;  %v5601_v12 = vpack.i.bf16 %v7998_v6, %v7996_v62  ;;  %v3557_v18 = vld [vmem:[%s9040_s4 + $0x1a8] sm:$0xff] }
 0x384   : > { %v2004_v39 = vpop.f32.mrf.mxu1  ;;  %4057 = vmatpush.msra.mxu1 %v3557_v18  ;;  %4171 = vmatpush.msra.mxu3 %v3572_v17  ;;  %v2425_v18 = vld [vmem:[#allocation2 + $0x82] sm:$0xff] }
 0x385   : > { %v2222_v13 = vmax.f32 %v2190_v38, 0.0  ;;  %v2005_v53 = vadd.f32 %v2004_v39, %v7045_v42  ;;  %v8014_v42 = vpop.f32.mrf.mxu3  ;;  %v8046_v38 = vpop.f32.mrf.mxu0  ;;  %v8050_v39 = vld [vmem:[#allocation2 + $0x62] sm:$0xff] }
 0x386   : > { %9086 = vst [vmem:[#allocation23_spill] sm:$0xff] %v8014_v42  ;;  %v8097_v42 = vld [vmem:[#allocation2 + $0x69] sm:$0xff] }
 0x387   : > { %2254 = vst.msk [vmem:[#allocation2 + $0x181] sm:$0xff] %vm277_vm0, %v2222_v13  ;;  %v2118_v57 = vadd.f32 %v7713_v33, %v2005_v53  ;;  %v8021_v33 = vld [vmem:[#allocation2 + $0x52] sm:$0xff]  ;;  %v8023_v22 = vpop.f32.mrf.mxu2  ;;  %v2423_v13 = vld [vmem:[#allocation2 + $0x6a] sm:$0xff] }
 0x388   : > { %9087 = vst [vmem:[#allocation24_spill] sm:$0xff] %v8023_v22  ;;  %v5616_v63 = vpack.i.bf16 %v8021_v33, %v8019_v26  ;;  %v2451_v53 = vld [vmem:[#allocation2 + $0x50] sm:$0xff] }
 0x389   : > { %v2155_v5 = vmul.f32 %v5803_v56, %v2118_v57  ;;  %5602 = vrot.lane.b32.xlu0 %v5601_v12, %s5877_s20  ;;  %9088 = vst [vmem:[#allocation25_spill] sm:$0xff] %v8046_v38  ;;  %v2450_v57 = vld [vmem:[#allocation2 + $0x48] sm:$0xff]  ;;  %v8056_v56 = vld [vmem:[#allocation2 + $0x39] sm:$0xff]  ;;  %v2456_v22 = vld [vmem:[#allocation2 + $0x90] sm:$0xff] }
 0x38b   : > { %v2191_v54 = vadd.f32 %v5804_v40, %v2155_v5  ;;  %v5631_v40 = vpack.i.bf16 %v2423_v13, %v8050_v39  ;;  %v2453_v13 = vld [vmem:[#allocation2 + $0x68] sm:$0xff] }
 0x38d   : > { %v2223_v2 = vmax.f32 %v2191_v54, 0.0  ;;  %v8052_v47 = vpop.f32.mrf.mxu3  ;;  %v5606_v54 = vpack.i.bf16 %v2451_v53, %v2450_v57  ;;  %v8071_v53 = vld [vmem:[#allocation2 + $0x51] sm:$0xff]  ;;  %v2452_v57 = vld [vmem:[#allocation2 + $0x60] sm:$0xff] }
 0x38e   : > { %v8027_v16 = vld [vmem:[#allocation2 + $0x180] sm:$0xff]  ;;  %9089 = vst [vmem:[#allocation26_spill] sm:$0xff] %v8052_v47  ;;  %v5621_v47 = vpack.i.bf16 %v2453_v13, %v2452_v57  ;;  %v8093_v57 = vld [vmem:[%s9040_s4 + $0x318] sm:$0xff] }
 0x38f   : > { %2255 = vst.msk [vmem:[#allocation2 + $0x189] sm:$0xff] %vm277_vm0, %v2223_v2  ;;  %v5591_v29 = vpack.i.bf16 %v8025_v25, %v8027_v16  ;;  %v8058_v5 = vpop.f32.mrf.mxu2  ;;  %v2427_v13 = vld [vmem:[#allocation2 + $0x9a] sm:$0xff]  ;;  %4398 = vmatpush.msra.mxu0 %v8093_v57 }
 0x390   : > { %9090 = vst [vmem:[#allocation27_spill] sm:$0xff] %v8058_v5  ;;  %v8075_v5 = vld [vmem:[#allocation2 + $0x49] sm:$0xff] }
 0x391   : > { %5617 = vrot.lane.b32.xlu0 %v5616_v63, %s5877_s20  ;;  %5592 = vrot.lane.b32.xlu1 %v5591_v29, %s5875_s13  ;;  %v8069_v63 = vpop.f32.mrf.mxu0  ;;  %v2424_v29 = vld [vmem:[#allocation2 + $0x7a] sm:$0xff] }
 0x392   : > { %9091 = vst [vmem:[#allocation28_spill] sm:$0xff] %v8069_v63  ;;  %v5646_v21 = vpack.i.bf16 %v2425_v18, %v2424_v29  ;;  %v2455_v29 = vld [vmem:[#allocation2 + $0x80] sm:$0xff]  ;;  %v2426_v18 = vld [vmem:[#allocation2 + $0x92] sm:$0xff] }
 0x395   : > { %v8073_v23 = vpop.f32.mrf.mxu3 }
 0x396   : > { %v8054_v12 = vld [vmem:[#allocation2 + $0x188] sm:$0xff]  ;;  %9092 = vst [vmem:[#allocation29_spill] sm:$0xff] %v8073_v23 }
 0x397   : > { %v5596_v2 = vpack.i.bf16 %v8056_v56, %v8054_v12  ;;  %v8085_v17 = vpop.f32.mrf.mxu2 }
 0x398   : > { %9093 = vst [vmem:[#allocation30_spill] sm:$0xff] %v8085_v17 }
 0x399   : > { %5632 = vrot.lane.b32.xlu0 %v5631_v40, %s5877_s20  ;;  %5607 = vrot.lane.b32.xlu1 %v5606_v54, %s5876_s19  ;;  %v5611_v40 = vpack.i.bf16 %v8071_v53, %v8075_v5  ;;  %v3588_v54 = vld [vmem:[%s9040_s4 + $0x2a0] sm:$0xff]  ;;  %v8095_v23 = vpop.f32.mrf.mxu0 }
 0x39a   : > { %5597 = vrot.lane.b32.xlu2 %v5596_v2, %s5875_s13  ;;  %v3556_v2 = vld [vmem:[%s9040_s4 + $0x1a0] sm:$0xff]  ;;  %4284 = vmatpush.msra.mxu2 %v3588_v54  ;;  %9094 = vst [vmem:[#allocation31_spill] sm:$0xff] %v8095_v23 }
 0x39b   : > { %4058 = vmatpush.msra.mxu1 %v3556_v2  ;;  %v3571_v2 = vld [vmem:[%s9040_s4 + $0x218] sm:$0xff]  ;;  %v8114_v23 = vld [vmem:[#allocation2 + $0x81] sm:$0xff] }
 0x39c   : > { %4172 = vmatpush.msra.mxu3 %v3571_v2 }
 0x39d   : > { %v8107_v63 = vpop.f32.mrf.mxu3 }
 0x39e   : > { %9095 = vst [vmem:[#allocation32_spill] sm:$0xff] %v8107_v63  ;;  %v8118_v63 = vld [vmem:[#allocation2 + $0x79] sm:$0xff]  ;;  %4173 = vmatpush.msra.mxu3 %v3570_v44 }
 0x3a1   : > { %5647 = vrot.lane.b32.xlu0 %v5646_v21, %s5877_s20  ;;  %5622 = vrot.lane.b32.xlu1 %v5621_v47, %s5876_s19  ;;  %v2454_v21 = vld [vmem:[#allocation2 + $0x78] sm:$0xff]  ;;  %v5661_v47 = vpack.i.bf16 %v2427_v13, %v2426_v18  ;;  %v8112_v18 = vpop.f32.mrf.mxu2  ;;  %v8116_v7 = vpop.f32.mrf.mxu0 }
 0x3a2   : > { %5612 = vrot.lane.b32.xlu2 %v5611_v40, %s5875_s13  ;;  %v5636_v17 = vpack.i.bf16 %v2455_v29, %v2454_v21  ;;  %v8100_v40 = vld [vmem:[#allocation2 + $0x61] sm:$0xff]  ;;  %9096 = vst [vmem:[#allocation33_spill] sm:$0xff] %v8112_v18  ;;  %v2428_v29 = vld [vmem:[#allocation2 + $0xaa] sm:$0xff]  ;;  %v2429_v13 = vld [vmem:[#allocation2 + $0xb2] sm:$0xff] }
 0x3a3   : > { %v5626_v54 = vpack.i.bf16 %v8097_v42, %v8100_v40  ;;  %v2457_v21 = vld [vmem:[#allocation2 + $0x98] sm:$0xff]  ;;  %9097 = vst [vmem:[#allocation34_spill] sm:$0xff] %v8116_v7  ;;  %v5676_v38 = vpack.i.bf16 %v2429_v13, %v2428_v29  ;;  %v2430_v29 = vld [vmem:[#allocation2 + $0xc2] sm:$0xff]  ;;  %v2431_v13 = vld [vmem:[#allocation2 + $0xca] sm:$0xff] }
 0x3a4   : > { %v5651_v9 = vpack.i.bf16 %v2457_v21, %v2456_v22  ;;  %v2459_v21 = vld [vmem:[#allocation2 + $0xb0] sm:$0xff] }
 0x3a5   : > { %v8131_v22 = vpop.f32.mrf.mxu3 }
 0x3a6   : > { %9098 = vst [vmem:[#allocation35_spill] sm:$0xff] %v8131_v22 }
 0x3a9   : > { %5662 = vrot.lane.b32.xlu0 %v5661_v47, %s5877_s20  ;;  %5637 = vrot.lane.b32.xlu1 %v5636_v17, %s5876_s19  ;;  %v5641_v17 = vpack.i.bf16 %v8114_v23, %v8118_v63  ;;  %v3587_v47 = vld [vmem:[%s9040_s4 + $0x298] sm:$0xff]  ;;  %v8135_v18 = vpop.f32.mrf.mxu2  ;;  %v8156_v60 = vpop.f32.mrf.mxu0 }
 0x3aa   : > { %5627 = vrot.lane.b32.xlu2 %v5626_v54, %s5875_s13  ;;  %v3555_v54 = vld [vmem:[%s9040_s4 + $0x198] sm:$0xff]  ;;  %4285 = vmatpush.msra.mxu2 %v3587_v47  ;;  %9099 = vst [vmem:[#allocation36_spill] sm:$0xff] %v8135_v18  ;;  %v8151_v18 = vld [vmem:[%s9040_s4 + $0x310] sm:$0xff] }
 0x3ab   : > { %4059 = vmatpush.msra.mxu1 %v3555_v54  ;;  %v8144_v54 = vld [vmem:[#allocation2 + $0x91] sm:$0xff]  ;;  %9100 = vst [vmem:[#allocation37_spill] sm:$0xff] %v8156_v60  ;;  %4399 = vmatpush.msra.mxu0 %v8151_v18 }
 0x3ac   : > { %v5656_v22 = vpack.i.bf16 %v8138_v58, %v8144_v54 }
 0x3b1   : > { %5677 = vrot.lane.b32.xlu0 %v5676_v38, %s5877_s20  ;;  %5652 = vrot.lane.b32.xlu1 %v5651_v9, %s5876_s19  ;;  %v2458_v38 = vld [vmem:[#allocation2 + $0xa8] sm:$0xff] }
 0x3b2   : > { %5642 = vrot.lane.b32.xlu2 %v5641_v17, %s5875_s13  ;;  %v5691_v17 = vpack.i.bf16 %v2431_v13, %v2430_v29  ;;  %v5666_v47 = vpack.i.bf16 %v2459_v21, %v2458_v38  ;;  %v2461_v29 = vld [vmem:[#allocation2 + $0xc8] sm:$0xff]  ;;  %v2432_v13 = vld [vmem:[#allocation2 + $0xda] sm:$0xff]  ;;  %v3554_v38 = vld [vmem:[%s9040_s4 + $0x190] sm:$0xff] }
 0x3b3   : > { %v2433_v21 = vld [vmem:[#allocation2 + $0xe2] sm:$0xff]  ;;  %4060 = vmatpush.msra.mxu1 %v3554_v38 }
 0x3b4   : > { %v5706_v60 = vpack.i.bf16 %v2433_v21, %v2432_v13  ;;  %v3552_v38 = vld [vmem:[%s9040_s4 + $0x180] sm:$0xff]  ;;  %v2434_v21 = vld [vmem:[#allocation2 + $0xf2] sm:$0xff] }
 0x3b5   : > { %v8133_v2 = vpop.permute.xlu2 %5537 }
 0x3b6   : > { %v9050_v7 = vunpack.i.l.bf16 %v8133_v2  ;;  %v9108_v41 = vunpack.i.l.bf16 %v8133_v2  ;;  %v9115_v1 = vunpack.i.h.bf16 %v8133_v2 }
 0x3b8   : > { %v3338_v9 = vsel %vm277_vm0, %v7805_v46, %v9050_v7  ;;  %v9051_v46 = vunpack.i.h.bf16 %v8133_v2  ;;  %v8168_v7 = vld [vmem:[#allocation2 + $0xb1] sm:$0xff] }
 0x3b9   : > { %3802 = vmatmul.f32.gmra.mxu3 %v3338_v9  ;;  %5692 = vrot.lane.b32.xlu0 %v5691_v17, %s5877_s20  ;;  %v8166_v9 = vpop.f32.mrf.mxu3  ;;  %v2460_v17 = vld [vmem:[#allocation2 + $0xc0] sm:$0xff] }
 0x3ba   : > { %5667 = vrot.lane.b32.xlu1 %v5666_v47, %s5876_s19  ;;  %5657 = vrot.lane.b32.xlu2 %v5656_v22, %s5875_s13  ;;  %9101 = vst [vmem:[#allocation38_spill] sm:$0xff] %v8166_v9  ;;  %v3553_v22 = vld [vmem:[%s9040_s4 + $0x188] sm:$0xff]  ;;  %v8173_v47 = vpop.f32.mrf.mxu2  ;;  %v3339_v44 = vsel %vm277_vm0, %v7810_v61, %v9051_v46  ;;  %v5681_v30 = vpack.i.bf16 %v2461_v29, %v2460_v17  ;;  %v3586_v61 = vld [vmem:[%s9040_s4 + $0x290] sm:$0xff]  ;;  %v8192_v29 = vpop.f32.mrf.mxu0  ;;  %v2435_v17 = vld [vmem:[#allocation2 + $0xfa] sm:$0xff] }
 0x3bb   : > { %9102 = vst [vmem:[#allocation39_spill] sm:$0xff] %v8173_v47  ;;  %4061 = vmatpush.msra.mxu1 %v3553_v22  ;;  %v5671_v9 = vpack.i.bf16 %v8168_v7, %v8179_v51  ;;  %4286 = vmatpush.msra.mxu2 %v3586_v61  ;;  %v2463_v22 = vld [vmem:[#allocation2 + $0xe0] sm:$0xff] }
 0x3bc   : > { %9103 = vst [vmem:[#allocation40_spill] sm:$0xff] %v8192_v29  ;;  %v8205_v61 = vld [vmem:[#allocation2 + $0xc1] sm:$0xff] }
 0x3bd   : > { %4062 = vmatpush.msra.mxu1 %v3552_v38  ;;  %v5721_v38 = vpack.i.bf16 %v2435_v17, %v2434_v21 }
 0x3c1   : > { %3805 = vmatmul.f32.gmra.mxu3 %v3339_v44  ;;  %5707 = vrot.lane.b32.xlu0 %v5706_v60, %s5877_s20  ;;  %v8197_v60 = vld [vmem:[#allocation2 + $0xc9] sm:$0xff]  ;;  %v8199_v46 = vpop.f32.mrf.mxu3 }
 0x3c2   : > { %5682 = vrot.lane.b32.xlu1 %v5681_v30, %s5876_s19  ;;  %5672 = vrot.lane.b32.xlu2 %v5671_v9, %s5875_s13  ;;  %v2462_v30 = vld [vmem:[#allocation2 + $0xd8] sm:$0xff]  ;;  %9104 = vst [vmem:[#allocation41_spill] sm:$0xff] %v8199_v46  ;;  %v5686_v29 = vpack.i.bf16 %v8197_v60, %v8205_v61  ;;  %v8209_v19 = vpop.f32.mrf.mxu2  ;;  %v3569_v46 = vld [vmem:[%s9040_s4 + $0x208] sm:$0xff] }
 0x3c3   : > { %v5696_v47 = vpack.i.bf16 %v2463_v22, %v2462_v30  ;;  %9105 = vst [vmem:[#allocation42_spill] sm:$0xff] %v8209_v19  ;;  %4174 = vmatpush.msra.mxu3 %v3569_v46  ;;  %v2436_v30 = vld [vmem:[#allocation2 + $0x10a] sm:$0xff]  ;;  %v8220_v19 = vpop.f32.mrf.mxu0 }
 0x3c4   : > { %9106 = vst [vmem:[#allocation43_spill] sm:$0xff] %v8220_v19  ;;  %v2464_v46 = vld [vmem:[#allocation2 + $0xf0] sm:$0xff] }
 0x3c5   : > { %v8194_v13 = vpop.permute.xlu2 %5552 }
 0x3c6   : > { %v9052_v44 = vunpack.i.l.bf16 %v8194_v13 }
 0x3c8   : > { %v3340_v9 = vsel %vm277_vm0, %v7861_v52, %v9052_v44  ;;  %v9053_v52 = vunpack.i.h.bf16 %v8194_v13  ;;  %v2465_v44 = vld [vmem:[#allocation2 + $0xf8] sm:$0xff] }
 0x3c9   : > { %3808 = vmatmul.f32.gmra.mxu3 %v3340_v9  ;;  %5722 = vrot.lane.b32.xlu0 %v5721_v38, %s5877_s20  ;;  %v2437_v9 = vld [vmem:[#allocation2 + $0x112] sm:$0xff]  ;;  %v8223_v38 = vld [vmem:[#allocation2 + $0xe1] sm:$0xff]  ;;  %v5711_v20 = vpack.i.bf16 %v2465_v44, %v2464_v46  ;;  %v2439_v46 = vld [vmem:[#allocation2 + $0x12a] sm:$0xff] }
 0x3ca   : > { %5697 = vrot.lane.b32.xlu1 %v5696_v47, %s5876_s19  ;;  %5687 = vrot.lane.b32.xlu2 %v5686_v29, %s5875_s13  ;;  %v3341_v31 = vsel %vm277_vm0, %v7868_v34, %v9053_v52  ;;  %v5736_v24 = vpack.i.bf16 %v2437_v9, %v2436_v30  ;;  %v5701_v34 = vpack.i.bf16 %v8223_v38, %v8237_v45  ;;  %v2467_v30 = vld [vmem:[#allocation2 + $0x110] sm:$0xff] }
 0x3cb   : > { %v5543_v21 = vpop.permute.xlu0 %5542 }
 0x3cc   : > { %v5544_v17 = vunpack.i.l.bf16 %v5543_v21  ;;  %v8218_v22 = vpop.permute.xlu1 %5547  ;;  %v5545_v44 = vunpack.i.h.bf16 %v5543_v21 }
 0x3cd   : > { %v9054_v47 = vunpack.i.l.bf16 %v8218_v22 }
 0x3ce   : > { %v3400_v29 = vsel %vm366_vm2, %v9107_v4, %v5544_v17  ;;  %v8242_v4 = vld [vmem:[%s9040_s4 + $0x308] sm:$0xff] }
 0x3cf   : > { %v3370_v19 = vsel %vm1488_vm3, %v9108_v41, %v9054_v47  ;;  %4022 = vmatmul.f32.gmra.mxu0 %v3400_v29  ;;  %v3585_v17 = vld [vmem:[%s9040_s4 + $0x288] sm:$0xff]  ;;  %v8249_v41 = vpop.f32.mrf.mxu3  ;;  %v8261_v47 = vld [vmem:[#allocation2 + $0xf9] sm:$0xff] }
 0x3d0   : > { %3915 = vmatmul.f32.gmra.mxu2 %v3370_v19  ;;  %9109 = vst [vmem:[#allocation44_spill] sm:$0xff] %v8249_v41  ;;  %4400 = vmatpush.msra.mxu0 %v8242_v4  ;;  %v2438_v29 = vld [vmem:[#allocation2 + $0x122] sm:$0xff]  ;;  %v8269_v41 = vpop.f32.mrf.mxu0 }
 0x3d1   : > { %3811 = vmatmul.f32.gmra.mxu3 %v3341_v31  ;;  %5737 = vrot.lane.b32.xlu0 %v5736_v24, %s5877_s20  ;;  %v8255_v31 = vpop.f32.mrf.mxu2  ;;  %v2466_v24 = vld [vmem:[#allocation2 + $0x108] sm:$0xff]  ;;  %9111 = vst [vmem:[#allocation46_spill] sm:$0xff] %v8261_v47  ;;  %v3568_v19 = vld [vmem:[%s9040_s4 + $0x200] sm:$0xff] }
 0x3d2   : > { %5712 = vrot.lane.b32.xlu1 %v5711_v20, %s5876_s19  ;;  %5702 = vrot.lane.b32.xlu2 %v5701_v34, %s5875_s13  ;;  %9110 = vst [vmem:[#allocation45_spill] sm:$0xff] %v8255_v31  ;;  %v9112_v20 = vunpack.i.h.bf16 %v7927_v59  ;;  %v5726_v34 = vpack.i.bf16 %v2467_v30, %v2466_v24  ;;  %v9114_v31 = vunpack.i.h.bf16 %v8218_v22  ;;  %v8280_v30 = vld [vmem:[#allocation2 + $0xf1] sm:$0xff] }
 0x3d3   : > { %4287 = vmatpush.msra.mxu2 %v3585_v17  ;;  %9113 = vst [vmem:[#allocation47_spill] sm:$0xff] %v8269_v41  ;;  %4175 = vmatpush.msra.mxu3 %v3568_v19  ;;  %v5716_v24 = vpack.i.bf16 %v8261_v47, %v8280_v30 }
 0x3d4   : > { %v3401_v21 = vsel %vm366_vm2, %v9112_v20, %v5545_v44  ;;  %v3371_v59 = vsel %vm1488_vm3, %v9115_v1, %v9114_v31  ;;  %v5751_v44 = vpack.i.bf16 %v2439_v46, %v2438_v29  ;;  %9116 = vst [vmem:[#allocation48_spill] sm:$0xff] %v8280_v30  ;;  %v5805_v1 = vld [vmem:[%s9040_s4 + $0x358] sm:$0xff] }
 0x3d5   : > { %v8258_v9 = vpop.permute.xlu2 %5567  ;;  %4811 = vmatpush.msrb.mxu3 %v5805_v1  ;;  %v9119_v1 = vunpack.i.l.bf16 %v8218_v22  ;;  %v2384_v31 = vld [vmem:[#allocation2 + $0x19] sm:$0xff] }
 0x3d6   : > { %v9055_v52 = vunpack.i.l.bf16 %v8258_v9 }
 0x3d7   : > { %4025 = vmatmul.f32.gmra.mxu0 %v3401_v21  ;;  %v8290_v2 = vpop.f32.mrf.mxu3  ;;  %v5806_v21 = vld [vmem:[%s9040_s4 + $0x350] sm:$0xff] }
 0x3d8   : > { %v3342_v17 = vsel %vm277_vm0, %v7930_v28, %v9055_v52  ;;  %3918 = vmatmul.f32.gmra.mxu2 %v3371_v59  ;;  %9117 = vst [vmem:[#allocation49_spill] sm:$0xff] %v8290_v2  ;;  %4812 = vmatpush.msrb.mxu3 %v5806_v21  ;;  %v5807_v2 = vld [vmem:[%s9040_s4 + $0x348] sm:$0xff]  ;;  %v9120_v21 = vunpack.i.h.bf16 %v8258_v9  ;;  %v9121_v59 = vunpack.i.l.bf16 %v8194_v13  ;;  %v8329_v30 = vpop.f32.mrf.mxu0 }
 0x3d9   : > { %3814 = vmatmul.f32.gmra.mxu3 %v3342_v17  ;;  %5752 = vrot.lane.b32.xlu0 %v5751_v44, %s5877_s20  ;;  %v2469_v44 = vld [vmem:[#allocation2 + $0x128] sm:$0xff] }
 0x3da   : > { %5727 = vrot.lane.b32.xlu1 %v5726_v34, %s5876_s19  ;;  %5717 = vrot.lane.b32.xlu2 %v5716_v24, %s5875_s13  ;;  %v8300_v34 = vpop.f32.mrf.mxu2  ;;  %v8304_v24 = vld [vmem:[#allocation2 + $0x111] sm:$0xff] }
 0x3db   : > { %v5558_v19 = vpop.permute.xlu0 %5557  ;;  %9118 = vst [vmem:[#allocation50_spill] sm:$0xff] %v8300_v34  ;;  %4813 = vmatpush.msrb.mxu3 %v5807_v2  ;;  %v3343_v34 = vsel %vm277_vm0, %v7940_v37, %v9120_v21  ;;  %v5731_v47 = vpack.i.bf16 %v8304_v24, %v8322_v3  ;;  %v3584_v21 = vld [vmem:[%s9040_s4 + $0x280] sm:$0xff] }
 0x3dc   : > { %v5559_v29 = vunpack.i.l.bf16 %v5558_v19  ;;  %v8293_v46 = vpop.permute.xlu1 %5562  ;;  %4288 = vmatpush.msra.mxu2 %v3584_v21 }
 0x3dd   : > { %v8295_v20 = vpop.permute.xlu2 %5582  ;;  %v5564_v17 = vunpack.i.l.bf16 %v8293_v46  ;;  %4814 = vmatpush.msrb.mxu3 %v7745_v8  ;;  %v9124_v8 = vunpack.i.h.bf16 %v8194_v13 }
 0x3de   : > { %v3402_v52 = vsel %vm366_vm2, %v9119_v1, %v5559_v29  ;;  %v9122_v55 = vunpack.i.l.bf16 %v8295_v20  ;;  %v2468_v1 = vld [vmem:[#allocation2 + $0x120] sm:$0xff] }
 0x3df   : > { %v3372_v41 = vsel %vm1488_vm3, %v9121_v59, %v5564_v17  ;;  %4028 = vmatmul.f32.gmra.mxu0 %v3402_v52  ;;  %v5741_v2 = vpack.i.bf16 %v2469_v44, %v2468_v1  ;;  %v5565_v52 = vunpack.i.h.bf16 %v8293_v46  ;;  %v8343_v59 = vld [vmem:[#allocation2 + $0x129] sm:$0xff]  ;;  %4815 = vmatpush.msrb.mxu3 %v7788_v35  ;;  %v2385_v44 = vld [vmem:[#allocation2 + $0x21] sm:$0xff] }
 0x3e0   : > { %v3408_v29 = vsel %vm277_vm0, %v2384_v31, %v9122_v55  ;;  %3921 = vmatmul.f32.gmra.mxu2 %v3372_v41  ;;  %v5560_v55 = vunpack.i.h.bf16 %v5558_v19  ;;  %v5585_v41 = vunpack.i.h.bf16 %v8295_v20  ;;  %v3600_v31 = vld [vmem:[%s9040_s4 + $0x300] sm:$0xff]  ;;  %v8365_v13 = vpop.f32.mrf.mxu0 }
 0x3e1   : > { %3817 = vmatmul.f32.gmra.mxu3 %v3343_v34  ;;  %4063 = vmatmul.f32.vlgmr.msra.gmra.mxu1 %v3408_v29  ;;  %v8341_v34 = vpop.f32.mrf.mxu3  ;;  %v3373_v46 = vsel %vm1488_vm3, %v9124_v8, %v5565_v52  ;;  %v8354_v29 = vld [vmem:[#allocation2 + $0x121] sm:$0xff] }
 0x3e2   : > { %5767 = vrot.lane.b32.xlu0 %v7818_v36, %s5877_s20  ;;  %5742 = vrot.lane.b32.xlu1 %v5741_v2, %s5876_s19  ;;  %v9123_v36 = vunpack.i.h.bf16 %v8218_v22  ;;  %v8349_v19 = vpop.f32.mrf.mxu2  ;;  %v3409_v1 = vsel %vm277_vm0, %v2385_v44, %v5585_v41  ;;  %v5746_v35 = vpack.i.bf16 %v8343_v59, %v8354_v29 }
 0x3e3   : > { %5732 = vrot.lane.b32.xlu2 %v5731_v47, %s5875_s13  ;;  %4401 = vmatpush.msra.mxu0 %v3600_v31 }
 0x3e4   : > { %v3403_v47 = vsel %vm366_vm2, %v9123_v36, %v5560_v55  ;;  %4816 = vmatpush.msrb.mxu3 %v7889_v10 }
 0x3e6   : > { %4817 = vmatpush.msrb.mxu3 %v7955_v14 }
 0x3e7   : > { %4031 = vmatmul.f32.gmra.mxu0 %v3403_v47 }
 0x3e8   : > { %3924 = vmatmul.f32.gmra.mxu2 %v3373_v46  ;;  %4818 = vmatpush.msrb.mxu3 %v8032_v15  ;;  %v8390_v8 = vpop.f32.mrf.mxu0 }
 0x3e9   : > { %4066 = vmatmul.f32.gmra.mxu1 %v3409_v1 }
 0x3ea   : > { %5782 = vrot.lane.b32.xlu0 %v7876_v48, %s5877_s20  ;;  %5757 = vrot.lane.b32.xlu1 %v7816_v0, %s5876_s19  ;;  %v8373_v48 = vpop.f32.mrf.mxu3  ;;  %v9125_v0 = vunpack.i.l.bf16 %v8258_v9  ;;  %v8379_v14 = vpop.f32.mrf.mxu2 }
 0x3eb   : > { %5747 = vrot.lane.b32.xlu2 %v5746_v35, %s5875_s13  ;;  %v5573_v22 = vpop.permute.xlu0 %5572  ;;  %4819 = vmatpush.msrb.mxu3 %v8093_v57 }
 0x3ec   : > { %v5574_v10 = vunpack.i.l.bf16 %v5573_v22  ;;  %v8368_v2 = vpop.permute.xlu1 %5577  ;;  %v5575_v15 = vunpack.i.h.bf16 %v5573_v22 }
 0x3ed   : > { %v5579_v21 = vunpack.i.l.bf16 %v8368_v2  ;;  %4820 = vmatpush.msrb.mxu3 %v8151_v18  ;;  %v9126_v18 = vunpack.i.l.bf16 %v8295_v20 }
 0x3ee   : > { %v3404_v55 = vsel %vm366_vm2, %v5564_v17, %v5574_v10  ;;  %v5580_v17 = vunpack.i.h.bf16 %v8368_v2  ;;  %v2509_v10 = vld [vmem:[#allocation2 + $0x189] sm:$0xff] }
 0x3ef   : > { %v3374_v36 = vsel %vm1488_vm3, %v9125_v0, %v5579_v21  ;;  %4034 = vmatmul.f32.gmra.mxu0 %v3404_v55  ;;  %4821 = vmatpush.msrb.mxu3 %v8242_v4 }
 0x3f0   : > { %3927 = vmatmul.f32.gmra.mxu2 %v3374_v36  ;;  %v8411_v22 = vpop.f32.mrf.mxu0 }
 0x3f1   : > { %4822 = vmatpush.msrb.mxu3 %v3600_v31 }
 0x3f2   : > { %3142 = vrot.lane.b32.xlu0 %v7940_v37, %s5876_s19  ;;  %5772 = vrot.lane.b32.xlu1 %v7874_v43, %s5876_s19  ;;  %v3405_v37 = vsel %vm366_vm2, %v5565_v52, %v5575_v15  ;;  %v9127_v43 = vunpack.i.h.bf16 %v8258_v9  ;;  %v8399_v1 = vpop.f32.mrf.mxu3  ;;  %v8406_v20 = vpop.f32.mrf.mxu2 }
 0x3f3   : > { %5762 = vrot.lane.b32.xlu2 %v7820_v32, %s5875_s13  ;;  %v5588_v47 = vpop.permute.xlu0 %5587  ;;  %v2508_v32 = vld [vmem:[#allocation2 + $0x181] sm:$0xff] }
 0x3f4   : > { %v5589_v57 = vunpack.i.l.bf16 %v5588_v47  ;;  %v3375_v44 = vsel %vm1488_vm3, %v9127_v43, %v5580_v17  ;;  %v5590_v4 = vunpack.i.h.bf16 %v5588_v47  ;;  %v5598_v47 = vpop.permute.xlu2 %5597 }
 0x3f6   : > { %v3440_v46 = vsel %vm1488_vm3, %v9126_v18, %v5589_v57  ;;  %v3441_v35 = vsel %vm1488_vm3, %v5585_v41, %v5590_v4  ;;  %v5600_v18 = vunpack.i.h.bf16 %v5598_v47 }
 0x3f7   : > { %4037 = vmatmul.f32.gmra.mxu0 %v3405_v37  ;;  %4176 = vmatmul.f32.vlgmr.msra.gmra.mxu3 %v3440_v46 }
 0x3f8   : > { %3930 = vmatmul.f32.gmra.mxu2 %v3375_v44 }
 0x3fa   : > { %3272 = vrot.lane.b32.xlu0 %v2508_v32, %s5875_s13  ;;  %3140 = vrot.lane.b32.xlu1 %v7930_v28, %s5876_s19 }
 0x3fb   : > { %5777 = vrot.lane.b32.xlu2 %v7881_v49, %s5875_s13  ;;  %v5603_v9 = vpop.permute.xlu0 %5602  ;;  %v8418_v49 = vpop.f32.mrf.mxu3 }
 0x3fc   : > { %v5604_v52 = vunpack.i.l.bf16 %v5603_v9  ;;  %v5605_v28 = vunpack.i.h.bf16 %v5603_v9 }
 0x3fe   : > { %v3410_v31 = vsel %vm277_vm0, %v8025_v25, %v5604_v52  ;;  %v8420_v25 = vpop.f32.mrf.mxu2  ;;  %v3411_v0 = vsel %vm277_vm0, %v8056_v56, %v5605_v28  ;;  %v5599_v56 = vunpack.i.l.bf16 %v5598_v47 }
 0x3ff   : > { %4069 = vmatmul.f32.gmra.mxu1 %v3410_v31  ;;  %4179 = vmatmul.f32.gmra.mxu3 %v3441_v35  ;;  %v5613_v35 = vpop.permute.xlu2 %5612 }
 0x400   : > { %v3407_v32 = vsel %vm366_vm2, %v5580_v17, %v5599_v56  ;;  %v5615_v47 = vunpack.i.h.bf16 %v5613_v35 }
 0x402   : > { %3274 = vrot.lane.b32.xlu0 %v2509_v10, %s5875_s13  ;;  %3016 = vrot.lane.b32.xlu1 %v7942_v50, %s5877_s20  ;;  %v5614_v10 = vunpack.i.l.bf16 %v5613_v35 }
 0x403   : > { %5787 = vrot.lane.b32.xlu2 %v7957_v27, %s5875_s13  ;;  %v5593_v2 = vpop.permute.xlu1 %5592  ;;  %v8424_v36 = vpop.permute.xlu0 %5617 }
 0x404   : > { %v5595_v41 = vunpack.i.h.bf16 %v5593_v2  ;;  %v5594_v55 = vunpack.i.l.bf16 %v5593_v2  ;;  %v8428_v27 = vpop.f32.mrf.mxu0  ;;  %v5619_v37 = vunpack.i.l.bf16 %v8424_v36  ;;  %v5620_v31 = vunpack.i.h.bf16 %v8424_v36 }
 0x406   : > { %v3406_v15 = vsel %vm366_vm2, %v5579_v21, %v5594_v55  ;;  %v3472_v50 = vsel %vm366_vm2, %v5589_v57, %v5595_v41  ;;  %v8435_v21 = vpop.f32.mrf.mxu3  ;;  %v3412_v57 = vsel %vm277_vm0, %v8075_v5, %v5619_v37  ;;  %v8439_v44 = vpop.f32.mrf.mxu2  ;;  %v2478_v55 = vld [vmem:[#allocation2 + $0x198] sm:$0xff] }
 0x407   : > { %4072 = vmatmul.f32.gmra.mxu1 %v3411_v0  ;;  %4040 = vmatmul.f32.gmra.mxu0 %v3406_v15  ;;  %v2447_v15 = vld [vmem:[#allocation2 + $0x18a] sm:$0xff] }
 0x408   : > { %4289 = vmatmul.f32.vlgmr.msra.gmra.mxu2 %v3472_v50 }
 0x40a   : > { %3018 = vrot.lane.b32.xlu1 %v7944_v11, %s5877_s20  ;;  %v3473_v11 = vsel %vm366_vm2, %v5590_v4, %v5600_v18  ;;  %v2479_v18 = vld [vmem:[#allocation2 + $0x1a0] sm:$0xff] }
 0x40b   : > { %3144 = vrot.lane.b32.xlu2 %v8027_v16, %s5876_s19  ;;  %v5608_v46 = vpop.permute.xlu1 %5607  ;;  %v2446_v16 = vld [vmem:[#allocation2 + $0x182] sm:$0xff]  ;;  %v8454_v4 = vpop.permute.xlu0 %5632 }
 0x40c   : > { %v5609_v43 = vunpack.i.l.bf16 %v5608_v46  ;;  %v8448_v5 = vpop.f32.mrf.mxu0  ;;  %v5610_v17 = vunpack.i.h.bf16 %v5608_v46 }
 0x40e   : > { %v3442_v9 = vsel %vm1488_vm3, %v5604_v52, %v5609_v43  ;;  %v3413_v52 = vsel %vm277_vm0, %v8071_v53, %v5620_v31  ;;  %v8452_v2 = vpop.f32.mrf.mxu3  ;;  %v3443_v41 = vsel %vm1488_vm3, %v5605_v28, %v5610_v17  ;;  %v8460_v36 = vpop.f32.mrf.mxu2  ;;  %v5634_v53 = vunpack.i.l.bf16 %v8454_v4 }
 0x40f   : > { %4075 = vmatmul.f32.gmra.mxu1 %v3412_v57  ;;  %4043 = vmatmul.f32.gmra.mxu0 %v3407_v32  ;;  %v3475_v46 = vsel %vm366_vm2, %v5610_v17, %v5615_v47  ;;  %v5635_v57 = vunpack.i.h.bf16 %v8454_v4 }
 0x410   : > { %4182 = vmatmul.f32.gmra.mxu3 %v3442_v9  ;;  %4292 = vmatmul.f32.gmra.mxu2 %v3473_v11  ;;  %v3414_v56 = vsel %vm277_vm0, %v8100_v40, %v5634_v53  ;;  %v5628_v40 = vpop.permute.xlu2 %5627 }
 0x411   : > { %v5629_v11 = vunpack.i.l.bf16 %v5628_v40 }
 0x412   : > { %3020 = vrot.lane.b32.xlu1 %v2446_v16, %s5877_s20 }
 0x413   : > { %3146 = vrot.lane.b32.xlu2 %v8054_v12, %s5876_s19  ;;  %v5623_v0 = vpop.permute.xlu1 %5622  ;;  %v3474_v12 = vsel %vm366_vm2, %v5609_v43, %v5614_v10  ;;  %v5648_v35 = vpop.permute.xlu0 %5647 }
 0x414   : > { %v5624_v50 = vunpack.i.l.bf16 %v5623_v0  ;;  %v8465_v28 = vpop.f32.mrf.mxu0  ;;  %v5625_v9 = vunpack.i.h.bf16 %v5623_v0 }
 0x416   : > { %v8473_v43 = vpop.f32.mrf.mxu3  ;;  %v8477_v32 = vpop.f32.mrf.mxu2  ;;  %v3476_v10 = vsel %vm366_vm2, %v5624_v50, %v5629_v11 }
 0x417   : > { %4078 = vmatmul.f32.gmra.mxu1 %v3413_v52  ;;  %4752 = vmatmul.msk.f32.vlgmr.msra.gmra.mxu0 %vm277_vm0, %v7996_v62  ;;  %v3444_v62 = vsel %vm1488_vm3, %v5619_v37, %v5624_v50  ;;  %v3415_v37 = vsel %vm277_vm0, %v8097_v42, %v5635_v57  ;;  %v5649_v52 = vunpack.i.l.bf16 %v5648_v35  ;;  %v5630_v42 = vunpack.i.h.bf16 %v5628_v40 }
 0x418   : > { %4185 = vmatmul.f32.gmra.mxu3 %v3443_v41  ;;  %4295 = vmatmul.f32.gmra.mxu2 %v3474_v12  ;;  %v5643_v50 = vpop.permute.xlu2 %5642 }
 0x419   : > { %v3416_v0 = vsel %vm277_vm0, %v8118_v63, %v5649_v52  ;;  %v3477_v12 = vsel %vm366_vm2, %v5625_v9, %v5630_v42 }
 0x41a   : > { %3022 = vrot.lane.b32.xlu1 %v2447_v15, %s5877_s20  ;;  %v5650_v15 = vunpack.i.h.bf16 %v5648_v35 }
 0x41b   : > { %3148 = vrot.lane.b32.xlu2 %v2478_v55, %s5876_s19  ;;  %v5638_v17 = vpop.permute.xlu1 %5637 }
 0x41c   : > { %v8481_v16 = vpop.f32.mrf.mxu0  ;;  %v5639_v41 = vunpack.i.l.bf16 %v5638_v17  ;;  %v5640_v47 = vunpack.i.h.bf16 %v5638_v17  ;;  %v3417_v63 = vsel %vm277_vm0, %v8114_v23, %v5650_v15  ;;  %v2517_v17 = vld [vmem:[#allocation2 + $0x6a] sm:$0xff] }
 0x41e   : > { %v8487_v4 = vpop.f32.mrf.mxu3  ;;  %v8489_v55 = vpop.f32.mrf.mxu2 }
 0x41f   : > { %4081 = vmatmul.f32.gmra.mxu1 %v3414_v56  ;;  %4753 = vmatmul.msk.f32.gmra.mxu0 %vm277_vm0, %v7998_v6  ;;  %v3445_v6 = vsel %vm1488_vm3, %v5620_v31, %v5625_v9  ;;  %v3446_v31 = vsel %vm1488_vm3, %v5634_v53, %v5639_v41  ;;  %v8505_v53 = vpop.permute.xlu0 %5662 }
 0x420   : > { %4188 = vmatmul.f32.gmra.mxu3 %v3444_v62  ;;  %4298 = vmatmul.f32.gmra.mxu2 %v3475_v46  ;;  %v5644_v62 = vunpack.i.l.bf16 %v5643_v50  ;;  %v3447_v46 = vsel %vm1488_vm3, %v5635_v57, %v5640_v47  ;;  %v5664_v9 = vunpack.i.l.bf16 %v8505_v53  ;;  %v5658_v42 = vpop.permute.xlu2 %5657 }
 0x422   : > { %v3478_v40 = vsel %vm366_vm2, %v5639_v41, %v5644_v62  ;;  %v3418_v35 = vsel %vm277_vm0, %v8144_v54, %v5664_v9  ;;  %v5665_v41 = vunpack.i.h.bf16 %v8505_v53  ;;  %v5659_v54 = vunpack.i.l.bf16 %v5658_v42  ;;  %v2518_v62 = vld [vmem:[#allocation2 + $0x7a] sm:$0xff] }
 0x423   : > { %3150 = vrot.lane.b32.xlu2 %v2479_v18, %s5876_s19  ;;  %s4651_s19 = sshll.u32 %s8991_s9, 4  ;;  %s4652_s19 = int_to_ptr.vmem [resolvable:$true] %s4651_s19 }
 0x426   : > { %v8499_v56 = vpop.f32.mrf.mxu3  ;;  %v8503_v18 = vpop.f32.mrf.mxu2 }
 0x427   : > { %4084 = vmatmul.f32.gmra.mxu1 %v3415_v37  ;;  %4754 = vmatmul.msk.f32.gmra.mxu0 %vm277_vm0, %v8019_v26  ;;  %v8497_v26 = vpop.f32.mrf.mxu0  ;;  %v5645_v37 = vunpack.i.h.bf16 %v5643_v50 }
 0x428   : > { %4191 = vmatmul.f32.gmra.mxu3 %v3445_v6  ;;  %4301 = vmatmul.f32.gmra.mxu2 %v3476_v10 }
 0x429   : > { %v3479_v10 = vsel %vm366_vm2, %v5640_v47, %v5645_v37  ;;  %v5660_v37 = vunpack.i.h.bf16 %v5658_v42 }
 0x42e   : > { %v8516_v6 = vpop.f32.mrf.mxu3 }
 0x42f   : > { %4087 = vmatmul.f32.gmra.mxu1 %v3416_v0  ;;  %4755 = vmatmul.msk.f32.gmra.mxu0 %vm277_vm0, %v8021_v33  ;;  %v5653_v33 = vpop.permute.xlu1 %5652  ;;  %v8512_v11 = vpop.f32.mrf.mxu0  ;;  %9128 = vst [vmem:[#allocation51_spill] sm:$0xff] %v8516_v6  ;;  %v9158_v6 = vld [vmem:[#allocation8_spill] sm:$0xff] }
 0x430   : > { %4194 = vmatmul.f32.gmra.mxu3 %v3446_v31  ;;  %4304 = vmatmul.f32.gmra.mxu2 %v3477_v12  ;;  %v5654_v23 = vunpack.i.l.bf16 %v5653_v33  ;;  %v5655_v0 = vunpack.i.h.bf16 %v5653_v33  ;;  %v3419_v12 = vsel %vm277_vm0, %v8138_v58, %v5665_v41 }
 0x432   : > { %v3448_v57 = vsel %vm1488_vm3, %v5649_v52, %v5654_v23  ;;  %v8528_v52 = vpop.permute.xlu0 %5677  ;;  %v3449_v47 = vsel %vm1488_vm3, %v5650_v15, %v5655_v0  ;;  %v3480_v53 = vsel %vm366_vm2, %v5654_v23, %v5659_v54  ;;  %v3481_v23 = vsel %vm366_vm2, %v5655_v0, %v5660_v37  ;;  %v5673_v54 = vpop.permute.xlu2 %5672 }
 0x437   : > { %4090 = vmatmul.f32.gmra.mxu1 %v3417_v63  ;;  %4756 = vmatmul.msk.f32.gmra.mxu0 %vm277_vm0, %v8050_v39  ;;  %v8521_v39 = vpop.f32.mrf.mxu2  ;;  %v8524_v31 = vpop.f32.mrf.mxu0 }
 0x438   : > { %4197 = vmatmul.f32.gmra.mxu3 %v3447_v46  ;;  %4307 = vmatmul.f32.gmra.mxu2 %v3478_v40  ;;  %9129 = vst [vmem:[#allocation52_spill] sm:$0xff] %v8521_v39  ;;  %v5668_v63 = vpop.permute.xlu1 %5667  ;;  %v5679_v46 = vunpack.i.l.bf16 %v8528_v52 }
 0x439   : > { %v5669_v58 = vunpack.i.l.bf16 %v5668_v63 }
 0x43b   : > { %v3450_v15 = vsel %vm1488_vm3, %v5664_v9, %v5669_v58 }
 0x43c   : > { %v8530_v50 = vpop.f32.mrf.mxu3 }
 0x43d   : > { %9130 = vst [vmem:[#allocation53_spill] sm:$0xff] %v8530_v50  ;;  %v9155_v50 = vld [vmem:[#allocation10_spill] sm:$0xff] }
 0x43f   : > { %4093 = vmatmul.f32.gmra.mxu1 %v3418_v35  ;;  %4757 = vmatmul.msk.f32.gmra.mxu0 %vm277_vm0, %v2517_v17  ;;  %v8536_v33 = vpop.f32.mrf.mxu2  ;;  %v3420_v35 = vsel %vm277_vm0, %v8179_v51, %v5679_v46  ;;  %v5674_v51 = vunpack.i.l.bf16 %v5673_v54 }
 0x440   : > { %4200 = vmatmul.f32.gmra.mxu3 %v3448_v57  ;;  %4310 = vmatmul.f32.gmra.mxu2 %v3479_v10  ;;  %9131 = vst [vmem:[#allocation54_spill] sm:$0xff] %v8536_v33  ;;  %v2519_v57 = vld [vmem:[#allocation2 + $0x82] sm:$0xff]  ;;  %v5680_v10 = vunpack.i.h.bf16 %v8528_v52  ;;  %v5683_v37 = vpop.permute.xlu1 %5682 }
 0x441   : > { %v3482_v52 = vsel %vm366_vm2, %v5669_v58, %v5674_v51  ;;  %v2521_v58 = vld [vmem:[#allocation2 + $0x9a] sm:$0xff] }
 0x442   : > { %v3421_v9 = vsel %vm277_vm0, %v8168_v7, %v5680_v10  ;;  %v5675_v7 = vunpack.i.h.bf16 %v5673_v54  ;;  %v2510_v54 = vld [vmem:[#allocation2 + $0x199] sm:$0xff] }
 0x443   : > { %3276 = vrot.lane.b32.xlu0 %v2510_v54, %s5875_s13 }
 0x444   : > { %v8545_v17 = vpop.f32.mrf.mxu3 }
 0x445   : > { %9133 = vst [vmem:[#allocation56_spill] sm:$0xff] %v8545_v17 }
 0x447   : > { %4096 = vmatmul.f32.gmra.mxu1 %v3419_v12  ;;  %4758 = vmatmul.msk.f32.gmra.mxu0 %vm277_vm0, %v2518_v62  ;;  %v5670_v12 = vunpack.i.h.bf16 %v5668_v63  ;;  %v8554_v62 = vpop.permute.xlu0 %5692 }
 0x448   : > { %4203 = vmatmul.f32.gmra.mxu3 %v3449_v47  ;;  %4313 = vmatmul.f32.gmra.mxu2 %v3480_v53  ;;  %v2520_v53 = vld [vmem:[#allocation2 + $0x92] sm:$0xff]  ;;  %v5694_v63 = vunpack.i.l.bf16 %v8554_v62 }
 0x449   : > { %v3451_v0 = vsel %vm1488_vm3, %v5665_v41, %v5670_v12  ;;  %v3483_v51 = vsel %vm366_vm2, %v5670_v12, %v5675_v7  ;;  %v2522_v7 = vld [vmem:[#allocation2 + $0xaa] sm:$0xff] }
 0x44c   : > { %v8538_v40 = vpop.f32.mrf.mxu0 }
 0x44d   : > { %9132 = vst [vmem:[#allocation55_spill] sm:$0xff] %v8538_v40  ;;  %v9159_v40 = vld [vmem:[#allocation12_spill] sm:$0xff] }
 0x44e   : > { %v3845_v39 = vadd.f32 %v9159_v40, %v9158_v6 }
 0x44f   : > { %4099 = vmatmul.f32.gmra.mxu1 %v3420_v35  ;;  %4759 = vmatmul.msk.f32.gmra.mxu0 %vm277_vm0, %v2519_v57  ;;  %v5684_v35 = vunpack.i.l.bf16 %v5683_v37 }
 0x450   : > { %4206 = vmatmul.f32.gmra.mxu3 %v3450_v15  ;;  %4316 = vmatmul.f32.gmra.mxu2 %v3481_v23  ;;  %v8560_v15 = vpop.f32.mrf.mxu3  ;;  %v3422_v23 = vsel %vm277_vm0, %v8205_v61, %v5694_v63 }
 0x451   : > { %9136 = vst [vmem:[#allocation59_spill] sm:$0xff] %v8560_v15 }
 0x453   : > { %v8548_v42 = vpop.f32.mrf.mxu2 }
 0x454   : > { %9134 = vst [vmem:[#allocation57_spill] sm:$0xff] %v8548_v42  ;;  %v8550_v47 = vpop.f32.mrf.mxu0 }
 0x455   : > { %9135 = vst [vmem:[#allocation58_spill] sm:$0xff] %v8550_v47 }
 0x457   : > { %4102 = vmatmul.f32.gmra.mxu1 %v3421_v9  ;;  %4760 = vmatmul.msk.f32.gmra.mxu0 %vm277_vm0, %v2520_v53  ;;  %v3452_v9 = vsel %vm1488_vm3, %v5679_v46, %v5684_v35  ;;  %v5688_v53 = vpop.permute.xlu2 %5687 }
 0x458   : > { %4209 = vmatmul.f32.gmra.mxu3 %v3451_v0  ;;  %4319 = vmatmul.f32.gmra.mxu2 %v3482_v52  ;;  %v5695_v0 = vunpack.i.h.bf16 %v8554_v62  ;;  %v5685_v52 = vunpack.i.h.bf16 %v5683_v37  ;;  %v8573_v61 = vpop.f32.mrf.mxu3  ;;  %v5698_v62 = vpop.permute.xlu1 %5697 }
 0x459   : > { %9139 = vst [vmem:[#allocation62_spill] sm:$0xff] %v8573_v61  ;;  %v2511_v61 = vld [vmem:[#allocation2 + $0x1a1] sm:$0xff] }
 0x45a   : > { %v3423_v46 = vsel %vm277_vm0, %v8197_v60, %v5695_v0  ;;  %v3453_v12 = vsel %vm1488_vm3, %v5680_v10, %v5685_v52  ;;  %v5699_v60 = vunpack.i.l.bf16 %v5698_v62  ;;  %3278 = vrot.lane.b32.xlu0 %v2511_v61, %s5875_s13  ;;  %s4649_s13 = scalar_lea.hbm %s9043_s7, %s4790_s14 }
 0x45b   : > { %v8562_v57 = vpop.f32.mrf.mxu2  ;;  %s4653_s20 = sshll.u32 %s4649_s13, 4  ;;  %s4654_s20 = int_to_ptr.hbm [resolvable:$true] %s4653_s20 }
 0x45c   : > { %9137 = vst [vmem:[#allocation60_spill] sm:$0xff] %v8562_v57  ;;  %v8566_v41 = vpop.f32.mrf.mxu0  ;;  %s5824_s21 = sshra.s32 %s4654_s20, 4  ;;  %s5825_s21 = int_to_ptr.hbm [resolvable:$true] %s5824_s21 }
 0x45d   : > { %9138 = vst [vmem:[#allocation61_spill] sm:$0xff] %v8566_v41  ;;  %s5826_s22 = scalar_lea.hbm %s5825_s21, 16  ;;  %p5831_p0 = scmp.lt.s32.totalorder %s5825_s21, %s9043_s7 }
 0x45e   : > { %v8587_v54 = vpop.f32.mrf.mxu1  ;;  %p5827_p11 = scmp.ne.s32.totalorder %s5825_s21, %s5826_s22  ;;  %p5832_p1 = scmp.lt.s32.totalorder %s5830_s29, %s5826_s22 }
 0x45f   : > { %4105 = vmatmul.f32.gmra.mxu1 %v3422_v23  ;;  %4761 = vmatmul.msk.f32.gmra.mxu0 %vm277_vm0, %v2521_v58  ;;  %v5689_v23 = vunpack.i.l.bf16 %v5688_v53 }
 0x460   : > { %4212 = vmatmul.f32.gmra.mxu3 %v3452_v9  ;;  %4322 = vmatmul.f32.gmra.mxu2 %v3483_v51  ;;  %v8579_v9 = vpop.permute.xlu0 %5707  ;;  %p5828_p12 = pnand %p5827_p11, %p5956_p5  ;;  %p5833_p2 = por %p5832_p1, %p5831_p0 }
 0x461   : > { %v3484_v37 = vsel %vm366_vm2, %v5684_v35, %v5689_v23  ;;  %v5709_v51 = vunpack.i.l.bf16 %v8579_v9  ;;  %v3454_v23 = vsel %vm1488_vm3, %v5694_v63, %v5699_v60  ;;  %v5710_v61 = vunpack.i.h.bf16 %v8579_v9 }
 0x462   : > { %p5829_p13 = pneg %p5828_p12 }
 0x463   : > { %v8575_v15 = vpop.f32.mrf.mxu2  ;;  %v3424_v10 = vsel %vm277_vm0, %v8237_v45, %v5709_v51 }
 0x464   : > { %9140 = vst [vmem:[#allocation63_spill] sm:$0xff] %v8575_v15  ;;  %v8584_v58 = vpop.f32.mrf.mxu0  ;;  %v5700_v15 = vunpack.i.h.bf16 %v5698_v62  ;;  %p5834_p3 = pnand %p5833_p2, %p5829_p13 }
 0x465   : > { %9141 = vst [vmem:[#allocation64_spill] sm:$0xff] %v8584_v58 }
 0x466   : > { %v8602_v45 = vpop.f32.mrf.mxu1 }
 0x467   : > { %4108 = vmatmul.f32.gmra.mxu1 %v3423_v46  ;;  %4762 = vmatmul.msk.f32.gmra.mxu0 %vm277_vm0, %v2522_v7  ;;  %v5690_v46 = vunpack.i.h.bf16 %v5688_v53  ;;  %v2523_v7 = vld [vmem:[#allocation2 + $0xb2] sm:$0xff]  ;;  %v5703_v53 = vpop.permute.xlu2 %5702 }
 0x468   : > { %4215 = vmatmul.f32.gmra.mxu3 %v3453_v12  ;;  %4325 = vmatmul.f32.gmra.mxu2 %v3484_v37  ;;  %v8592_v12 = vpop.f32.mrf.mxu3  ;;  %v8606_v63 = vpop.permute.xlu0 %5722 }
 0x469   : > { %9142 = vst [vmem:[#allocation65_spill] sm:$0xff] %v8592_v12  ;;  %v3485_v37 = vsel %vm366_vm2, %v5685_v52, %v5690_v46  ;;  %v5704_v12 = vunpack.i.l.bf16 %v5703_v53  ;;  %v3455_v52 = vsel %vm1488_vm3, %v5695_v0, %v5700_v15  ;;  %v2524_v46 = vld [vmem:[#allocation2 + $0xc2] sm:$0xff]  ;;  %v5705_v0 = vunpack.i.h.bf16 %v5703_v53 }
 0x46b   : > { %v8594_v35 = vpop.f32.mrf.mxu2  ;;  %v3486_v9 = vsel %vm366_vm2, %v5699_v60, %v5704_v12  ;;  %v2525_v12 = vld [vmem:[#allocation2 + $0xca] sm:$0xff] }
 0x46c   : > { %9143 = vst [vmem:[#allocation66_spill] sm:$0xff] %v8594_v35  ;;  %v8600_v58 = vpop.f32.mrf.mxu0 }
 0x46d   : > { %9144 = vst [vmem:[#allocation67_spill] sm:$0xff] %v8600_v58  ;;  %v9148_v58 = vld [vmem:[#allocation48_spill] sm:$0xff] }
 0x46f   : > { %4111 = vmatmul.f32.gmra.mxu1 %v3424_v10  ;;  %4763 = vmatmul.msk.f32.gmra.mxu0 %vm277_vm0, %v2523_v7  ;;  %v3425_v10 = vsel %vm277_vm0, %v8223_v38, %v5710_v61 }
 0x470   : > { %4218 = vmatmul.f32.gmra.mxu3 %v3454_v23  ;;  %4328 = vmatmul.f32.gmra.mxu2 %v3485_v37  ;;  %v5713_v23 = vpop.permute.xlu1 %5712  ;;  %v8611_v62 = vpop.f32.mrf.mxu3  ;;  %v5724_v37 = vunpack.i.l.bf16 %v8606_v63 }
 0x471   : > { %9145 = vst [vmem:[#allocation68_spill] sm:$0xff] %v8611_v62  ;;  %v5714_v38 = vunpack.i.l.bf16 %v5713_v23  ;;  %v5725_v62 = vunpack.i.h.bf16 %v8606_v63  ;;  %v5715_v57 = vunpack.i.h.bf16 %v5713_v23  ;;  %v8634_v17 = vpop.permute.xlu0 %5737  ;;  %v9152_v23 = vld [vmem:[#allocation7_spill] sm:$0xff] }
 0x473   : > { %v8613_v7 = vpop.f32.mrf.mxu2  ;;  %v3456_v60 = vsel %vm1488_vm3, %v5709_v51, %v5714_v38  ;;  %v9151_v51 = vld [vmem:[#allocation46_spill] sm:$0xff] }
 0x474   : > { %9146 = vst [vmem:[#allocation69_spill] sm:$0xff] %v8613_v7  ;;  %v5718_v7 = vpop.permute.xlu2 %5717 }
 0x475   : > { %v5720_v47 = vunpack.i.h.bf16 %v5718_v7 }
 0x477   : > { %4114 = vmatmul.f32.gmra.mxu1 %v3425_v10  ;;  %4764 = vmatmul.msk.f32.gmra.mxu0 %vm277_vm0, %v2524_v46  ;;  %v8618_v10 = vpop.f32.mrf.mxu0  ;;  %v3487_v46 = vsel %vm366_vm2, %v5700_v15, %v5705_v0  ;;  %v3457_v15 = vsel %vm1488_vm3, %v5710_v61, %v5715_v57  ;;  %v2526_v0 = vld [vmem:[#allocation2 + $0xda] sm:$0xff] }
 0x478   : > { %4221 = vmatmul.f32.gmra.mxu3 %v3455_v52  ;;  %4331 = vmatmul.f32.gmra.mxu2 %v3486_v9  ;;  %9147 = vst [vmem:[#allocation70_spill] sm:$0xff] %v8618_v10  ;;  %v3426_v52 = vsel %vm277_vm0, %v9148_v58, %v5724_v37 }
 0x47a   : > { %v4177_v9 = vpop.f32.mrf.mxu3 }
 0x47b   : > { %v8626_v10 = vpop.f32.mrf.mxu2 }
 0x47c   : > { %v8616_v35 = vpop.f32.mrf.mxu1  ;;  %9149 = vst [vmem:[#allocation48_spill] sm:$0xff] %v8626_v10  ;;  %v5739_v10 = vunpack.i.l.bf16 %v8634_v17 }
 0x47f   : > { %4117 = vmatmul.f32.gmra.mxu1 %v3426_v52  ;;  %4765 = vmatmul.msk.f32.gmra.mxu0 %vm277_vm0, %v2525_v12  ;;  %v5719_v52 = vunpack.i.l.bf16 %v5718_v7  ;;  %v8637_v12 = vpop.permute.xlu1 %5727 }
 0x480   : > { %4224 = vmatmul.f32.gmra.mxu3 %v3456_v60  ;;  %4334 = vmatmul.f32.gmra.mxu2 %v3487_v46  ;;  %v3427_v60 = vsel %vm277_vm0, %v9151_v51, %v5725_v62  ;;  %v9153_v46 = vld [vmem:[#allocation9_spill] sm:$0xff]  ;;  %v5729_v51 = vunpack.i.l.bf16 %v8637_v12  ;;  %v5730_v7 = vunpack.i.h.bf16 %v8637_v12  ;;  %v8674_v12 = vld [vmem:[%s9042_s6] ss:$0 sm:$0xff] }
 0x481   : > { %v3488_v63 = vsel %vm366_vm2, %v5714_v38, %v5719_v52  ;;  %v3428_v38 = vsel %vm277_vm0, %v8322_v3, %v5739_v10 }
 0x482   : > { %v4180_v41 = vpop.f32.mrf.mxu3  ;;  %v3458_v52 = vsel %vm1488_vm3, %v5724_v37, %v5729_v51  ;;  %v9156_v37 = vld [vmem:[#allocation6_spill] sm:$0xff] }
 0x484   : > { %v8628_v53 = vpop.f32.mrf.mxu1  ;;  %v8630_v58 = vpop.f32.mrf.mxu0 }
 0x485   : > { %9150 = vst [vmem:[#allocation71_spill] sm:$0xff] %v8630_v58  ;;  %v3839_v58 = vadd.f32 %v9153_v46, %v9152_v23  ;;  %v3489_v23 = vsel %vm366_vm2, %v5715_v57, %v5720_v47  ;;  %v9058_v46 = vunpack.i.h.bf16 %v8634_v17 }
 0x487   : > { %4120 = vmatmul.f32.gmra.mxu1 %v3427_v60  ;;  %4766 = vmatmul.msk.f32.gmra.mxu0 %vm277_vm0, %v2526_v0  ;;  %v2527_v0 = vld [vmem:[#allocation2 + $0xe2] sm:$0xff] }
 0x488   : > { %4227 = vmatmul.f32.gmra.mxu3 %v3457_v15  ;;  %4337 = vmatmul.f32.gmra.mxu2 %v3488_v63  ;;  %v3952_v15 = vadd.f32 %v9155_v50, %v3839_v58  ;;  %v5733_v50 = vpop.permute.xlu2 %5732 }
 0x489   : > { %v5734_v57 = vunpack.i.l.bf16 %v5733_v50 }
 0x48a   : > { %v4065_v63 = vadd.f32 %v8587_v54, %v3952_v15  ;;  %v8663_v54 = vld [vmem:[%s9041_s5] ss:$0 sm:$0xff]  ;;  %v9157_v15 = vld [vmem:[#allocation13_spill] sm:$0xff] }
 0x48b   : > { %v4290_v60 = vpop.f32.mrf.mxu2 }
 0x48c   : > { %v8645_v42 = vpop.f32.mrf.mxu1  ;;  %v8647_v61 = vpop.f32.mrf.mxu0 }
 0x48d   : > { %9154 = vst [vmem:[#allocation46_spill] sm:$0xff] %v8647_v61  ;;  %v4178_v61 = vadd.f32 %v4177_v9, %v4065_v63  ;;  %v3429_v9 = vsel %vm277_vm0, %v8304_v24, %v9058_v46  ;;  %v2528_v63 = vld [vmem:[#allocation2 + $0xf2] sm:$0xff]  ;;  %v3490_v24 = vsel %vm366_vm2, %v5729_v51, %v5734_v57  ;;  %v9160_v57 = vld [vmem:[#allocation16_spill] sm:$0xff] }
 0x48f   : > { %4123 = vmatmul.f32.gmra.mxu1 %v3428_v38  ;;  %4767 = vmatmul.msk.f32.gmra.mxu0 %vm277_vm0, %v2527_v0  ;;  %v4291_v3 = vadd.f32 %v4290_v60, %v4178_v61  ;;  %v8676_v60 = vpop.permute.xlu0 %5752  ;;  %v3459_v61 = vsel %vm1488_vm3, %v5725_v62, %v5730_v7 }
 0x490   : > { %4230 = vmatmul.f32.gmra.mxu3 %v3458_v52  ;;  %4340 = vmatmul.f32.gmra.mxu2 %v3489_v23  ;;  %v3955_v52 = vadd.f32 %v9157_v15, %v9156_v37  ;;  %v8679_v23 = vpop.permute.xlu1 %5742  ;;  %v5754_v37 = vunpack.i.l.bf16 %v8676_v60 }
 0x491   : > { %v5744_v62 = vunpack.i.l.bf16 %v8679_v23 }
 0x493   : > { %v4183_v58 = vpop.f32.mrf.mxu3  ;;  %v4293_v38 = vpop.f32.mrf.mxu2 }
 0x494   : > { %v8658_v33 = vpop.f32.mrf.mxu1  ;;  %v4403_v47 = vpop.f32.mrf.mxu0 }
 0x495   : > { %v4404_v0 = vadd.f32 %v4403_v47, %v4291_v3  ;;  %v4068_v3 = vadd.f32 %v8602_v45, %v3955_v52 }
 0x497   : > { %4126 = vmatmul.f32.gmra.mxu1 %v3429_v9  ;;  %v4503_v47 = vmul.f32 %v8663_v54, %v4404_v0  ;;  %4768 = vmatmul.msk.f32.gmra.mxu0 %vm277_vm0, %v2528_v63  ;;  %v4181_v15 = vadd.f32 %v4180_v41, %v4068_v3  ;;  %v5735_v63 = vunpack.i.h.bf16 %v5733_v50  ;;  %v3430_v41 = vsel %vm277_vm0, %v8354_v29, %v5754_v37  ;;  %v5748_v29 = vpop.permute.xlu2 %5747 }
 0x498   : > { %4233 = vmatmul.f32.gmra.mxu3 %v3459_v61  ;;  %4343 = vmatmul.f32.gmra.mxu2 %v3490_v24  ;;  %v3958_v61 = vadd.f32 %v9160_v57, %v3845_v39  ;;  %v3460_v3 = vsel %vm1488_vm3, %v5739_v10, %v5744_v62  ;;  %v5755_v39 = vunpack.i.h.bf16 %v8676_v60 }
 0x499   : > { %v4539_v9 = vadd.f32 %v8674_v12, %v4503_v47  ;;  %v4294_v45 = vadd.f32 %v4293_v38, %v4181_v15  ;;  %v2529_v47 = vld [vmem:[#allocation2 + $0xfa] sm:$0xff]  ;;  %v3491_v38 = vsel %vm366_vm2, %v5730_v7, %v5735_v63 }
 0x49a   : > { %v4071_v6 = vadd.f32 %v8616_v35, %v3958_v61  ;;  %v9163_v63 = vld [vmem:[#allocation19_spill] sm:$0xff] }
 0x49b   : > { %v4186_v46 = vpop.f32.mrf.mxu3  ;;  %v4296_v52 = vpop.f32.mrf.mxu2  ;;  %4571 = vxpose.xlu1.b32.start [1/16] (narrow) %v4539_v9, 8  ;;  %v5745_v9 = vunpack.i.h.bf16 %v8679_v23 }
 0x49c   : > { %v8690_v0 = vpop.f32.mrf.mxu1  ;;  %v4406_v51 = vpop.f32.mrf.mxu0  ;;  %v4184_v50 = vadd.f32 %v4183_v58, %v4071_v6  ;;  %v3431_v58 = vsel %vm277_vm0, %v8343_v59, %v5755_v39 }
 0x49d   : > { %v4407_v24 = vadd.f32 %v4406_v51, %v4294_v45  ;;  %v9161_v45 = vld [vmem:[#allocation11_spill] sm:$0xff]  ;;  %v8714_v23 = vpop.permute.xlu0 %5767  ;;  %v8716_v6 = vpop.permute.xlu1 %5757 }
 0x49e   : > { %v9162_v51 = vld [vmem:[#allocation15_spill] sm:$0xff]  ;;  %v4297_v57 = vadd.f32 %v4296_v52, %v4184_v50  ;;  %v9164_v52 = vunpack.i.h.bf16 %v8634_v17  ;;  %v5769_v59 = vunpack.i.l.bf16 %v8714_v23  ;;  %v5759_v17 = vunpack.i.l.bf16 %v8716_v6 }
 0x49f   : > { %4129 = vmatmul.f32.gmra.mxu1 %v3430_v41  ;;  %v4504_v40 = vmul.f32 %v8663_v54, %v4407_v24  ;;  %4769 = vmatmul.msk.f32.gmra.mxu0 %vm277_vm0, %v2529_v47  ;;  %v3848_v35 = vadd.f32 %v9162_v51, %v9161_v45 }
 0x4a0   : > { %4236 = vmatmul.f32.gmra.mxu3 %v3460_v3  ;;  %4346 = vmatmul.f32.gmra.mxu2 %v3491_v38  ;;  %v5749_v3 = vunpack.i.l.bf16 %v5748_v29  ;;  %v2530_v38 = vld [vmem:[#allocation2 + $0x10a] sm:$0xff] }
 0x4a1   : > { %v4540_v15 = vadd.f32 %v8674_v12, %v4504_v40  ;;  %v3961_v41 = vadd.f32 %v9163_v63, %v3848_v35  ;;  %v3461_v40 = vsel %vm1488_vm3, %v9164_v52, %v5745_v9  ;;  %v9166_v63 = vld [vmem:[#allocation18_spill] sm:$0xff] }
 0x4a2   : > { %v3492_v45 = vsel %vm366_vm2, %v5744_v62, %v5749_v3  ;;  %v2408_v3 = vld [vmem:[#allocation2 + $0x139] sm:$0xff]  ;;  %v9167_v52 = vld [vmem:[#allocation22_spill] sm:$0xff] }
 0x4a3   : > { %v4189_v10 = vpop.f32.mrf.mxu3  ;;  %v4299_v61 = vpop.f32.mrf.mxu2  ;;  %4572 = vxpose.xlu1.b32.cont [2/16] (narrow) %v4540_v15, 8  ;;  %v4074_v50 = vadd.f32 %v8628_v53, %v3961_v41 }
 0x4a4   : > { %v8707_v24 = vpop.f32.mrf.mxu1  ;;  %v4409_v7 = vpop.f32.mrf.mxu0 }
 0x4a5   : > { %v4410_v47 = vadd.f32 %v4409_v7, %v4297_v57  ;;  %v4187_v51 = vadd.f32 %v4186_v46, %v4074_v50  ;;  %v9165_v7 = vld [vmem:[#allocation14_spill] sm:$0xff]  ;;  %v3432_v46 = vsel %vm277_vm0, %v2408_v3, %v5769_v59  ;;  %v3462_v50 = vsel %vm1488_vm3, %v5754_v37, %v5759_v17  ;;  %v9169_v3 = vld [vmem:[#allocation21_spill] sm:$0xff] }
 0x4a6   : > { %v5760_v37 = vunpack.i.h.bf16 %v8716_v6  ;;  %v8756_v6 = vpop.permute.xlu0 %5782 }
 0x4a7   : > { %4132 = vmatmul.f32.gmra.mxu1 %v3431_v58  ;;  %v4505_v15 = vmul.f32 %v8663_v54, %v4410_v47  ;;  %4770 = vmatmul.msk.f32.gmra.mxu0 %vm277_vm0, %v2530_v38  ;;  %v3851_v58 = vadd.f32 %v9166_v63, %v9165_v7  ;;  %v4300_v53 = vadd.f32 %v4299_v61, %v4187_v51  ;;  %v5750_v38 = vunpack.i.h.bf16 %v5748_v29  ;;  %v2531_v61 = vld [vmem:[#allocation2 + $0x112] sm:$0xff]  ;;  %v8743_v29 = vpop.permute.xlu1 %5772 }
 0x4a8   : > { %4239 = vmatmul.f32.gmra.mxu3 %v3461_v40  ;;  %4349 = vmatmul.f32.gmra.mxu2 %v3492_v45  ;;  %v5770_v7 = vunpack.i.h.bf16 %v8714_v23  ;;  %v5774_v60 = vunpack.i.l.bf16 %v8743_v29 }
 0x4a9   : > { %v4541_v35 = vadd.f32 %v8674_v12, %v4505_v15  ;;  %v3964_v40 = vadd.f32 %v9167_v52, %v3851_v58 }
 0x4ab   : > { %v4192_v57 = vpop.f32.mrf.mxu3  ;;  %v4302_v41 = vpop.f32.mrf.mxu2  ;;  %4573 = vxpose.xlu1.b32.cont [3/16] (narrow) %v4541_v35, 8  ;;  %v4077_v15 = vadd.f32 %v8645_v42, %v3964_v40  ;;  %v3493_v35 = vsel %vm366_vm2, %v5745_v9, %v5750_v38  ;;  %v9168_v42 = vld [vmem:[#allocation17_spill] sm:$0xff] }
 0x4ac   : > { %v8730_v47 = vpop.f32.mrf.mxu1  ;;  %v4412_v62 = vpop.f32.mrf.mxu0  ;;  %v3854_v52 = vadd.f32 %v9169_v3, %v9168_v42  ;;  %v5784_v3 = vunpack.i.l.bf16 %v8756_v6 }
 0x4ad   : > { %v4413_v45 = vadd.f32 %v4412_v62, %v4300_v53  ;;  %v4190_v63 = vadd.f32 %v4189_v10, %v4077_v15  ;;  %v5763_v53 = vpop.permute.xlu2 %5762 }
 0x4af   : > { %4135 = vmatmul.f32.gmra.mxu1 %v3432_v46  ;;  %v4506_v51 = vmul.f32 %v8663_v54, %v4413_v45  ;;  %4771 = vmatmul.msk.f32.gmra.mxu0 %vm277_vm0, %v2531_v61  ;;  %v4303_v40 = vadd.f32 %v4302_v41, %v4190_v63  ;;  %v2409_v46 = vld [vmem:[#allocation2 + $0x141] sm:$0xff]  ;;  %v3463_v41 = vsel %vm1488_vm3, %v5755_v39, %v5760_v37 }
 0x4b0   : > { %4242 = vmatmul.f32.gmra.mxu3 %v3462_v50  ;;  %4352 = vmatmul.f32.gmra.mxu2 %v3493_v35  ;;  %v9170_v50 = vld [vmem:[#allocation25_spill] sm:$0xff]  ;;  %v5764_v35 = vunpack.i.l.bf16 %v5763_v53  ;;  %v3433_v15 = vsel %vm277_vm0, %v2409_v46, %v5770_v7  ;;  %v9171_v46 = vld [vmem:[#allocation20_spill] sm:$0xff] }
 0x4b1   : > { %v4542_v58 = vadd.f32 %v8674_v12, %v4506_v51  ;;  %v3967_v61 = vadd.f32 %v9170_v50, %v3854_v52  ;;  %v2532_v51 = vld [vmem:[#allocation2 + $0x122] sm:$0xff] }
 0x4b2   : > { %v3494_v42 = vsel %vm366_vm2, %v5759_v17, %v5764_v35 }
 0x4b3   : > { %v4195_v62 = vpop.f32.mrf.mxu3  ;;  %v4305_v45 = vpop.f32.mrf.mxu2  ;;  %4574 = vxpose.xlu1.b32.cont [4/16] (narrow) %v4542_v58, 8  ;;  %v4080_v63 = vadd.f32 %v8658_v33, %v3967_v61  ;;  %v9172_v33 = vld [vmem:[#allocation24_spill] sm:$0xff] }
 0x4b4   : > { %v8750_v9 = vpop.f32.mrf.mxu1  ;;  %v4415_v38 = vpop.f32.mrf.mxu0  ;;  %v3857_v50 = vadd.f32 %v9172_v33, %v9171_v46 }
 0x4b5   : > { %v4416_v10 = vadd.f32 %v4415_v38, %v4303_v40  ;;  %v4193_v52 = vadd.f32 %v4192_v57, %v4080_v63  ;;  %v8768_v38 = vpop.permute.xlu1 %3140  ;;  %v5765_v57 = vunpack.i.h.bf16 %v5763_v53  ;;  %v5785_v53 = vunpack.i.h.bf16 %v8756_v6 }
 0x4b7   : > { %4138 = vmatmul.f32.gmra.mxu1 %v3433_v15  ;;  %v4507_v58 = vmul.f32 %v8663_v54, %v4416_v10  ;;  %4772 = vmatmul.msk.f32.gmra.mxu0 %vm277_vm0, %v2532_v51  ;;  %v4306_v61 = vadd.f32 %v4305_v45, %v4193_v52  ;;  %v2410_v15 = vld [vmem:[#allocation2 + $0x151] sm:$0xff]  ;;  %v3495_v46 = vsel %vm366_vm2, %v5760_v37, %v5765_v57 }
 0x4b8   : > { %4245 = vmatmul.f32.gmra.mxu3 %v3463_v41  ;;  %4355 = vmatmul.f32.gmra.mxu2 %v3494_v42  ;;  %v9173_v41 = vld [vmem:[#allocation28_spill] sm:$0xff]  ;;  %v3464_v42 = vsel %vm1488_vm3, %v5769_v59, %v5774_v60  ;;  %v2533_v45 = vld [vmem:[#allocation2 + $0x12a] sm:$0xff] }
 0x4b9   : > { %v4543_v40 = vadd.f32 %v8674_v12, %v4507_v58  ;;  %v3970_v51 = vadd.f32 %v9173_v41, %v3857_v50  ;;  %v3434_v58 = vsel %vm277_vm0, %v2410_v15, %v5784_v3  ;;  %v9174_v15 = vld [vmem:[#allocation23_spill] sm:$0xff] }
 0x4ba   : > { %v9175_v41 = vld [vmem:[#allocation27_spill] sm:$0xff] }
 0x4bb   : > { %v4198_v39 = vpop.f32.mrf.mxu3  ;;  %v4308_v10 = vpop.f32.mrf.mxu2  ;;  %4575 = vxpose.xlu1.b32.cont [5/16] (narrow) %v4543_v40, 8  ;;  %v4083_v52 = vadd.f32 %v8690_v0, %v3970_v51  ;;  %v3860_v0 = vadd.f32 %v9175_v41, %v9174_v15 }
 0x4bc   : > { %v8772_v17 = vpop.f32.mrf.mxu1  ;;  %v4418_v35 = vpop.f32.mrf.mxu0 }
 0x4bd   : > { %v4419_v63 = vadd.f32 %v4418_v35, %v4306_v61  ;;  %v4196_v33 = vadd.f32 %v4195_v62, %v4083_v52  ;;  %v5778_v61 = vpop.permute.xlu2 %5777  ;;  %v5775_v35 = vunpack.i.h.bf16 %v8743_v29  ;;  %v8792_v37 = vpop.permute.xlu1 %3016 }
 0x4be   : > { %v5779_v52 = vunpack.i.l.bf16 %v5778_v61 }
 0x4bf   : > { %4141 = vmatmul.f32.gmra.mxu1 %v3434_v58  ;;  %v4508_v40 = vmul.f32 %v8663_v54, %v4419_v63  ;;  %4773 = vmatmul.msk.f32.gmra.mxu0 %vm277_vm0, %v2533_v45  ;;  %v4309_v51 = vadd.f32 %v4308_v10, %v4196_v33  ;;  %v9176_v45 = vld [vmem:[#allocation31_spill] sm:$0xff]  ;;  %v3465_v10 = vsel %vm1488_vm3, %v5770_v7, %v5775_v35 }
 0x4c0   : > { %4248 = vmatmul.f32.gmra.mxu3 %v3464_v42  ;;  %4358 = vmatmul.f32.gmra.mxu2 %v3495_v46  ;;  %v2411_v42 = vld [vmem:[#allocation2 + $0x159] sm:$0xff]  ;;  %v3973_v62 = vadd.f32 %v9176_v45, %v3860_v0  ;;  %v3496_v15 = vsel %vm366_vm2, %v5774_v60, %v5779_v52  ;;  %v9179_v60 = vld [vmem:[#allocation34_spill] sm:$0xff] }
 0x4c1   : > { %v4544_v50 = vadd.f32 %v8674_v12, %v4508_v40  ;;  %v3435_v29 = vsel %vm277_vm0, %v2411_v42, %v5785_v53  ;;  %v2534_v46 = vld [vmem:[#allocation2 + $0x13a] sm:$0xff]  ;;  %v9178_v42 = vld [vmem:[#allocation30_spill] sm:$0xff] }
 0x4c2   : > { %v4086_v33 = vadd.f32 %v8707_v24, %v3973_v62 }
 0x4c3   : > { %v4201_v59 = vpop.f32.mrf.mxu3  ;;  %v4311_v63 = vpop.f32.mrf.mxu2  ;;  %4576 = vxpose.xlu1.b32.cont [6/16] (narrow) %v4544_v50, 8 }
 0x4c4   : > { %v8790_v58 = vpop.f32.mrf.mxu1  ;;  %v4421_v57 = vpop.f32.mrf.mxu0  ;;  %v4199_v41 = vadd.f32 %v4198_v39, %v4086_v33 }
 0x4c5   : > { %v4422_v40 = vadd.f32 %v4421_v57, %v4309_v51  ;;  %v9177_v57 = vld [vmem:[#allocation26_spill] sm:$0xff]  ;;  %v8810_v24 = vpop.permute.xlu2 %5787  ;;  %v8815_v33 = vpop.permute.xlu1 %3018 }
 0x4c6   : > { %v3863_v23 = vadd.f32 %v9178_v42, %v9177_v57  ;;  %v4312_v45 = vadd.f32 %v4311_v63, %v4199_v41  ;;  %v3466_v63 = vsel %vm1488_vm3, %v5784_v3, %v8768_v38  ;;  %v3143_v42 = vpop.permute.xlu0 %3142 }
 0x4c7   : > { %4144 = vmatmul.f32.gmra.mxu1 %v3435_v29  ;;  %v4509_v50 = vmul.f32 %v8663_v54, %v4422_v40  ;;  %4774 = vmatmul.msk.f32.gmra.mxu0 %vm277_vm0, %v2534_v46  ;;  %v2412_v40 = vld [vmem:[#allocation2 + $0x169] sm:$0xff] }
 0x4c8   : > { %4251 = vmatmul.f32.gmra.mxu3 %v3465_v10  ;;  %4361 = vmatmul.f32.gmra.mxu2 %v3496_v15  ;;  %v3976_v52 = vadd.f32 %v9179_v60, %v3863_v23  ;;  %v5780_v10 = vunpack.i.h.bf16 %v5778_v61  ;;  %v3436_v39 = vsel %vm277_vm0, %v2412_v40, %v8792_v37 }
 0x4c9   : > { %v4545_v0 = vadd.f32 %v8674_v12, %v4509_v50  ;;  %v2535_v50 = vld [vmem:[#allocation2 + $0x142] sm:$0xff] }
 0x4ca   : > { %v4089_v15 = vadd.f32 %v8730_v47, %v3976_v52  ;;  %v3497_v61 = vsel %vm366_vm2, %v5775_v35, %v5780_v10  ;;  %v5789_v10 = vunpack.i.l.bf16 %v8810_v24 }
 0x4cb   : > { %v4204_v51 = vpop.f32.mrf.mxu3  ;;  %v4314_v7 = vpop.f32.mrf.mxu2  ;;  %4577 = vxpose.xlu1.b32.cont [7/16] (narrow) %v4545_v0, 8 }
 0x4cc   : > { %v8808_v29 = vpop.f32.mrf.mxu1  ;;  %v4424_v62 = vpop.f32.mrf.mxu0  ;;  %v4202_v0 = vadd.f32 %v4201_v59, %v4089_v15  ;;  %v2536_v15 = vld [vmem:[#allocation2 + $0x152] sm:$0xff] }
 0x4cd   : > { %v4425_v46 = vadd.f32 %v4424_v62, %v4312_v45  ;;  %v9180_v45 = vld [vmem:[#allocation29_spill] sm:$0xff] }
 0x4ce   : > { %v9181_v62 = vld [vmem:[#allocation33_spill] sm:$0xff]  ;;  %v4315_v3 = vadd.f32 %v4314_v7, %v4202_v0  ;;  %v3467_v7 = vsel %vm1488_vm3, %v5785_v53, %v3143_v42  ;;  %v3498_v0 = vsel %vm366_vm2, %v8768_v38, %v5789_v10  ;;  %v9184_v53 = vld [vmem:[#allocation36_spill] sm:$0xff] }
 0x4cf   : > { %4147 = vmatmul.f32.gmra.mxu1 %v3436_v39  ;;  %v4510_v41 = vmul.f32 %v8663_v54, %v4425_v46  ;;  %4775 = vmatmul.msk.f32.gmra.mxu0 %vm277_vm0, %v2535_v50  ;;  %v3866_v40 = vadd.f32 %v9181_v62, %v9180_v45  ;;  %v2413_v46 = vld [vmem:[#allocation2 + $0x171] sm:$0xff]  ;;  %v9182_v39 = vld [vmem:[#allocation37_spill] sm:$0xff]  ;;  %v3145_v50 = vpop.permute.xlu2 %3144  ;;  %v9185_v38 = vld [vmem:[#allocation40_spill] sm:$0xff] }
 0x4d0   : > { %4254 = vmatmul.f32.gmra.mxu3 %v3466_v63  ;;  %4364 = vmatmul.f32.gmra.mxu2 %v3497_v61  ;;  %v3437_v59 = vsel %vm277_vm0, %v2413_v46, %v8815_v33 }
 0x4d1   : > { %v4546_v57 = vadd.f32 %v8674_v12, %v4510_v41  ;;  %v3979_v35 = vadd.f32 %v9182_v39, %v3866_v40  ;;  %v9183_v40 = vld [vmem:[#allocation32_spill] sm:$0xff] }
 0x4d3   : > { %v4207_v23 = vpop.f32.mrf.mxu3  ;;  %v4317_v60 = vpop.f32.mrf.mxu2  ;;  %4578 = vxpose.xlu1.b32.cont [8/16] (narrow) %v4546_v57, 8  ;;  %v4092_v41 = vadd.f32 %v8750_v9, %v3979_v35  ;;  %v2414_v35 = vld [vmem:[#allocation2 + $0x181] sm:$0xff] }
 0x4d4   : > { %v8828_v47 = vpop.f32.mrf.mxu1  ;;  %v4427_v52 = vpop.f32.mrf.mxu0 }
 0x4d5   : > { %v4428_v63 = vadd.f32 %v4427_v52, %v4315_v3  ;;  %v8842_v57 = vpop.permute.xlu1 %3020  ;;  %v4205_v45 = vadd.f32 %v4204_v51, %v4092_v41  ;;  %v3869_v3 = vadd.f32 %v9184_v53, %v9183_v40 }
 0x4d6   : > { %v3438_v51 = vsel %vm277_vm0, %v2414_v35, %v8842_v57 }
 0x4d7   : > { %4150 = vmatmul.f32.gmra.mxu1 %v3437_v59  ;;  %v4511_v61 = vmul.f32 %v8663_v54, %v4428_v63  ;;  %4776 = vmatmul.msk.f32.gmra.mxu0 %vm277_vm0, %v2536_v15  ;;  %v4318_v52 = vadd.f32 %v4317_v60, %v4205_v45  ;;  %v3982_v10 = vadd.f32 %v9185_v38, %v3869_v3  ;;  %v5790_v63 = vunpack.i.h.bf16 %v8810_v24  ;;  %v2537_v60 = vld [vmem:[#allocation2 + $0x15a] sm:$0xff]  ;;  %v3147_v24 = vpop.permute.xlu2 %3146 }
 0x4d8   : > { %4257 = vmatmul.f32.gmra.mxu3 %v3467_v7  ;;  %4367 = vmatmul.f32.gmra.mxu2 %v3498_v0  ;;  %v3273_v7 = vpop.permute.xlu0 %3272  ;;  %v3468_v15 = vsel %vm1488_vm3, %v8792_v37, %v3145_v50  ;;  %v9186_v3 = vld [vmem:[#allocation35_spill] sm:$0xff] }
 0x4d9   : > { %v4547_v62 = vadd.f32 %v8674_v12, %v4511_v61  ;;  %v4095_v41 = vadd.f32 %v8772_v17, %v3982_v10  ;;  %v3499_v0 = vsel %vm366_vm2, %v3143_v42, %v5790_v63  ;;  %v2415_v10 = vld [vmem:[#allocation2 + $0x189] sm:$0xff]  ;;  %v9188_v42 = vld [vmem:[#allocation43_spill] sm:$0xff] }
 0x4db   : > { %v4210_v6 = vpop.f32.mrf.mxu3  ;;  %v4320_v9 = vpop.f32.mrf.mxu2  ;;  %4579 = vxpose.xlu1.b32.cont [9/16] (narrow) %v4547_v62, 8  ;;  %v4208_v45 = vadd.f32 %v4207_v23, %v4095_v41  ;;  %v3469_v23 = vsel %vm1488_vm3, %v8815_v33, %v3147_v24  ;;  %v3500_v41 = vsel %vm366_vm2, %v3145_v50, %v3273_v7 }
 0x4dc   : > { %v8847_v46 = vpop.f32.mrf.mxu1  ;;  %v4430_v39 = vpop.f32.mrf.mxu0 }
 0x4dd   : > { %v4431_v59 = vadd.f32 %v4430_v39, %v4318_v52  ;;  %v3023_v40 = vpop.permute.xlu1 %3022  ;;  %v9187_v52 = vld [vmem:[#allocation39_spill] sm:$0xff]  ;;  %v4321_v39 = vadd.f32 %v4320_v9, %v4208_v45 }
 0x4de   : > { %v3872_v37 = vadd.f32 %v9187_v52, %v9186_v3  ;;  %v9189_v52 = vld [vmem:[#allocation38_spill] sm:$0xff] }
 0x4df   : > { %4153 = vmatmul.f32.gmra.mxu1 %v3438_v51  ;;  %v4512_v61 = vmul.f32 %v8663_v54, %v4431_v59  ;;  %4777 = vmatmul.msk.f32.gmra.mxu0 %vm277_vm0, %v2537_v60  ;;  %v3439_v51 = vsel %vm277_vm0, %v2415_v10, %v3023_v40 }
 0x4e0   : > { %4260 = vmatmul.f32.gmra.mxu3 %v3468_v15  ;;  %4370 = vmatmul.f32.gmra.mxu2 %v3499_v0  ;;  %v3985_v63 = vadd.f32 %v9188_v42, %v3872_v37  ;;  %v2538_v15 = vld [vmem:[#allocation2 + $0x16a] sm:$0xff]  ;;  %v3149_v0 = vpop.permute.xlu2 %3148  ;;  %v9191_v42 = vld [vmem:[#allocation47_spill] sm:$0xff] }
 0x4e1   : > { %v4548_v62 = vadd.f32 %v8674_v12, %v4512_v61  ;;  %v3275_v61 = vpop.permute.xlu0 %3274  ;;  %v9190_v37 = vld [vmem:[#allocation42_spill] sm:$0xff] }
 0x4e2   : > { %v4098_v60 = vadd.f32 %v8790_v58, %v3985_v63  ;;  %v3875_v33 = vadd.f32 %v9190_v37, %v9189_v52  ;;  %v3470_v63 = vsel %vm1488_vm3, %v8842_v57, %v3149_v0 }
 0x4e3   : > { %v4213_v53 = vpop.f32.mrf.mxu3  ;;  %v4323_v35 = vpop.f32.mrf.mxu2  ;;  %4580 = vxpose.xlu1.b32.cont [10/16] (narrow) %v4548_v62, 8 }
 0x4e4   : > { %v8862_v17 = vpop.f32.mrf.mxu1  ;;  %v4433_v38 = vpop.f32.mrf.mxu0  ;;  %v4211_v45 = vadd.f32 %v4210_v6, %v4098_v60  ;;  %v3988_v50 = vadd.f32 %v9191_v42, %v3875_v33 }
 0x4e5   : > { %v4434_v59 = vadd.f32 %v4433_v38, %v4321_v39 }
 0x4e6   : > { %v4324_v39 = vadd.f32 %v4323_v35, %v4211_v45  ;;  %v4101_v6 = vadd.f32 %v8808_v29, %v3988_v50  ;;  %v9192_v45 = vld [vmem:[#allocation41_spill] sm:$0xff] }
 0x4e7   : > { %4156 = vmatmul.f32.gmra.mxu1 %v3439_v51  ;;  %v4513_v9 = vmul.f32 %v8663_v54, %v4434_v59  ;;  %4778 = vmatmul.msk.f32.gmra.mxu0 %vm277_vm0, %v2538_v15  ;;  %v2539_v59 = vld [vmem:[#allocation2 + $0x172] sm:$0xff] }
 0x4e8   : > { %4263 = vmatmul.f32.gmra.mxu3 %v3469_v23  ;;  %4373 = vmatmul.f32.gmra.mxu2 %v3500_v41  ;;  %v3501_v23 = vsel %vm366_vm2, %v3147_v24, %v3275_v61  ;;  %v4214_v15 = vadd.f32 %v4213_v53, %v4101_v6  ;;  %v9195_v6 = vld [vmem:[#allocation50_spill] sm:$0xff] }
 0x4e9   : > { %v4549_v62 = vadd.f32 %v8674_v12, %v4513_v9  ;;  %v3277_v35 = vpop.permute.xlu0 %3276  ;;  %v3151_v9 = vpop.permute.xlu2 %3150 }
 0x4ea   : > { %v3471_v53 = vsel %vm1488_vm3, %v3023_v40, %v3151_v9 }
 0x4eb   : > { %v4216_v3 = vpop.f32.mrf.mxu3  ;;  %v4326_v38 = vpop.f32.mrf.mxu2  ;;  %4581 = vxpose.xlu1.b32.cont [11/16] (narrow) %v4549_v62, 8  ;;  %v9193_v62 = vld [vmem:[#allocation45_spill] sm:$0xff] }
 0x4ec   : > { %v8875_v58 = vpop.f32.mrf.mxu1  ;;  %v4436_v10 = vpop.f32.mrf.mxu0  ;;  %v3878_v57 = vadd.f32 %v9193_v62, %v9192_v45  ;;  %v4327_v52 = vadd.f32 %v4326_v38, %v4214_v15 }
 0x4ed   : > { %v4437_v7 = vadd.f32 %v4436_v10, %v4324_v39  ;;  %v3502_v39 = vsel %vm366_vm2, %v3149_v0, %v3277_v35  ;;  %v2540_v10 = vld [vmem:[#allocation2 + $0x182] sm:$0xff] }
 0x4ee   : > { %v3991_v24 = vadd.f32 %v8329_v30, %v3878_v57  ;;  %v9194_v30 = vld [vmem:[#allocation44_spill] sm:$0xff] }
 0x4ef   : > { %v4514_v51 = vmul.f32 %v8663_v54, %v4437_v7  ;;  %4779 = vmatmul.msk.f32.gmra.mxu0 %vm277_vm0, %v2539_v59  ;;  %v2543_v35 = vld [vmem:[#allocation2 + $0x1a2] sm:$0xff] }
 0x4f0   : > { %4266 = vmatmul.f32.gmra.mxu3 %v3470_v63  ;;  %4376 = vmatmul.f32.gmra.mxu2 %v3501_v23  ;;  %v4104_v42 = vadd.f32 %v8828_v47, %v3991_v24  ;;  %v9196_v24 = vld [vmem:[#allocation49_spill] sm:$0xff] }
 0x4f1   : > { %v4550_v60 = vadd.f32 %v8674_v12, %v4514_v51  ;;  %v3279_v59 = vpop.permute.xlu0 %3278  ;;  %v3881_v51 = vadd.f32 %v9195_v6, %v9194_v30 }
 0x4f2   : > { %v4217_v38 = vadd.f32 %v4216_v3, %v4104_v42  ;;  %v3503_v45 = vsel %vm366_vm2, %v3151_v9, %v3279_v59  ;;  %v2541_v3 = vld [vmem:[#allocation2 + $0x18a] sm:$0xff] }
 0x4f3   : > { %v4219_v41 = vpop.f32.mrf.mxu3  ;;  %v4329_v37 = vpop.f32.mrf.mxu2  ;;  %4582 = vxpose.xlu1.b32.cont [12/16] (narrow) %v4550_v60, 8  ;;  %v3994_v15 = vadd.f32 %v8365_v13, %v3881_v51  ;;  %v3884_v13 = vadd.f32 %v8349_v19, %v9196_v24  ;;  %v3887_v19 = vadd.f32 %v8379_v14, %v8341_v34  ;;  %v3893_v24 = vadd.f32 %v8420_v25, %v8399_v1 }
 0x4f4   : > { %v8887_v29 = vpop.f32.mrf.mxu1  ;;  %v4439_v33 = vpop.f32.mrf.mxu0  ;;  %v4330_v0 = vadd.f32 %v4329_v37, %v4217_v38 }
 0x4f5   : > { %v4440_v61 = vadd.f32 %v4439_v33, %v4327_v52  ;;  %v4107_v62 = vadd.f32 %v8847_v46, %v3994_v15  ;;  %v2542_v46 = vld [vmem:[#allocation2 + $0x19a] sm:$0xff] }
 0x4f7   : > { %v4515_v50 = vmul.f32 %v8663_v54, %v4440_v61  ;;  %4780 = vmatmul.msk.f32.gmra.mxu0 %vm277_vm0, %v2540_v10  ;;  %v4220_v52 = vadd.f32 %v4219_v41, %v4107_v62  ;;  %v3997_v10 = vadd.f32 %v8390_v8, %v3884_v13  ;;  %v4000_v8 = vadd.f32 %v8411_v22, %v3887_v19 }
 0x4f8   : > { %4269 = vmatmul.f32.gmra.mxu3 %v3471_v53  ;;  %4379 = vmatmul.f32.gmra.mxu2 %v3502_v39 }
 0x4f9   : > { %v4551_v7 = vadd.f32 %v8674_v12, %v4515_v50  ;;  %v4110_v50 = vadd.f32 %v8862_v17, %v3997_v10  ;;  %v4113_v17 = vadd.f32 %v8875_v58, %v4000_v8 }
 0x4fb   : > { %v4222_v63 = vpop.f32.mrf.mxu3  ;;  %v4332_v23 = vpop.f32.mrf.mxu2  ;;  %4583 = vxpose.xlu1.b32.cont [13/16] (narrow) %v4551_v7, 8 }
 0x4fc   : > { %v8898_v40 = vpop.f32.mrf.mxu1  ;;  %v4442_v47 = vpop.f32.mrf.mxu0  ;;  %v4333_v61 = vadd.f32 %v4332_v23, %v4220_v52  ;;  %v4223_v41 = vadd.f32 %v4222_v63, %v4110_v50  ;;  %v3896_v50 = vadd.f32 %v8439_v44, %v8418_v49 }
 0x4fd   : > { %v4443_v60 = vadd.f32 %v4442_v47, %v4330_v0 }
 0x4ff   : > { %v4516_v57 = vmul.f32 %v8663_v54, %v4443_v60  ;;  %4781 = vmatmul.msk.f32.gmra.mxu0 %vm277_vm0, %v2541_v3  ;;  %v3890_v60 = vadd.f32 %v8406_v20, %v8373_v48 }
 0x500   : > { %4783 = vmatmul.msk.f32.vlgmr.msrb.gmra.mxu3 %vm277_vm0, %v2543_v35  ;;  %4382 = vmatmul.f32.gmra.mxu2 %v3503_v45 }
 0x501   : > { %v4552_v37 = vadd.f32 %v8674_v12, %v4516_v57  ;;  %v4003_v3 = vadd.f32 %v8428_v27, %v3890_v60 }
 0x503   : > { %v4225_v33 = vpop.f32.mrf.mxu3  ;;  %v4335_v39 = vpop.f32.mrf.mxu2  ;;  %4584 = vxpose.xlu1.b32.cont [14/16] (narrow) %v4552_v37, 8  ;;  %v4116_v62 = vadd.f32 %v8887_v29, %v4003_v3 }
 0x504   : > { %v4121_v9 = vpop.f32.mrf.mxu1  ;;  %v4445_v53 = vpop.f32.mrf.mxu0  ;;  %v4336_v30 = vadd.f32 %v4335_v39, %v4223_v41  ;;  %v4226_v35 = vadd.f32 %v4225_v33, %v4113_v17  ;;  %v4009_v41 = vadd.f32 %v8465_v28, %v3896_v50 }
 0x505   : > { %v4446_v42 = vadd.f32 %v4445_v53, %v4333_v61  ;;  %v4006_v61 = vadd.f32 %v8448_v5, %v3893_v24 }
 0x507   : > { %v4517_v38 = vmul.f32 %v8663_v54, %v4446_v42  ;;  %4782 = vmatmul.msk.f32.gmra.mxu0 %vm277_vm0, %v2542_v46  ;;  %v4119_v39 = vadd.f32 %v8898_v40, %v4006_v61  ;;  %v3908_v61 = vadd.f32 %v8503_v18, %v8487_v4 }
 0x509   : > { %v4553_v7 = vadd.f32 %v8674_v12, %v4517_v38 }
 0x50b   : > { %v4228_v59 = vpop.f32.mrf.mxu3  ;;  %v4338_v6 = vpop.f32.mrf.mxu2  ;;  %4585 = vxpose.xlu1.b32.cont [15/16] (narrow) %v4553_v7, 8  ;;  %v4122_v7 = vadd.f32 %v4121_v9, %v4009_v41  ;;  %v9198_v41 = vld [vmem:[#allocation55_spill] sm:$0xff] }
 0x50c   : > { %v4448_v51 = vpop.f32.mrf.mxu0  ;;  %v4124_v23 = vpop.f32.mrf.mxu1  ;;  %v4339_v34 = vadd.f32 %v4338_v6, %v4226_v35  ;;  %v4229_v52 = vadd.f32 %v4228_v59, %v4116_v62  ;;  %v3899_v6 = vadd.f32 %v8460_v36, %v8435_v21 }
 0x50d   : > { %v4449_v0 = vadd.f32 %v4448_v51, %v4336_v30 }
 0x50f   : > { %v4518_v47 = vmul.f32 %v8663_v54, %v4449_v0  ;;  %v4012_v0 = vadd.f32 %v8481_v16, %v3899_v6  ;;  %v9199_v6 = vld [vmem:[#allocation51_spill] sm:$0xff] }
 0x511   : > { %v4554_v63 = vadd.f32 %v8674_v12, %v4518_v47  ;;  %v4125_v28 = vadd.f32 %v4124_v23, %v4012_v0 }
 0x513   : > { %v4231_v15 = vpop.f32.mrf.mxu3  ;;  %v4341_v14 = vpop.f32.mrf.mxu2  ;;  %4586 = vxpose.xlu1.b32.end [16/16] (narrow) %v4554_v63, 8 }
 0x514   : > { %v4451_v45 = vpop.f32.mrf.mxu0  ;;  %v4127_v57 = vpop.f32.mrf.mxu1  ;;  %v4342_v48 = vadd.f32 %v4341_v14, %v4229_v52  ;;  %v4232_v53 = vadd.f32 %v4231_v15, %v4119_v39  ;;  %v3902_v15 = vadd.f32 %v8477_v32, %v8452_v2  ;;  %v4021_v39 = vadd.f32 %v8524_v31, %v3908_v61 }
 0x515   : > { %v4452_v22 = vadd.f32 %v4451_v45, %v4339_v34 }
 0x516   : > { %v4015_v34 = vadd.f32 %v8497_v26, %v3902_v15 }
 0x517   : > { %v4519_v58 = vmul.f32 %v8663_v54, %v4452_v22 }
 0x518   : > { %v4128_v16 = vadd.f32 %v4127_v57, %v4015_v34 }
 0x519   : > { %v4555_v37 = vadd.f32 %v8674_v12, %v4519_v58  ;;  %v3905_v58 = vadd.f32 %v8489_v55, %v8473_v43 }
 0x51b   : > { %v4234_v33 = vpop.f32.mrf.mxu3  ;;  %v4344_v20 = vpop.f32.mrf.mxu2  ;;  %4603 = vxpose.xlu2.b32.start [1/16] (narrow) %v4555_v37, 8  ;;  %v4018_v37 = vadd.f32 %v8512_v11, %v3905_v58 }
 0x51c   : > { %v4454_v13 = vpop.f32.mrf.mxu0  ;;  %v4130_v10 = vpop.f32.mrf.mxu1  ;;  %v4345_v1 = vadd.f32 %v4344_v20, %v4232_v53  ;;  %v4235_v59 = vadd.f32 %v4234_v33, %v4122_v7 }
 0x51d   : > { %v4455_v27 = vadd.f32 %v4454_v13, %v4342_v48  ;;  %v4131_v26 = vadd.f32 %v4130_v10, %v4018_v37 }
 0x51f   : > { %v4520_v29 = vmul.f32 %v8663_v54, %v4455_v27 }
 0x521   : > { %v4556_v46 = vadd.f32 %v8674_v12, %v4520_v29 }
 0x523   : > { %v4237_v42 = vpop.f32.mrf.mxu3  ;;  %v4347_v25 = vpop.f32.mrf.mxu2  ;;  %4604 = vxpose.xlu2.b32.cont [2/16] (narrow) %v4556_v46, 8 }
 0x524   : > { %v4457_v38 = vpop.f32.mrf.mxu0  ;;  %v4348_v51 = vadd.f32 %v4347_v25, %v4235_v59  ;;  %v4133_v49 = vpop.f32.mrf.mxu1  ;;  %v4238_v47 = vadd.f32 %v4237_v42, %v4125_v28 }
 0x525   : > { %v4458_v5 = vadd.f32 %v4457_v38, %v4345_v1  ;;  %v4134_v11 = vadd.f32 %v4133_v49, %v4021_v39  ;;  %v9197_v1 = vld [vmem:[#allocation52_spill] sm:$0xff] }
 0x526   : > { %v3911_v25 = vadd.f32 %v9197_v1, %v8499_v56 }
 0x527   : > { %v4521_v40 = vmul.f32 %v8663_v54, %v4458_v5 }
 0x528   : > { %v4024_v5 = vadd.f32 %v9198_v41, %v3911_v25 }
 0x529   : > { %v4557_v19 = vadd.f32 %v8674_v12, %v4521_v40 }
 0x52b   : > { %v4240_v30 = vpop.f32.mrf.mxu3  ;;  %v4350_v8 = vpop.f32.mrf.mxu2  ;;  %4605 = vxpose.xlu2.b32.cont [3/16] (narrow) %v4557_v19, 8 }
 0x52c   : > { %v4460_v44 = vpop.f32.mrf.mxu0  ;;  %v4351_v60 = vadd.f32 %v4350_v8, %v4238_v47  ;;  %v4136_v45 = vpop.f32.mrf.mxu1  ;;  %v4241_v3 = vadd.f32 %v4240_v30, %v4128_v16 }
 0x52d   : > { %v4461_v17 = vadd.f32 %v4460_v44, %v4348_v51  ;;  %v4137_v31 = vadd.f32 %v4136_v45, %v4024_v5  ;;  %v9200_v51 = vld [vmem:[#allocation54_spill] sm:$0xff] }
 0x52e   : > { %v3914_v8 = vadd.f32 %v9200_v51, %v9199_v6 }
 0x52f   : > { %v4522_v9 = vmul.f32 %v8663_v54, %v4461_v17  ;;  %v9201_v17 = vld [vmem:[#allocation58_spill] sm:$0xff] }
 0x530   : > { %v4027_v28 = vadd.f32 %v9201_v17, %v3914_v8 }
 0x531   : > { %v4558_v35 = vadd.f32 %v8674_v12, %v4522_v9 }
 0x533   : > { %v4243_v63 = vpop.f32.mrf.mxu3  ;;  %v4353_v21 = vpop.f32.mrf.mxu2  ;;  %4606 = vxpose.xlu2.b32.cont [4/16] (narrow) %v4558_v35, 8 }
 0x534   : > { %v4463_v36 = vpop.f32.mrf.mxu0  ;;  %v4354_v52 = vadd.f32 %v4353_v21, %v4241_v3  ;;  %v4139_v57 = vpop.f32.mrf.mxu1  ;;  %v4244_v48 = vadd.f32 %v4243_v63, %v4131_v26  ;;  %v9202_v21 = vld [vmem:[#allocation53_spill] sm:$0xff]  ;;  %v9206_v26 = vld [vmem:[#allocation60_spill] sm:$0xff] }
 0x535   : > { %v4464_v14 = vadd.f32 %v4463_v36, %v4351_v60  ;;  %v4140_v47 = vadd.f32 %v4139_v57, %v4027_v28  ;;  %v9203_v36 = vld [vmem:[#allocation57_spill] sm:$0xff] }
 0x536   : > { %v3917_v34 = vadd.f32 %v9203_v36, %v9202_v21 }
 0x537   : > { %v4523_v23 = vmul.f32 %v8663_v54, %v4464_v14 }
 0x539   : > { %v4559_v22 = vadd.f32 %v8674_v12, %v4523_v23  ;;  %v9204_v23 = vld [vmem:[#allocation61_spill] sm:$0xff] }
 0x53a   : > { %v4030_v3 = vadd.f32 %v9204_v23, %v3917_v34  ;;  %v9218_v23 = vld [vmem:[#allocation71_spill] sm:$0xff] }
 0x53b   : > { %v4246_v62 = vpop.f32.mrf.mxu3  ;;  %v4356_v2 = vpop.f32.mrf.mxu2  ;;  %4607 = vxpose.xlu2.b32.cont [5/16] (narrow) %v4559_v22, 8 }
 0x53c   : > { %v4466_v32 = vpop.f32.mrf.mxu0  ;;  %v4357_v27 = vadd.f32 %v4356_v2, %v4244_v48  ;;  %v4247_v46 = vadd.f32 %v4246_v62, %v4134_v11  ;;  %v4142_v42 = vpop.f32.mrf.mxu1 }
 0x53d   : > { %v4467_v33 = vadd.f32 %v4466_v32, %v4354_v52  ;;  %v4143_v58 = vadd.f32 %v4142_v42, %v4030_v3 }
 0x53f   : > { %v4524_v24 = vmul.f32 %v8663_v54, %v4467_v33  ;;  %v9205_v33 = vld [vmem:[#allocation56_spill] sm:$0xff]  ;;  %v4587_v8 = vpop.trf.xlu1 }
 0x540   : > { %4635 = vst [vmem:[%s8991_s9] sm:$0xff] %v4587_v8 }
 0x541   : > { %v4560_v20 = vadd.f32 %v8674_v12, %v4524_v24  ;;  %v3920_v24 = vadd.f32 %v9206_v26, %v9205_v33 }
 0x543   : > { %v4249_v13 = vpop.f32.mrf.mxu3  ;;  %v4359_v43 = vpop.f32.mrf.mxu2  ;;  %4608 = vxpose.xlu2.b32.cont [6/16] (narrow) %v4560_v20, 8 }
 0x544   : > { %v4469_v55 = vpop.f32.mrf.mxu0  ;;  %v4360_v38 = vadd.f32 %v4359_v43, %v4247_v46  ;;  %v4250_v59 = vadd.f32 %v4249_v13, %v4137_v31  ;;  %v4145_v56 = vpop.f32.mrf.mxu1  ;;  %v9207_v13 = vld [vmem:[#allocation64_spill] sm:$0xff]  ;;  %v9208_v46 = vld [vmem:[#allocation59_spill] sm:$0xff] }
 0x545   : > { %v4470_v29 = vadd.f32 %v4469_v55, %v4357_v27  ;;  %v4033_v61 = vadd.f32 %v9207_v13, %v3920_v24 }
 0x547   : > { %v4525_v53 = vmul.f32 %v8663_v54, %v4470_v29  ;;  %v4146_v43 = vadd.f32 %v4145_v56, %v4033_v61  ;;  %v9213_v56 = vld [vmem:[#allocation70_spill] sm:$0xff] }
 0x549   : > { %v4561_v10 = vadd.f32 %v8674_v12, %v4525_v53 }
 0x54b   : > { %v4252_v50 = vpop.f32.mrf.mxu3  ;;  %v4362_v4 = vpop.f32.mrf.mxu2  ;;  %4609 = vxpose.xlu2.b32.cont [7/16] (narrow) %v4561_v10, 8  ;;  %v9209_v10 = vld [vmem:[#allocation63_spill] sm:$0xff] }
 0x54c   : > { %v4472_v18 = vpop.f32.mrf.mxu0  ;;  %v4363_v49 = vadd.f32 %v4362_v4, %v4250_v59  ;;  %v4253_v63 = vadd.f32 %v4252_v50, %v4140_v47  ;;  %v4148_v62 = vpop.f32.mrf.mxu1  ;;  %v3923_v42 = vadd.f32 %v9209_v10, %v9208_v46  ;;  %v9211_v59 = vld [vmem:[#allocation62_spill] sm:$0xff] }
 0x54d   : > { %v4473_v7 = vadd.f32 %v4472_v18, %v4360_v38  ;;  %v9210_v38 = vld [vmem:[#allocation67_spill] sm:$0xff] }
 0x54e   : > { %v4036_v4 = vadd.f32 %v9210_v38, %v3923_v42 }
 0x54f   : > { %v4526_v40 = vmul.f32 %v8663_v54, %v4473_v7  ;;  %v5809_v7 = vld [vmem:[%s9042_s6] ss:$0 sm:$0xff] }
 0x550   : > { %v4149_v41 = vadd.f32 %v4148_v62, %v4036_v4 }
 0x551   : > { %v4562_v19 = vadd.f32 %v8674_v12, %v4526_v40 }
 0x553   : > { %v4255_v30 = vpop.f32.mrf.mxu3  ;;  %v4365_v44 = vpop.f32.mrf.mxu2  ;;  %4610 = vxpose.xlu2.b32.cont [8/16] (narrow) %v4562_v19, 8  ;;  %v9212_v19 = vld [vmem:[#allocation66_spill] sm:$0xff] }
 0x554   : > { %v4475_v0 = vpop.f32.mrf.mxu0  ;;  %v4366_v14 = vadd.f32 %v4365_v44, %v4253_v63  ;;  %v4256_v2 = vadd.f32 %v4255_v30, %v4143_v58  ;;  %v4151_v39 = vpop.f32.mrf.mxu1  ;;  %v3926_v30 = vadd.f32 %v9212_v19, %v9211_v59  ;;  %v9214_v63 = vld [vmem:[#allocation65_spill] sm:$0xff] }
 0x555   : > { %v4476_v9 = vadd.f32 %v4475_v0, %v4363_v49 }
 0x556   : > { %v4039_v0 = vadd.f32 %v9213_v56, %v3926_v30 }
 0x557   : > { %v4527_v35 = vmul.f32 %v8663_v54, %v4476_v9 }
 0x558   : > { %v4152_v28 = vadd.f32 %v4151_v39, %v4039_v0 }
 0x559   : > { %v4563_v15 = vadd.f32 %v8674_v12, %v4527_v35 }
 0x55b   : > { %v4258_v60 = vpop.f32.mrf.mxu3  ;;  %v4368_v45 = vpop.f32.mrf.mxu2  ;;  %4611 = vxpose.xlu2.b32.cont [9/16] (narrow) %v4563_v15, 8  ;;  %v9215_v15 = vld [vmem:[#allocation69_spill] sm:$0xff] }
 0x55c   : > { %v4478_v16 = vpop.f32.mrf.mxu0  ;;  %v4369_v57 = vadd.f32 %v4368_v45, %v4256_v2  ;;  %v4259_v29 = vadd.f32 %v4258_v60, %v4146_v43  ;;  %v4154_v40 = vpop.f32.mrf.mxu1  ;;  %v3929_v60 = vadd.f32 %v9215_v15, %v9214_v63  ;;  %v9217_v45 = vld [vmem:[#allocation48_spill] sm:$0xff] }
 0x55d   : > { %v4479_v22 = vadd.f32 %v4478_v16, %v4366_v14  ;;  %v9216_v14 = vld [vmem:[#allocation68_spill] sm:$0xff] }
 0x55e   : > { %v3932_v16 = vadd.f32 %v9217_v45, %v9216_v14  ;;  %v4042_v3 = vadd.f32 %v9218_v23, %v3929_v60 }
 0x55f   : > { %v4528_v52 = vmul.f32 %v8663_v54, %v4479_v22 }
 0x561   : > { %v4564_v32 = vadd.f32 %v8674_v12, %v4528_v52  ;;  %v9219_v52 = vld [vmem:[#allocation46_spill] sm:$0xff] }
 0x562   : > { %v4045_v2 = vadd.f32 %v9219_v52, %v3932_v16 }
 0x563   : > { %v4261_v37 = vpop.f32.mrf.mxu3  ;;  %v4371_v48 = vpop.f32.mrf.mxu2  ;;  %4612 = vxpose.xlu2.b32.cont [10/16] (narrow) %v4564_v32, 8  ;;  %v4155_v32 = vadd.f32 %v4154_v40, %v4042_v3 }
 0x564   : > { %v4481_v20 = vpop.f32.mrf.mxu0  ;;  %v4372_v50 = vadd.f32 %v4371_v48, %v4259_v29  ;;  %v4262_v5 = vadd.f32 %v4261_v37, %v4149_v41  ;;  %v4157_v62 = vpop.f32.mrf.mxu1 }
 0x565   : > { %v4482_v27 = vadd.f32 %v4481_v20, %v4369_v57  ;;  %v4158_v33 = vadd.f32 %v4157_v62, %v4045_v2 }
 0x567   : > { %v4529_v55 = vmul.f32 %v8663_v54, %v4482_v27  ;;  %v5808_v54 = vld [vmem:[%s9041_s5] ss:$0 sm:$0xff] }
 0x569   : > { %v4565_v11 = vadd.f32 %v8674_v12, %v4529_v55 }
 0x56b   : > { %v4264_v53 = vpop.f32.mrf.mxu3  ;;  %v4374_v1 = vpop.f32.mrf.mxu2  ;;  %4613 = vxpose.xlu2.b32.cont [11/16] (narrow) %v4565_v11, 8 }
 0x56c   : > { %v4484_v25 = vpop.f32.mrf.mxu0  ;;  %v4375_v6 = vadd.f32 %v4374_v1, %v4262_v5  ;;  %v4265_v47 = vadd.f32 %v4264_v53, %v4152_v28 }
 0x56d   : > { %v4485_v18 = vadd.f32 %v4484_v25, %v4372_v50 }
 0x56f   : > { %v4530_v12 = vmul.f32 %v5808_v54, %v4485_v18 }
 0x571   : > { %v4566_v31 = vadd.f32 %v5809_v7, %v4530_v12 }
 0x573   : > { %v4377_v51 = vpop.f32.mrf.mxu2  ;;  %4614 = vxpose.xlu2.b32.cont [12/16] (narrow) %v4566_v31, 8  ;;  %v4267_v49 = vpop.f32.mrf.mxu3 }
 0x574   : > { %v4487_v44 = vpop.f32.mrf.mxu0  ;;  %v4378_v21 = vadd.f32 %v4377_v51, %v4265_v47  ;;  %v4268_v26 = vadd.f32 %v4267_v49, %v4155_v32 }
 0x575   : > { %v4488_v17 = vadd.f32 %v4487_v44, %v4375_v6 }
 0x577   : > { %v4531_v9 = vmul.f32 %v5808_v54, %v4488_v17 }
 0x579   : > { %v4567_v35 = vadd.f32 %v5809_v7, %v4531_v9 }
 0x57b   : > { %v4380_v36 = vpop.f32.mrf.mxu2  ;;  %4615 = vxpose.xlu2.b32.cont [13/16] (narrow) %v4567_v35, 8  ;;  %v4270_v58 = vpop.f32.mrf.mxu3 }
 0x57c   : > { %v4490_v34 = vpop.f32.mrf.mxu0  ;;  %v4271_v57 = vadd.f32 %v4270_v58, %v4158_v33  ;;  %v4381_v48 = vadd.f32 %v4380_v36, %v4268_v26 }
 0x57d   : > { %v4491_v22 = vadd.f32 %v4490_v34, %v4378_v21 }
 0x57f   : > { %v4532_v37 = vmul.f32 %v5808_v54, %v4491_v22 }
 0x581   : > { %v4568_v24 = vadd.f32 %v5809_v7, %v4532_v37 }
 0x583   : > { %v4383_v20 = vpop.f32.mrf.mxu2  ;;  %4616 = vxpose.xlu2.b32.cont [14/16] (narrow) %v4568_v24, 8  ;;  %v4496_v43 = vpop.f32.mrf.mxu3 }
 0x584   : > { %v4493_v13 = vpop.f32.mrf.mxu0  ;;  %v4384_v61 = vadd.f32 %v4383_v20, %v4271_v57 }
 0x585   : > { %v4494_v27 = vadd.f32 %v4493_v13, %v4381_v48 }
 0x586   : > { %v4497_v39 = vadd.f32 %v4496_v43, %v4384_v61 }
 0x587   : > { %v4533_v55 = vmul.f32 %v5808_v54, %v4494_v27 }
 0x588   : > { %v4534_v11 = vmul.f32 %v5808_v54, %v4497_v39 }
 0x589   : > { %v4569_v29 = vadd.f32 %v5809_v7, %v4533_v55 }
 0x58a   : > { %v4570_v53 = vadd.f32 %v5809_v7, %v4534_v11 }
 0x58b   : > { %4617 = vxpose.xlu2.b32.cont [15/16] (narrow) %v4569_v29, 8 }
 0x593   : > { %4618 = vxpose.xlu2.b32.end [16/16] (narrow) %v4570_v53, 8 }
 0x5b4   : > { %v4619_v46 = vpop.trf.xlu2 }
 0x5b5   : > { %4636 = vst [vmem:[%s8991_s9 + $0x8] sm:$0xff] %v4619_v46 }
 0x5b6   : > { %5837 = shalt.err (!%p5834_p3)
}
 0x5b7   : > { %4823 = dma.vmem_to_hbm [thread:$0]  (%p5956_p5), %s4652_s19, 256, %s4654_s20, %s4638_s17  }
 0x5b8 PF: > { %p4829_p4 = scmp.ge.s32.totalorder %s5872_s27, 2  ;;  %s4665_s18 = sand.u32 1, %s5860_s24  }
 0x5b9   : > { %s4666_s9 = scalar_lea.sflag [#allocation4], %s4665_s18 }
 0x5ba   : > { %p4826_p7 = pnand %p4829_p4, %p5960_p6 }
 0x5bc   : > { %p4827_p8 = pneg %p4826_p7 }
 0x5be   : > { %5855 = dma.done.wait (%p4827_p8), %s4666_s9, 256  }
 0x5bf   : > { %5857 = vsyncadd (%p4827_p8), %s4666_s9, 4294967040  ;;  %p17_p9 = scmp.ge.s32.totalorder %s5943_s30, 4   ;;  %s9220_s24 = smov %s5864_s25 }
 0x5c0   : > { %s9221_s25 = smov %s5868_s26  ;;  %s9222_s26 = smov %s5954_s10 }
 0x5c1   : > { %s9223_s27 = smov %s5943_s30  ;;  %19 = sbr.rel (!%p17_p9) target bundleno = 3 (0x3), region = 85 }
 0x5c6   :  { %4672 = vsyncpa [#allocation4], 1 }
 0x5c7   :  { %4674 = vsyncpa [#allocation4 + $0x1], 1 }

</bundles_post_ra>
